<compile_context>
chip_gen: v5e
topology: v5e:2x2
jax: 0.10.0
libtpu: 0.0.40
codegen_flags: <defaults>
</compile_context>

<pallas_src>
import jax
import jax.numpy as jnp
from jax import lax
from jax.experimental import pallas as pl
from jax.experimental.pallas import tpu as pltpu

K = 5                  # kernel size (cubic)
STRIDE = 2
PAD = 2
T = 3                  # polyphase taps per spatial dim = ceil(K / STRIDE)
NPAR = STRIDE ** 3     # 8 output parity classes (sub-pixel phases)


def _rup(x, m):
    return -(-x // m) * m


def _n_parallel_m_tiles():
    """Size of the 'parallel' M grid axis.

    v7x has 2 TensorCores per chip -> keep a size-2 parallel axis so each core
    takes half the rows; v5e/v6e are single-TC -> one fused grid step (the
    ~0.35us/step overhead dominates this latency-bound matmul there).
    """
    try:
        kind = jax.devices()[0].device_kind.lower()
    except Exception:
        return 1
    return 2 if "7" in kind else 1


def _pick_tiles(Mp, Kc, Co8, n_m_tiles):
    """Lane/sublane-legal tile sizes.

    At the toy shape everything fits in one tile (single MXU matmul).  At the
    real module shape (Kc=47682, Co8=2096) this tiles K and N so no block
    exceeds any generation's scoped-VMEM budget (v7x: 32 MiB scoped / 64 MiB
    physical); the reduction axis accumulates into an f32 VMEM scratch.
    """
    tm = min(_rup(pl.cdiv(Mp, max(n_m_tiles, 1)), 16), 512)   # sublane-aligned rows
    co8_pad = _rup(Co8, 128)                                  # lane-dense output tile
    tn = co8_pad if co8_pad <= 2304 else 1024
    tk = Kc if Kc <= 4096 else 1024                           # contraction (taps*Cin)
    return tm, tn, tk


def _matmul_bias_kernel(p_ref, w_ref, b_ref, o_ref, acc_ref):
    """(tm,tk)@(tk,tn) accumulated over the K grid axis; bias add on writeback."""
    k = pl.program_id(2)

    @pl.when(k == 0)
    def _init():
        acc_ref[...] = jnp.zeros_like(acc_ref)

    acc_ref[...] += jnp.dot(p_ref[...], w_ref[...],
                            preferred_element_type=jnp.float32)

    @pl.when(k == pl.num_programs(2) - 1)
    def _finalize():
        o_ref[...] = (acc_ref[...] + b_ref[...]).astype(o_ref.dtype)


def _matmul_bias(patch, w_mat, b_row, *, tm, tn, tk):
    """patch:(Mp,Kc) bf16, w_mat:(Kc,Co8) bf16, b_row:(1,Co8) f32 -> (Mp,Co8) f32."""
    Mp, Kc = patch.shape
    Co8 = w_mat.shape[1]
    Mp_p, Kc_p, Co8_p = _rup(Mp, tm), _rup(Kc, tk), _rup(Co8, tn)
    patch = jnp.pad(patch, ((0, Mp_p - Mp), (0, Kc_p - Kc)))
    w_mat = jnp.pad(w_mat, ((0, Kc_p - Kc), (0, Co8_p - Co8)))
    b_row = jnp.pad(b_row, ((0, 0), (0, Co8_p - Co8)))

    grid = (Mp_p // tm, Co8_p // tn, Kc_p // tk)
    cost = pl.CostEstimate(
        flops=2 * Mp_p * Kc_p * Co8_p,
        transcendentals=0,
        bytes_accessed=(patch.size * patch.dtype.itemsize
                        + w_mat.size * w_mat.dtype.itemsize
                        + b_row.size * b_row.dtype.itemsize
                        + Mp_p * Co8_p * 4))

    out = pl.pallas_call(
        _matmul_bias_kernel,
        out_shape=jax.ShapeDtypeStruct((Mp_p, Co8_p), jnp.float32),
        grid_spec=pltpu.PrefetchScalarGridSpec(
            num_scalar_prefetch=0,
            grid=grid,
            in_specs=[
                pl.BlockSpec((tm, tk), lambda m, n, k: (m, k)),
                # TODO(synk): weight/bias blocks are revisit-only along m;
                # pipeline_mode=pl.Buffered(1) here would halve their VMEM
                # footprint at the real module shape.
                pl.BlockSpec((tk, tn), lambda m, n, k: (k, n)),
                pl.BlockSpec((1, tn), lambda m, n, k: (0, n)),
            ],
            out_specs=pl.BlockSpec((tm, tn), lambda m, n, k: (m, n)),
            scratch_shapes=[pltpu.VMEM((tm, tn), jnp.float32)],
        ),
        compiler_params=pltpu.CompilerParams(
            dimension_semantics=("parallel", "parallel", "arbitrary")),
        cost_estimate=cost,
    )(patch, w_mat, b_row)
    return out[:Mp, :Co8]


def _polyphase_weights(w):
    """(Cin, Cout, K, K, K) -> (T^3*Cin, NPAR*Cout) polyphase-stacked matrix.

    For output parity r and tap offset t into the 1-padded input, the 1-D
    kernel index is k = 2*(2 - t) + r; k == 5 (only r=1, t=0) means "no tap"
    and maps to the zero column appended by the pad below.
    """
    Cin, Cout = w.shape[0], w.shape[1]
    w_pad = jnp.pad(w, ((0, 0), (0, 0), (0, 1), (0, 1), (0, 1)))   # (..., 6,6,6)
    idx = jnp.array([4, 2, 0, 5, 3, 1], dtype=jnp.int32)           # (r*3 + t) -> k
    wp = jnp.take(w_pad, idx, axis=2)
    wp = jnp.take(wp, idx, axis=3)
    wp = jnp.take(wp, idx, axis=4)
    wp = wp.reshape(Cin, Cout, 2, T, 2, T, 2, T)  # (ci, co, rd, td, rh, th, rw, tw)
    wp = jnp.transpose(wp, (3, 5, 7, 0, 2, 4, 6, 1))  # (td, th, tw, ci, rd, rh, rw, co)
    return wp.reshape(T * T * T * Cin, NPAR * Cout)


def conv_transpose3d_pallas(x_ncdhw, w, b):
    """x_ncdhw: (N, Cin, D, H, W); w: (Cin, Cout, K, K, K); b: (Cout,)."""
    N, Cin, D, H, W = x_ncdhw.shape
    Cout = w.shape[1]
    s, p = STRIDE, PAD
    OD = (D - 1) * s - 2 * p + K
    OH = (H - 1) * s - 2 * p + K
    OW = (W - 1) * s - 2 * p + K
    M = D * H * W
    Kc = T * T * T * Cin          # contraction depth (216 for Cin=8)
    Co8 = NPAR * Cout             # all 8 parities' output channels side by side

    # ---- layout plumbing: channels-last, 1-voxel halo, im2col over the 3x3x3
    #      polyphase tap window (tap-major, Cin-minor); batch fused into rows.
    # TODO(synk): at the real module shape (Cin=1766) build this im2col
    #      in-kernel (tap loop over a haloed NDHWC block, one (M,Cin)@(Cin,Co8)
    #      matmul per tap into the scratch) to avoid the 27x HBM patch blow-up.
    x = jnp.transpose(x_ncdhw, (0, 2, 3, 4, 1))                       # NDHWC
    xp = jnp.pad(x, ((0, 0), (1, 1), (1, 1), (1, 1), (0, 0)))
    cols = [xp[:, td:td + D, th:th + H, tw:tw + W, :]
            for td in range(T) for th in range(T) for tw in range(T)]
    patch = jnp.concatenate(cols, axis=-1).reshape(N * M, Kc)

    w_mat = _polyphase_weights(w)                                     # (Kc, Co8)
    b_row = jnp.tile(b, NPAR).reshape(1, Co8).astype(jnp.float32)

    # bf16 operands, f32 accumulation: native MXU rate on v5e/v6e/v7x;
    # bias add stays in f32 (v5e has no bf16 VPU path).
    patch = patch.astype(jnp.bfloat16)
    w_mat = w_mat.astype(jnp.bfloat16)

    tm, tn, tk = _pick_tiles(N * M, Kc, Co8, _n_parallel_m_tiles())
    out_flat = _matmul_bias(patch, w_mat, b_row, tm=tm, tn=tn, tk=tk)  # (N*M, Co8) f32

    # ---- interleave the 8 parities back into the strided NCDHW output grid ----
    # TODO(synk): if the consumer accepts NDHWC / bf16, emit bf16 from the
    #      kernel and fuse this interleave to cut epilogue HBM traffic.
    out = out_flat.reshape(N, D, H, W, 2, 2, 2, Cout)
    out = jnp.transpose(out, (0, 1, 4, 2, 5, 3, 6, 7))      # (N,D,rd,H,rh,W,rw,C)
    out = out.reshape(N, 2 * D, 2 * H, 2 * W, Cout)[:, :OD, :OH, :OW, :]
    return jnp.transpose(out, (0, 4, 1, 2, 3))               # back to NCDHW


def _reference(x_ncdhw, w, b):
    """Plain-JAX reference (conv of dilated input with flipped kernel)."""
    N, Cin, D, H, W = x_ncdhw.shape
    Cout = w.shape[1]
    s, p = STRIDE, PAD
    q = K - 1 - p
    x = jnp.transpose(x_ncdhw, (0, 2, 3, 4, 1))  # NDHWC
    w_flip = jnp.transpose(jnp.flip(w, axis=(2, 3, 4)), (2, 3, 4, 0, 1))  # DHWIO
    out = lax.conv_general_dilated(
        x, w_flip,
        window_strides=(1, 1, 1),
        padding=[(q, q), (q, q), (q, q)],
        lhs_dilation=(s, s, s),
        dimension_numbers=("NDHWC", "DHWIO", "NDHWC"),
        precision=lax.Precision.HIGHEST)
    out = out + b.reshape(1, 1, 1, 1, Cout)
    return jnp.transpose(out, (0, 4, 1, 2, 3))


if __name__ == "__main__":
    key = jax.random.PRNGKey(0)
    kx, kw, kb = jax.random.split(key, 3)

    # small shapes consistent with the module's forward (see NOTE above)
    N, Cin, Cout = 2, 8, 128
    D, H, W = 5, 6, 7

    x1 = jax.random.normal(kx, (N, Cin, D, H, W), dtype=jnp.float32)

    # deterministic parameter init (torch-like uniform bound)
    fan_in = Cin * K * K * K
    bound = 1.0 / (fan_in ** 0.5)
    w = jax.random.uniform(kw, (Cin, Cout, K, K, K), jnp.float32, -bound, bound)
    b = jax.random.uniform(kb, (Cout,), jnp.float32, -bound, bound)

    fwd = jax.jit(conv_transpose3d_pallas)
    out = jax.block_until_ready(fwd(x1, w, b))

    expected_shape = (N, Cout,
                      (D - 1) * STRIDE - 2 * PAD + K,
                      (H - 1) * STRIDE - 2 * PAD + K,
                      (W - 1) * STRIDE - 2 * PAD + K)
    assert out.shape == expected_shape, (out.shape, expected_shape)

    ref = jax.block_until_ready(_reference(x1, w, b))
    assert jnp.allclose(out, ref, rtol=2e-2, atol=2e-2), \
        float(jnp.max(jnp.abs(out - ref)))

    print("KERNEL_OK")
</pallas_src>

<mosaic_0001>
module attributes {stable_mosaic.version = 11 : i64} {
  func.func @_matmul_bias_kernel(%arg0: i32, %arg1: i32, %arg2: i32, %arg3: memref<432x216xbf16, #tpu.memory_space<vmem>>, %arg4: memref<216x1024xbf16, #tpu.memory_space<vmem>>, %arg5: memref<1x1024xf32, #tpu.memory_space<vmem>>, %arg6: memref<432x1024xf32, #tpu.memory_space<vmem>>, %arg7: memref<432x1024xf32, #tpu.memory_space<vmem>>) attributes {dimension_semantics = [#tpu.dimension_semantics<parallel>, #tpu.dimension_semantics<parallel>, #tpu.dimension_semantics<arbitrary>], iteration_bounds = array<i64: 1, 1, 1>, scalar_prefetch = 0 : i64, scratch_operands = 1 : i64, tpu.core_type = #tpu.core_type<tc>, window_params = [{transform_indices = @transform_0, window_bounds = array<i64: 432, 216>}, {transform_indices = @transform_1, window_bounds = array<i64: 216, 1024>}, {transform_indices = @transform_2, window_bounds = array<i64: 1, 1024>}, {transform_indices = @transform_3, window_bounds = array<i64: 432, 1024>}]} {
    %c0_i32 = arith.constant 0 : i32
    %0 = arith.cmpi eq, %arg2, %c0_i32 : i32
    %1 = arith.extui %0 : i1 to i32
    %c0_i32_0 = arith.constant 0 : i32
    %2 = arith.cmpi ne, %1, %c0_i32_0 : i32
    scf.if %2 {
      %cst_10 = arith.constant 0.000000e+00 : f32
      %12 = vector.broadcast %cst_10 : f32 to vector<432x1024xf32>
      %c0_11 = arith.constant 0 : index
      %c0_12 = arith.constant 0 : index
      %13 = vector.load %arg7[%c0_11, %c0_12] : memref<432x1024xf32, #tpu.memory_space<vmem>>, vector<432x1024xf32>
      tpu.vector_store %arg7[%c0_11, %c0_12], %12 {strides = array<i32>} : memref<432x1024xf32, #tpu.memory_space<vmem>>, vector<432x1024xf32>,
    } else {
    }
    %c0 = arith.constant 0 : index
    %c0_1 = arith.constant 0 : index
    %3 = vector.load %arg7[%c0, %c0_1] : memref<432x1024xf32, #tpu.memory_space<vmem>>, vector<432x1024xf32>
    %c0_2 = arith.constant 0 : index
    %c0_3 = arith.constant 0 : index
    %4 = vector.load %arg3[%c0_2, %c0_3] : memref<432x216xbf16, #tpu.memory_space<vmem>>, vector<432x216xbf16>
    %c0_4 = arith.constant 0 : index
    %c0_5 = arith.constant 0 : index
    %5 = vector.load %arg4[%c0_4, %c0_5] : memref<216x1024xbf16, #tpu.memory_space<vmem>>, vector<216x1024xbf16>
    %cst = arith.constant dense<0.000000e+00> : vector<432x1024xf32>
    %6 = tpu.matmul %4, %5, %cst {dimension_numbers = #tpu.dot_dimension_numbers<[1], [0], [0], [1], [0, 0, 1, 1], [], []>} : vector<432x216xbf16>, vector<216x1024xbf16>, vector<432x1024xf32> -> vector<432x1024xf32>
    %7 = arith.addf %3, %6 : vector<432x1024xf32>
    %c0_6 = arith.constant 0 : index
    %c0_7 = arith.constant 0 : index
    %8 = vector.load %arg7[%c0_6, %c0_7] : memref<432x1024xf32, #tpu.memory_space<vmem>>, vector<432x1024xf32>
    tpu.vector_store %arg7[%c0_6, %c0_7], %7 {strides = array<i32>} : memref<432x1024xf32, #tpu.memory_space<vmem>>, vector<432x1024xf32>,
    %c0_i32_8 = arith.constant 0 : i32
    %9 = arith.cmpi eq, %arg2, %c0_i32_8 : i32
    %10 = arith.extui %9 : i1 to i32
    %c0_i32_9 = arith.constant 0 : i32
    %11 = arith.cmpi ne, %10, %c0_i32_9 : i32
    scf.if %11 {
      %c0_10 = arith.constant 0 : index
      %c0_11 = arith.constant 0 : index
      %12 = vector.load %arg7[%c0_10, %c0_11] : memref<432x1024xf32, #tpu.memory_space<vmem>>, vector<432x1024xf32>
      %c0_12 = arith.constant 0 : index
      %c0_13 = arith.constant 0 : index
      %13 = vector.load %arg5[%c0_12, %c0_13] : memref<1x1024xf32, #tpu.memory_space<vmem>>, vector<1x1024xf32>
      %14 = vector.broadcast %13 : vector<1x1024xf32> to vector<432x1024xf32>
      %15 = arith.addf %12, %14 : vector<432x1024xf32>
      %c0_14 = arith.constant 0 : index
      %c0_15 = arith.constant 0 : index
      %16 = vector.load %arg6[%c0_14, %c0_15] : memref<432x1024xf32, #tpu.memory_space<vmem>>, vector<432x1024xf32>
      tpu.vector_store %arg6[%c0_14, %c0_15], %15 {strides = array<i32>} : memref<432x1024xf32, #tpu.memory_space<vmem>>, vector<432x1024xf32>,
    } else {
    }
    return
  }
  func.func @transform_0(%arg0: i32, %arg1: i32, %arg2: i32) -> (i32, i32) {
    %c0_i32 = arith.constant 0 : i32
    return %arg0, %arg2 : i32, i32
  }
  func.func @transform_1(%arg0: i32, %arg1: i32, %arg2: i32) -> (i32, i32) {
    %c0_i32 = arith.constant 0 : i32
    return %arg2, %arg1 : i32, i32
  }
  func.func @transform_2(%arg0: i32, %arg1: i32, %arg2: i32) -> (i32, i32) {
    %c0_i32 = arith.constant 0 : i32
    %c0_i32_0 = arith.constant 0 : i32
    return %c0_i32, %arg1 : i32, i32
  }
  func.func @transform_3(%arg0: i32, %arg1: i32, %arg2: i32) -> (i32, i32) {
    %c0_i32 = arith.constant 0 : i32
    return %arg0, %arg1 : i32, i32
  }
}

</mosaic_0001>

<bundles_post_ra>
// kernel: tile.8
= control target key start
LH: loop header
LB: loop body
LE: loop exit
PB: predicated region body
PF: predicated region fallthrough
CT: control target
= control target key end

     0   :  { %s22_s0 = inlined_call_operand.vmem [shape: f32[128], index: 0, kind: input, shape index: {}]   ;;  %s23_s1 = inlined_call_operand.vmem [shape: f32[8,128], index: 1, kind: output, shape index: {}]  }
   0x1   :  { %v4_v0 = vld [vmem:[%s22_s0] ss:$0 sm:$0xff] }
   0x2   :  { %5 = vst [vmem:[%s23_s1] sm:$0xff] %v4_v0 }

// kernel: conv_transpose3d_pallas.1
= control target key start
LH: loop header
LB: loop body
LE: loop exit
PB: predicated region body
PF: predicated region fallthrough
CT: control target
= control target key end

     0   :  { %vm1910_vm0 = vcmask 1043456   ;;  %vm1828_vm1 = vcmask 719872   ;;  %s10933_s1 = inlined_call_operand.vmem [shape: bf16[216,1024], index: 1, kind: input, shape index: {}]   ;;  %s10934_s0 = inlined_call_operand.vmem [shape: bf16[432,216], index: 0, kind: input, shape index: {}]   ;;  %s10935_s2 = inlined_call_operand.vmem [shape: f32[1,1024], index: 2, kind: input, shape index: {}]   ;;  %s10936_s3 = inlined_call_operand.vmem [shape: f32[432,1024], index: 3, kind: output, shape index: {}]  }
   0x1   :  { %v6866_v0 = vld [vmem:[%s10933_s1 + $0x1c0] sm:$0xf]  ;;  %v7382_v2 = vld [vmem:[%s10933_s1 + $0x1c4] sm:$0xf] }
   0x2   :  { %v7386_v1 = vld [vmem:[%s10933_s1 + $0x1dc] sm:$0xf0]  ;;  %v6868_v4 = vld [vmem:[%s10933_s1 + $0x1e0] sm:$0xf0] }
   0x3   :  { %v6867_v3 = vor.u32 %v7386_v1, %v6866_v0  ;;  %v1041_v5 = vld [vmem:[%s10933_s1 + $0x340] sm:$0xff]  ;;  %v6871_v7 = vor.u32 %v7382_v2, %v6868_v4 }
   0x4   :  { %v6834_v6 = vld [vmem:[%s10933_s1 + $0x180] sm:$0xf]  ;;  %v1605_v8 = vunpack.c.h.b16 %v1041_v5  ;;  %v7374_v10 = vld [vmem:[%s10933_s1 + $0x184] sm:$0xf]  ;;  %v1604_v12 = vunpack.c.l.b16 %v1041_v5 }
   0x5   :  { %v7378_v9 = vld [vmem:[%s10933_s1 + $0x19c] sm:$0xf0]  ;;  %v6836_v11 = vld [vmem:[%s10933_s1 + $0x1a0] sm:$0xf0]  ;;  %1935 = vmatpush.bf16.msra.mxu0 %v6867_v3  ;;  %2223 = vmatpush.bf16.msra.mxu2 %v6871_v7  ;;  %v1042_v3 = vld [vmem:[%s10933_s1 + $0x348] sm:$0xff] }
   0x6   :  { %v6835_v13 = vor.u32 %v7378_v9, %v6834_v6  ;;  %v7422_v14 = vld [vmem:[%s10933_s1 + $0x304] sm:$0xf]  ;;  %v1717_v16 = vpack.c.b16 %v1605_v8, %v1605_v8  ;;  %v6839_v17 = vor.u32 %v7374_v10, %v6836_v11  ;;  %v1716_v18 = vpack.c.b16 %v1604_v12, %v1604_v12  ;;  %v6802_v19 = vld [vmem:[%s10933_s1 + $0x140] sm:$0xf] }
   0x7   :  { %v7028_v15 = vld [vmem:[%s10933_s1 + $0x320] sm:$0xf0]  ;;  %v7370_v20 = vld [vmem:[%s10933_s1 + $0x15c] sm:$0xf0]  ;;  %v1606_v9 = vunpack.c.l.b16 %v1042_v3 }
   0x8   :  { %v7366_v21 = vld [vmem:[%s10933_s1 + $0x144] sm:$0xf]  ;;  %v7026_v23 = vld [vmem:[%s10933_s1 + $0x300] sm:$0xf]  ;;  %v1915_v25 = vsel %vm1910_vm0, %v1717_v16, 0  ;;  %v1912_v26 = vsel %vm1910_vm0, %v1716_v18, 0  ;;  %v7031_v27 = vor.u32 %v7422_v14, %v7028_v15  ;;  %v6803_v28 = vor.u32 %v7370_v20, %v6802_v19 }
   0x9   :  { %v6804_v22 = vld [vmem:[%s10933_s1 + $0x160] sm:$0xf0]  ;;  %v7426_v24 = vld [vmem:[%s10933_s1 + $0x31c] sm:$0xf0]  ;;  %2369 = vmatpush.bf16.msra.mxu3 %v1915_v25  ;;  %1936 = vmatpush.bf16.msra.mxu0 %v6835_v13  ;;  %v1718_v13 = vpack.c.b16 %v1606_v9, %v1606_v9  ;;  %v1607_v14 = vunpack.c.h.b16 %v1042_v3  ;;  %v6874_v15 = vld [vmem:[%s10933_s1 + $0x1c8] sm:$0xf] }
   0xa   :  { %v7414_v29 = vld [vmem:[%s10933_s1 + $0x2c4] sm:$0xf]  ;;  %2224 = vmatpush.bf16.msra.mxu2 %v6839_v17  ;;  %2081 = vmatpush.bf16.msra.mxu1 %v1912_v26  ;;  %v6807_v31 = vor.u32 %v7366_v21, %v6804_v22  ;;  %v7027_v32 = vor.u32 %v7426_v24, %v7026_v23  ;;  %v6770_v33 = vld [vmem:[%s10933_s1 + $0x100] sm:$0xf]  ;;  %v7387_v16 = vld [vmem:[%s10933_s1 + $0x1e4] sm:$0xf0] }
   0xb   :  { %v6996_v30 = vld [vmem:[%s10933_s1 + $0x2e0] sm:$0xf0]  ;;  %v7362_v34 = vld [vmem:[%s10933_s1 + $0x11c] sm:$0xf0]  ;;  %v6428_v20 = vld [vmem:[%s10934_s0 + $0x8] sm:$0xf0] }
   0xc   :  { %v7358_v35 = vld [vmem:[%s10933_s1 + $0x104] sm:$0xf]  ;;  %v6994_v37 = vld [vmem:[%s10933_s1 + $0x2c0] sm:$0xf]  ;;  %v6999_v39 = vor.u32 %v7414_v29, %v6996_v30  ;;  %v6771_v40 = vor.u32 %v7362_v34, %v6770_v33  ;;  %v6876_v29 = vld [vmem:[%s10933_s1 + $0x1e8] sm:$0xf0] }
   0xd   :  { %v6772_v36 = vld [vmem:[%s10933_s1 + $0x120] sm:$0xf0]  ;;  %v7418_v38 = vld [vmem:[%s10933_s1 + $0x2dc] sm:$0xf0]  ;;  %2370 = vmatpush.bf16.msra.mxu3 %v7031_v27  ;;  %1937 = vmatpush.bf16.msra.mxu0 %v6803_v28  ;;  %v6875_v27 = vor.u32 %v7387_v16, %v6874_v15  ;;  %v7383_v28 = vld [vmem:[%s10933_s1 + $0x1cc] sm:$0xf] }
   0xe   :  { %v7406_v41 = vld [vmem:[%s10933_s1 + $0x284] sm:$0xf]  ;;  %2225 = vmatpush.bf16.msra.mxu2 %v6807_v31  ;;  %2082 = vmatpush.bf16.msra.mxu1 %v7027_v32  ;;  %v6775_v43 = vor.u32 %v7358_v35, %v6772_v36  ;;  %v6995_v44 = vor.u32 %v7418_v38, %v6994_v37  ;;  %v6738_v45 = vld [vmem:[%s10933_s1 + $0xc0] sm:$0xf]  ;;  %v1918_v31 = vsel %vm1910_vm0, %v1718_v13, 0  ;;  %v1719_v32 = vpack.c.b16 %v1607_v14, %v1607_v14 }
   0xf   :  { %v6964_v42 = vld [vmem:[%s10933_s1 + $0x2a0] sm:$0xf0]  ;;  %v7354_v46 = vld [vmem:[%s10933_s1 + $0xdc] sm:$0xf0]  ;;  %v7273_v35 = vld [vmem:[%s10934_s0 + $0x4] sm:$0xf0]  ;;  %v6879_v37 = vor.u32 %v7383_v28, %v6876_v29 }
  0x10   :  { %v7350_v47 = vld [vmem:[%s10933_s1 + $0xc4] sm:$0xf]  ;;  %v6962_v49 = vld [vmem:[%s10933_s1 + $0x280] sm:$0xf]  ;;  %v6967_v51 = vor.u32 %v7406_v41, %v6964_v42  ;;  %v6739_v52 = vor.u32 %v7354_v46, %v6738_v45  ;;  %v6436_v41 = vld [vmem:[%s10934_s0 + $0x18] sm:$0xf0] }
  0x11   :  { %v6740_v48 = vld [vmem:[%s10933_s1 + $0xe0] sm:$0xf0]  ;;  %v7410_v50 = vld [vmem:[%s10933_s1 + $0x29c] sm:$0xf0]  ;;  %2371 = vmatpush.bf16.msra.mxu3 %v6999_v39  ;;  %1938 = vmatpush.bf16.msra.mxu0 %v6771_v40  ;;  %v1921_v39 = vsel %vm1910_vm0, %v1719_v32, 0 }
  0x12   :  { %v7398_v53 = vld [vmem:[%s10933_s1 + $0x244] sm:$0xf]  ;;  %2226 = vmatpush.bf16.msra.mxu2 %v6775_v43  ;;  %2083 = vmatpush.bf16.msra.mxu1 %v6995_v44  ;;  %v6743_v55 = vor.u32 %v7350_v47, %v6740_v48  ;;  %v6963_v56 = vor.u32 %v7410_v50, %v6962_v49  ;;  %v6706_v57 = vld [vmem:[%s10933_s1 + $0x80] sm:$0xf]  ;;  %v7274_v40 = vld [vmem:[%s10934_s0 + $0x14] sm:$0xf] }
  0x13   :  { %v6932_v54 = vld [vmem:[%s10933_s1 + $0x260] sm:$0xf0]  ;;  %v7346_v58 = vld [vmem:[%s10933_s1 + $0x9c] sm:$0xf0]  ;;  %v7659_v42 = vor.u32 %v7274_v40, %v6436_v41  ;;  %v6434_v43 = vld [vmem:[%s10934_s0 + $0x10] sm:$0xf] }
  0x14   :  { %v7342_v59 = vld [vmem:[%s10933_s1 + $0x84] sm:$0xf]  ;;  %v6930_v61 = vld [vmem:[%s10933_s1 + $0x240] sm:$0xf]  ;;  %v6935_v63 = vor.u32 %v7398_v53, %v6932_v54  ;;  %v6707_v0 = vor.u32 %v7346_v58, %v6706_v57  ;;  %v7275_v44 = vld [vmem:[%s10934_s0 + $0x14] sm:$0xf0] }
  0x15   :  { %v6708_v60 = vld [vmem:[%s10933_s1 + $0xa0] sm:$0xf0]  ;;  %v7402_v62 = vld [vmem:[%s10933_s1 + $0x25c] sm:$0xf0]  ;;  %2372 = vmatpush.bf16.msra.mxu3 %v6967_v51  ;;  %1939 = vmatpush.bf16.msra.mxu0 %v6739_v52  ;;  %v7669_v45 = vor.u32 %v7275_v44, %v6434_v43  ;;  %v6444_v47 = vld [vmem:[%s10934_s0 + $0x28] sm:$0xf0] }
  0x16   :  { %v7390_v1 = vld [vmem:[%s10933_s1 + $0x204] sm:$0xf]  ;;  %2227 = vmatpush.bf16.msra.mxu2 %v6743_v55  ;;  %2084 = vmatpush.bf16.msra.mxu1 %v6963_v56  ;;  %v6711_v4 = vor.u32 %v7342_v59, %v6708_v60  ;;  %v6931_v5 = vor.u32 %v7402_v62, %v6930_v61  ;;  %v6674_v6 = vld [vmem:[%s10933_s1 + $0x40] sm:$0xf]  ;;  %v7277_v50 = vld [vmem:[%s10934_s0 + $0x24] sm:$0xf0] }
  0x17   :  { %v6900_v2 = vld [vmem:[%s10933_s1 + $0x220] sm:$0xf0]  ;;  %v7338_v7 = vld [vmem:[%s10933_s1 + $0x5c] sm:$0xf0]  ;;  %v6842_v52 = vld [vmem:[%s10933_s1 + $0x188] sm:$0xf] }
  0x18   :  { %v7334_v8 = vld [vmem:[%s10933_s1 + $0x44] sm:$0xf]  ;;  %v6898_v11 = vld [vmem:[%s10933_s1 + $0x200] sm:$0xf]  ;;  %v6903_v17 = vor.u32 %v7390_v1, %v6900_v2  ;;  %v6675_v18 = vor.u32 %v7338_v7, %v6674_v6  ;;  %v7379_v53 = vld [vmem:[%s10933_s1 + $0x1a4] sm:$0xf0] }
  0x19   :  { %v6676_v10 = vld [vmem:[%s10933_s1 + $0x60] sm:$0xf0]  ;;  %v7394_v12 = vld [vmem:[%s10933_s1 + $0x21c] sm:$0xf0]  ;;  %2373 = vmatpush.bf16.msra.mxu3 %v6935_v63  ;;  %1940 = vmatpush.bf16.msra.mxu0 %v6707_v0  ;;  %v7375_v54 = vld [vmem:[%s10933_s1 + $0x18c] sm:$0xf]  ;;  %v6843_v55 = vor.u32 %v7379_v53, %v6842_v52 }
  0x1a   :  { %v7272_v19 = vld [vmem:[%s10934_s0 + $0x4] sm:$0xf]  ;;  %2228 = vmatpush.bf16.msra.mxu2 %v6711_v4  ;;  %2085 = vmatpush.bf16.msra.mxu1 %v6931_v5  ;;  %v6679_v21 = vor.u32 %v7334_v8, %v6676_v10  ;;  %v6899_v22 = vor.u32 %v7394_v12, %v6898_v11  ;;  %v6642_v23 = vld [vmem:[%s10933_s1] sm:$0xf]  ;;  %v6844_v56 = vld [vmem:[%s10933_s1 + $0x1a8] sm:$0xf0] }
  0x1b   :  { %v7330_v24 = vld [vmem:[%s10933_s1 + $0x1c] sm:$0xf0]  ;;  %v7326_v25 = vld [vmem:[%s10933_s1 + $0x4] sm:$0xf]  ;;  %v7635_v30 = vor.u32 %v7272_v19, %v6428_v20  ;;  %v6847_v57 = vor.u32 %v7375_v54, %v6844_v56  ;;  %v7034_v58 = vld [vmem:[%s10933_s1 + $0x308] sm:$0xf] }
  0x1c   :  { %v6644_v26 = vld [vmem:[%s10933_s1 + $0x20] sm:$0xf0]  ;;  %v6643_v33 = vor.u32 %v7330_v24, %v6642_v23  ;;  %v6426_v34 = vld [vmem:[%s10934_s0] sm:$0xf]  ;;  %v7427_v59 = vld [vmem:[%s10933_s1 + $0x324] sm:$0xf0] }
  0x1d   :  { %2374 = vmatpush.bf16.msra.mxu3 %v6903_v17  ;;  %1941 = vmatpush.bf16.msra.mxu0 %v6675_v18  ;;  %v6647_v36 = vor.u32 %v7326_v25, %v6644_v26  ;;  %v7646_v38 = vor.u32 %v7273_v35, %v6426_v34  ;;  %v7276_v46 = vld [vmem:[%s10934_s0 + $0x24] sm:$0xf]  ;;  %v6442_v49 = vld [vmem:[%s10934_s0 + $0x20] sm:$0xf]  ;;  %v7423_v60 = vld [vmem:[%s10933_s1 + $0x30c] sm:$0xf]  ;;  %v7035_v61 = vor.u32 %v7427_v59, %v7034_v58 }
  0x1e   :  { %2229 = vmatpush.bf16.msra.mxu2 %v6679_v21  ;;  %2086 = vmatpush.bf16.msra.mxu1 %v6899_v22  ;;  %v7681_v48 = vor.u32 %v7276_v46, %v6444_v47  ;;  %v7691_v51 = vor.u32 %v7277_v50, %v6442_v49  ;;  %v7036_v62 = vld [vmem:[%s10933_s1 + $0x328] sm:$0xf0]  ;;  %v7278_v0 = vld [vmem:[%s10934_s0 + $0x34] sm:$0xf]  ;;  %v6452_v1 = vld [vmem:[%s10934_s0 + $0x38] sm:$0xf0] }
  0x1f   :  { %v7039_v63 = vor.u32 %v7423_v60, %v7036_v62  ;;  %v7727_v2 = vor.u32 %v7278_v0, %v6452_v1  ;;  %v6450_v3 = vld [vmem:[%s10934_s0 + $0x30] sm:$0xf]  ;;  %v7279_v4 = vld [vmem:[%s10934_s0 + $0x34] sm:$0xf0]  ;;  %v7280_v6 = vld [vmem:[%s10934_s0 + $0x44] sm:$0xf] }
  0x20   :  { %7083 = vmatmul.msk.bf16.vlgmr.msra.gmra.mxu3 %vm1828_vm1, %v7635_v30  ;;  %v7737_v5 = vor.u32 %v7279_v4, %v6450_v3  ;;  %v6460_v7 = vld [vmem:[%s10934_s0 + $0x48] sm:$0xf0]  ;;  %v6458_v9 = vld [vmem:[%s10934_s0 + $0x40] sm:$0xf]  ;;  %v7281_v10 = vld [vmem:[%s10934_s0 + $0x44] sm:$0xf0] }
  0x21   :  { %2657 = vmatpush.bf16.msrb.mxu3 %v1918_v31  ;;  %1942 = vmatpush.bf16.msra.mxu0 %v6643_v33  ;;  %v7749_v8 = vor.u32 %v7280_v6, %v6460_v7  ;;  %v7759_v11 = vor.u32 %v7281_v10, %v6458_v9  ;;  %v7282_v12 = vld [vmem:[%s10934_s0 + $0x54] sm:$0xf]  ;;  %v6468_v13 = vld [vmem:[%s10934_s0 + $0x58] sm:$0xf0]  ;;  %v6466_v15 = vld [vmem:[%s10934_s0 + $0x50] sm:$0xf] }
  0x22   :  { %2511 = vmatpush.bf16.msrb.mxu1 %v6875_v27  ;;  %2230 = vmatpush.bf16.msra.mxu2 %v6647_v36  ;;  %v7771_v14 = vor.u32 %v7282_v12, %v6468_v13  ;;  %v7283_v16 = vld [vmem:[%s10934_s0 + $0x54] sm:$0xf0]  ;;  %v6810_v18 = vld [vmem:[%s10933_s1 + $0x148] sm:$0xf]  ;;  %v7367_v20 = vld [vmem:[%s10933_s1 + $0x14c] sm:$0xf] }
  0x23   :  { %7056 = vmatmul.msk.bf16.vlgmr.msra.gmra.mxu1 %vm1828_vm1, %v7635_v30  ;;  %v7781_v17 = vor.u32 %v7283_v16, %v6466_v15  ;;  %v7371_v19 = vld [vmem:[%s10933_s1 + $0x164] sm:$0xf0]  ;;  %v6812_v22 = vld [vmem:[%s10933_s1 + $0x168] sm:$0xf0]  ;;  %v7284_v24 = vld [vmem:[%s10934_s0 + $0x64] sm:$0xf] }
  0x24   :  { %1943 = vmatmul.bf16.vlgmr.msra.gmra.mxu0 %v7646_v38  ;;  %v6811_v21 = vor.u32 %v7371_v19, %v6810_v18  ;;  %v6815_v23 = vor.u32 %v7367_v20, %v6812_v22  ;;  %v6476_v25 = vld [vmem:[%s10934_s0 + $0x68] sm:$0xf0]  ;;  %v6474_v27 = vld [vmem:[%s10934_s0 + $0x60] sm:$0xf]  ;;  %v7285_v28 = vld [vmem:[%s10934_s0 + $0x64] sm:$0xf0] }
  0x25   :  { %2799 = vmatpush.bf16.msrb.mxu0 %v6879_v37  ;;  %2231 = vmatmul.bf16.vlgmr.msra.gmra.mxu2 %v7646_v38  ;;  %v7805_v26 = vor.u32 %v7284_v24, %v6476_v25  ;;  %v7815_v29 = vor.u32 %v7285_v28, %v6474_v27  ;;  %v7286_v31 = vld [vmem:[%s10934_s0 + $0x74] sm:$0xf]  ;;  %v6484_v32 = vld [vmem:[%s10934_s0 + $0x78] sm:$0xf0]  ;;  %v6482_v34 = vld [vmem:[%s10934_s0 + $0x70] sm:$0xf] }
  0x26   :  { %2945 = vmatpush.bf16.msrb.mxu2 %v1921_v39  ;;  %2512 = vmatpush.bf16.msrb.mxu1 %v6843_v55  ;;  %v7827_v33 = vor.u32 %v7286_v31, %v6484_v32  ;;  %v7287_v35 = vld [vmem:[%s10934_s0 + $0x74] sm:$0xf0]  ;;  %v7002_v37 = vld [vmem:[%s10933_s1 + $0x2c8] sm:$0xf]  ;;  %v7415_v40 = vld [vmem:[%s10933_s1 + $0x2cc] sm:$0xf] }
  0x27   :  { %2658 = vmatpush.bf16.msrb.mxu3 %v7035_v61  ;;  %v7837_v36 = vor.u32 %v7287_v35, %v6482_v34  ;;  %v7419_v39 = vld [vmem:[%s10933_s1 + $0x2e4] sm:$0xf0]  ;;  %v7004_v43 = vld [vmem:[%s10933_s1 + $0x2e8] sm:$0xf0]  ;;  %v7288_v46 = vld [vmem:[%s10934_s0 + $0x84] sm:$0xf] }
  0x28   :  { %v7003_v41 = vor.u32 %v7419_v39, %v7002_v37  ;;  %v7007_v44 = vor.u32 %v7415_v40, %v7004_v43  ;;  %v6492_v47 = vld [vmem:[%s10934_s0 + $0x88] sm:$0xf0]  ;;  %v5538_v50 = vld [vmem:[%s10935_s2] sm:$0xff]  ;;  %v7289_v53 = vld [vmem:[%s10934_s0 + $0x84] sm:$0xf0] }
  0x29   :  { %2800 = vmatpush.bf16.msrb.mxu0 %v6847_v57  ;;  %v7861_v49 = vor.u32 %v7288_v46, %v6492_v47  ;;  %v6490_v52 = vld [vmem:[%s10934_s0 + $0x80] sm:$0xf]  ;;  %v7874_v55 = vperm.slane %v5538_v50, 0  ;;  %v7886_v62 = vperm.slane %v5538_v50, 1  ;;  %v7290_v3 = vld [vmem:[%s10934_s0 + $0x94] sm:$0xf] }
  0x2a   :  { %2946 = vmatpush.bf16.msrb.mxu2 %v7039_v63  ;;  %2513 = vmatpush.bf16.msrb.mxu1 %v6811_v21  ;;  %v7876_v56 = vor.u32 %v7289_v53, %v6490_v52  ;;  %v6500_v4 = vld [vmem:[%s10934_s0 + $0x98] sm:$0xf0]  ;;  %v6498_v13 = vld [vmem:[%s10934_s0 + $0x90] sm:$0xf]  ;;  %v7291_v15 = vld [vmem:[%s10934_s0 + $0x94] sm:$0xf0] }
  0x2b   :  { %2659 = vmatpush.bf16.msrb.mxu3 %v7003_v41  ;;  %v7896_v12 = vor.u32 %v7290_v3, %v6500_v4  ;;  %v6778_v18 = vld [vmem:[%s10933_s1 + $0x108] sm:$0xf]  ;;  %v7359_v21 = vld [vmem:[%s10933_s1 + $0x10c] sm:$0xf]  ;;  %v7924_v24 = vor.u32 %v7291_v15, %v6498_v13  ;;  %v7292_v43 = vld [vmem:[%s10934_s0 + $0xa4] sm:$0xf] }
  0x2c   :  { %v7363_v19 = vld [vmem:[%s10933_s1 + $0x124] sm:$0xf0]  ;;  %v6780_v22 = vld [vmem:[%s10933_s1 + $0x128] sm:$0xf0]  ;;  %v7294_v13 = vld [vmem:[%s10934_s0 + $0xb4] sm:$0xf] }
  0x2d   :  { %2801 = vmatpush.bf16.msrb.mxu0 %v6815_v23  ;;  %v6779_v20 = vor.u32 %v7363_v19, %v6778_v18  ;;  %v6783_v25 = vor.u32 %v7359_v21, %v6780_v22  ;;  %v6516_v15 = vld [vmem:[%s10934_s0 + $0xb8] sm:$0xf0]  ;;  %v6514_v22 = vld [vmem:[%s10934_s0 + $0xb0] sm:$0xf] }
  0x2e   :  { %2947 = vmatpush.bf16.msrb.mxu2 %v7007_v44  ;;  %v6508_v44 = vld [vmem:[%s10934_s0 + $0xa8] sm:$0xf0]  ;;  %v7984_v21 = vor.u32 %v7294_v13, %v6516_v15 }
  0x2f   :  { %2514 = vmatpush.bf16.msrb.mxu1 %v6779_v20  ;;  %v7946_v53 = vor.u32 %v7292_v43, %v6508_v44 }
  0x30   :  { %7084 = vmatmul.msk.bf16.gmra.mxu3 %vm1828_vm1, %v7659_v42 }
  0x31   :  { %2802 = vmatpush.bf16.msrb.mxu0 %v6783_v25 }
  0x33   :  { %7057 = vmatmul.msk.bf16.gmra.mxu1 %vm1828_vm1, %v7659_v42 }
  0x34   :  { %1948 = vmatmul.bf16.gmra.mxu0 %v7669_v45 }
  0x35   :  { %2236 = vmatmul.bf16.gmra.mxu2 %v7669_v45 }
  0x40   :  { %7085 = vmatmul.msk.bf16.gmra.mxu3 %vm1828_vm1, %v7681_v48 }
  0x43   :  { %7058 = vmatmul.msk.bf16.gmra.mxu1 %vm1828_vm1, %v7681_v48 }
  0x44   :  { %1953 = vmatmul.bf16.gmra.mxu0 %v7691_v51 }
  0x45   :  { %2241 = vmatmul.bf16.gmra.mxu2 %v7691_v51 }
  0x50   :  { %7086 = vmatmul.msk.bf16.gmra.mxu3 %vm1828_vm1, %v7727_v2 }
  0x53   :  { %7059 = vmatmul.msk.bf16.gmra.mxu1 %vm1828_vm1, %v7727_v2 }
  0x54   :  { %1958 = vmatmul.bf16.gmra.mxu0 %v7737_v5 }
  0x55   :  { %2246 = vmatmul.bf16.gmra.mxu2 %v7737_v5 }
  0x60   :  { %7087 = vmatmul.msk.bf16.gmra.mxu3 %vm1828_vm1, %v7749_v8 }
  0x63   :  { %7060 = vmatmul.msk.bf16.gmra.mxu1 %vm1828_vm1, %v7749_v8 }
  0x64   :  { %1963 = vmatmul.bf16.gmra.mxu0 %v7759_v11 }
  0x65   :  { %2251 = vmatmul.bf16.gmra.mxu2 %v7759_v11 }
  0x70   :  { %7088 = vmatmul.msk.bf16.gmra.mxu3 %vm1828_vm1, %v7771_v14 }
  0x73   :  { %7061 = vmatmul.msk.bf16.gmra.mxu1 %vm1828_vm1, %v7771_v14 }
  0x74   :  { %1968 = vmatmul.bf16.gmra.mxu0 %v7781_v17 }
  0x75   :  { %2256 = vmatmul.bf16.gmra.mxu2 %v7781_v17 }
  0x80   :  { %7089 = vmatmul.msk.bf16.gmra.mxu3 %vm1828_vm1, %v7805_v26 }
  0x83   :  { %7062 = vmatmul.msk.bf16.gmra.mxu1 %vm1828_vm1, %v7805_v26 }
  0x84   :  { %1973 = vmatmul.bf16.gmra.mxu0 %v7815_v29 }
  0x85   :  { %2261 = vmatmul.bf16.gmra.mxu2 %v7815_v29 }
  0x90   :  { %7090 = vmatmul.msk.bf16.gmra.mxu3 %vm1828_vm1, %v7827_v33 }
  0x93   :  { %7063 = vmatmul.msk.bf16.gmra.mxu1 %vm1828_vm1, %v7827_v33 }
  0x94   :  { %1978 = vmatmul.bf16.gmra.mxu0 %v7837_v36 }
  0x95   :  { %2266 = vmatmul.bf16.gmra.mxu2 %v7837_v36 }
  0xa0   :  { %v2088_v54 = vpop.f32.mrf.mxu1  ;;  %7091 = vmatmul.msk.bf16.gmra.mxu3 %vm1828_vm1, %v7861_v49 }
  0xa1   :  { %v1944_v57 = vpop.f32.mrf.mxu0 }
  0xa2   :  { %v2089_v58 = vadd.f32 %v2088_v54, %v1944_v57  ;;  %v6506_v54 = vld [vmem:[%s10934_s0 + $0xa0] sm:$0xf]  ;;  %v7293_v57 = vld [vmem:[%s10934_s0 + $0xa4] sm:$0xf0] }
  0xa3   :  { %7064 = vmatmul.msk.bf16.gmra.mxu1 %vm1828_vm1, %v7861_v49  ;;  %v2376_v59 = vpop.f32.mrf.mxu3 }
  0xa4   :  { %v5556_v60 = vadd.f32 %v7874_v55, %v2089_v58  ;;  %1983 = vmatmul.bf16.gmra.mxu0 %v7876_v56 }
  0xa5   :  { %2271 = vmatmul.bf16.gmra.mxu2 %v7876_v56 }
  0xa6   :  { %5988 = vst [vmem:[%s10936_s3] sm:$0xff] %v5556_v60  ;;  %v7962_v60 = vor.u32 %v7293_v57, %v6506_v54 }
  0xa8   :  { %v2090_v61 = vpop.f32.mrf.mxu1  ;;  %v2232_v63 = vpop.f32.mrf.mxu2 }
  0xa9   :  { %v2377_v0 = vadd.f32 %v2376_v59, %v2232_v63  ;;  %v1946_v1 = vpop.f32.mrf.mxu0 }
  0xaa   :  { %v2091_v6 = vadd.f32 %v2090_v61, %v1946_v1 }
  0xab   :  { %v5557_v7 = vadd.f32 %v7886_v62, %v2377_v0  ;;  %v2378_v9 = vpop.f32.mrf.mxu3 }
  0xac   :  { %v5564_v10 = vadd.f32 %v7874_v55, %v2091_v6 }
  0xad   :  { %5989 = vst [vmem:[%s10936_s3 + $0x8] sm:$0xff] %v5557_v7 }
  0xae   :  { %5996 = vst [vmem:[%s10936_s3 + $0x40] sm:$0xff] %v5564_v10 }
  0xb0   :  { %v2093_v16 = vpop.f32.mrf.mxu1  ;;  %v2234_v23 = vpop.f32.mrf.mxu2  ;;  %7092 = vmatmul.msk.bf16.gmra.mxu3 %vm1828_vm1, %v7896_v12 }
  0xb1   :  { %v2379_v27 = vadd.f32 %v2378_v9, %v2234_v23  ;;  %v1949_v28 = vpop.f32.mrf.mxu0  ;;  %v7295_v23 = vld [vmem:[%s10934_s0 + $0xb4] sm:$0xf0] }
  0xb2   :  { %v2094_v31 = vadd.f32 %v2093_v16, %v1949_v28  ;;  %v8000_v28 = vor.u32 %v7295_v23, %v6514_v22  ;;  %v6746_v23 = vld [vmem:[%s10933_s1 + $0xc8] sm:$0xf] }
  0xb3   :  { %7065 = vmatmul.msk.bf16.gmra.mxu1 %vm1828_vm1, %v7896_v12  ;;  %v5565_v32 = vadd.f32 %v7886_v62, %v2379_v27  ;;  %v2381_v34 = vpop.f32.mrf.mxu3 }
  0xb4   :  { %v5572_v35 = vadd.f32 %v7874_v55, %v2094_v31  ;;  %1988 = vmatmul.bf16.gmra.mxu0 %v7924_v24 }
  0xb5   :  { %5997 = vst [vmem:[%s10936_s3 + $0x48] sm:$0xff] %v5565_v32  ;;  %2276 = vmatmul.bf16.gmra.mxu2 %v7924_v24 }
  0xb6   :  { %6004 = vst [vmem:[%s10936_s3 + $0x80] sm:$0xff] %v5572_v35 }
  0xb8   :  { %v2095_v37 = vpop.f32.mrf.mxu1  ;;  %v2237_v39 = vpop.f32.mrf.mxu2 }
  0xb9   :  { %v2382_v40 = vadd.f32 %v2381_v34, %v2237_v39  ;;  %v1951_v41 = vpop.f32.mrf.mxu0 }
  0xba   :  { %v2096_v46 = vadd.f32 %v2095_v37, %v1951_v41 }
  0xbb   :  { %v5573_v47 = vadd.f32 %v7886_v62, %v2382_v40  ;;  %v2383_v50 = vpop.f32.mrf.mxu3 }
  0xbc   :  { %v5580_v52 = vadd.f32 %v7874_v55, %v2096_v46  ;;  %v7296_v46 = vld [vmem:[%s10934_s0 + $0xc4] sm:$0xf] }
  0xbd   :  { %6005 = vst [vmem:[%s10936_s3 + $0x88] sm:$0xff] %v5573_v47  ;;  %v6524_v47 = vld [vmem:[%s10934_s0 + $0xc8] sm:$0xf0] }
  0xbe   :  { %6012 = vst [vmem:[%s10936_s3 + $0xc0] sm:$0xff] %v5580_v52 }
  0xc0   :  { %v2098_v58 = vpop.f32.mrf.mxu1  ;;  %v2239_v59 = vpop.f32.mrf.mxu2  ;;  %7093 = vmatmul.msk.bf16.gmra.mxu3 %vm1828_vm1, %v7946_v53 }
  0xc1   :  { %v2384_v61 = vadd.f32 %v2383_v50, %v2239_v59  ;;  %v1954_v63 = vpop.f32.mrf.mxu0  ;;  %v6522_v59 = vld [vmem:[%s10934_s0 + $0xc0] sm:$0xf] }
  0xc2   :  { %v2099_v0 = vadd.f32 %v2098_v58, %v1954_v63  ;;  %v8022_v58 = vor.u32 %v7296_v46, %v6524_v47 }
  0xc3   :  { %7066 = vmatmul.msk.bf16.gmra.mxu1 %vm1828_vm1, %v7946_v53  ;;  %v5581_v1 = vadd.f32 %v7886_v62, %v2384_v61  ;;  %v2386_v3 = vpop.f32.mrf.mxu3  ;;  %v7297_v61 = vld [vmem:[%s10934_s0 + $0xc4] sm:$0xf0] }
  0xc4   :  { %v5588_v4 = vadd.f32 %v7874_v55, %v2099_v0  ;;  %1993 = vmatmul.bf16.gmra.mxu0 %v7962_v60  ;;  %v6970_v0 = vld [vmem:[%s10933_s1 + $0x288] sm:$0xf] }
  0xc5   :  { %6013 = vst [vmem:[%s10936_s3 + $0xc8] sm:$0xff] %v5581_v1  ;;  %2281 = vmatmul.bf16.gmra.mxu2 %v7962_v60  ;;  %v7411_v1 = vld [vmem:[%s10933_s1 + $0x2a4] sm:$0xf0] }
  0xc6   :  { %6020 = vst [vmem:[%s10936_s3 + $0x100] sm:$0xff] %v5588_v4  ;;  %v7407_v4 = vld [vmem:[%s10933_s1 + $0x28c] sm:$0xf] }
  0xc8   :  { %v2100_v6 = vpop.f32.mrf.mxu1  ;;  %v2242_v7 = vpop.f32.mrf.mxu2 }
  0xc9   :  { %v2387_v9 = vadd.f32 %v2386_v3, %v2242_v7  ;;  %v1956_v10 = vpop.f32.mrf.mxu0  ;;  %v6971_v3 = vor.u32 %v7411_v1, %v6970_v0 }
  0xca   :  { %v2101_v16 = vadd.f32 %v2100_v6, %v1956_v10  ;;  %v6972_v6 = vld [vmem:[%s10933_s1 + $0x2a8] sm:$0xf0] }
  0xcb   :  { %v5589_v18 = vadd.f32 %v7886_v62, %v2387_v9  ;;  %v2388_v19 = vpop.f32.mrf.mxu3  ;;  %v8050_v9 = vor.u32 %v7297_v61, %v6522_v59  ;;  %v6975_v10 = vor.u32 %v7407_v4, %v6972_v6  ;;  %2660 = vmatpush.bf16.msrb.mxu3 %v6971_v3 }
  0xcc   :  { %v5596_v20 = vadd.f32 %v7874_v55, %v2101_v16 }
  0xcd   :  { %6021 = vst [vmem:[%s10936_s3 + $0x108] sm:$0xff] %v5589_v18  ;;  %2948 = vmatpush.bf16.msrb.mxu2 %v6975_v10 }
  0xce   :  { %6028 = vst [vmem:[%s10936_s3 + $0x140] sm:$0xff] %v5596_v20 }
  0xd0   :  { %v2103_v25 = vpop.f32.mrf.mxu1  ;;  %v2244_v27 = vpop.f32.mrf.mxu2  ;;  %7094 = vmatmul.msk.bf16.gmra.mxu3 %vm1828_vm1, %v7984_v21 }
  0xd1   :  { %v2389_v31 = vadd.f32 %v2388_v19, %v2244_v27  ;;  %v1959_v32 = vpop.f32.mrf.mxu0 }
  0xd2   :  { %v2104_v34 = vadd.f32 %v2103_v25, %v1959_v32  ;;  %v7355_v25 = vld [vmem:[%s10933_s1 + $0xe4] sm:$0xf0]  ;;  %v6748_v32 = vld [vmem:[%s10933_s1 + $0xe8] sm:$0xf0] }
  0xd3   :  { %7067 = vmatmul.msk.bf16.gmra.mxu1 %vm1828_vm1, %v7984_v21  ;;  %v5597_v35 = vadd.f32 %v7886_v62, %v2389_v31  ;;  %v2391_v37 = vpop.f32.mrf.mxu3  ;;  %v6747_v27 = vor.u32 %v7355_v25, %v6746_v23  ;;  %v7351_v31 = vld [vmem:[%s10933_s1 + $0xcc] sm:$0xf] }
  0xd4   :  { %v5604_v39 = vadd.f32 %v7874_v55, %v2104_v34  ;;  %1998 = vmatmul.bf16.gmra.mxu0 %v8000_v28 }
  0xd5   :  { %6029 = vst [vmem:[%s10936_s3 + $0x148] sm:$0xff] %v5597_v35  ;;  %2286 = vmatmul.bf16.gmra.mxu2 %v8000_v28  ;;  %v6751_v35 = vor.u32 %v7351_v31, %v6748_v32  ;;  %2515 = vmatpush.bf16.msrb.mxu1 %v6747_v27  ;;  %v6538_v27 = vld [vmem:[%s10934_s0 + $0xe0] sm:$0xf]  ;;  %v7301_v31 = vld [vmem:[%s10934_s0 + $0xe4] sm:$0xf0] }
  0xd6   :  { %6036 = vst [vmem:[%s10936_s3 + $0x180] sm:$0xff] %v5604_v39 }
  0xd7   :  { %2803 = vmatpush.bf16.msrb.mxu0 %v6751_v35  ;;  %v8138_v35 = vor.u32 %v7301_v31, %v6538_v27 }
  0xd8   :  { %v2105_v40 = vpop.f32.mrf.mxu1  ;;  %v2247_v41 = vpop.f32.mrf.mxu2 }
  0xd9   :  { %v2392_v43 = vadd.f32 %v2391_v37, %v2247_v41  ;;  %v1961_v44 = vpop.f32.mrf.mxu0  ;;  %v6532_v41 = vld [vmem:[%s10934_s0 + $0xd8] sm:$0xf0] }
  0xda   :  { %v2106_v50 = vadd.f32 %v2105_v40, %v1961_v44  ;;  %v7298_v40 = vld [vmem:[%s10934_s0 + $0xd4] sm:$0xf] }
  0xdb   :  { %v5605_v52 = vadd.f32 %v7886_v62, %v2392_v43  ;;  %v2393_v54 = vpop.f32.mrf.mxu3 }
  0xdc   :  { %v5612_v57 = vadd.f32 %v7874_v55, %v2106_v50  ;;  %v8084_v50 = vor.u32 %v7298_v40, %v6532_v41 }
  0xdd   :  { %6037 = vst [vmem:[%s10936_s3 + $0x188] sm:$0xff] %v5605_v52  ;;  %v6530_v52 = vld [vmem:[%s10934_s0 + $0xd0] sm:$0xf] }
  0xde   :  { %6044 = vst [vmem:[%s10936_s3 + $0x1c0] sm:$0xff] %v5612_v57 }
  0xe0   :  { %v2108_v63 = vpop.f32.mrf.mxu1  ;;  %v2249_v7 = vpop.f32.mrf.mxu2  ;;  %7095 = vmatmul.msk.bf16.gmra.mxu3 %vm1828_vm1, %v8022_v58 }
  0xe1   :  { %v2394_v13 = vadd.f32 %v2393_v54, %v2249_v7  ;;  %v1964_v15 = vpop.f32.mrf.mxu0  ;;  %v7299_v54 = vld [vmem:[%s10934_s0 + $0xd4] sm:$0xf0] }
  0xe2   :  { %v2109_v16 = vadd.f32 %v2108_v63, %v1964_v15  ;;  %v8100_v61 = vor.u32 %v7299_v54, %v6530_v52 }
  0xe3   :  { %7068 = vmatmul.msk.bf16.gmra.mxu1 %vm1828_vm1, %v8022_v58  ;;  %v5613_v18 = vadd.f32 %v7886_v62, %v2394_v13  ;;  %v2396_v19 = vpop.f32.mrf.mxu3 }
  0xe4   :  { %v5620_v20 = vadd.f32 %v7874_v55, %v2109_v16  ;;  %2003 = vmatmul.bf16.gmra.mxu0 %v8050_v9  ;;  %v7300_v16 = vld [vmem:[%s10934_s0 + $0xe4] sm:$0xf] }
  0xe5   :  { %6045 = vst [vmem:[%s10936_s3 + $0x1c8] sm:$0xff] %v5613_v18  ;;  %2291 = vmatmul.bf16.gmra.mxu2 %v8050_v9  ;;  %v6540_v18 = vld [vmem:[%s10934_s0 + $0xe8] sm:$0xf0] }
  0xe6   :  { %6052 = vst [vmem:[%s10936_s3 + $0x200] sm:$0xff] %v5620_v20  ;;  %v8122_v25 = vor.u32 %v7300_v16, %v6540_v18 }
  0xe8   :  { %v2110_v22 = vpop.f32.mrf.mxu1  ;;  %v2252_v34 = vpop.f32.mrf.mxu2 }
  0xe9   :  { %v2397_v37 = vadd.f32 %v2396_v19, %v2252_v34  ;;  %v1966_v39 = vpop.f32.mrf.mxu0 }
  0xea   :  { %v2111_v43 = vadd.f32 %v2110_v22, %v1966_v39 }
  0xeb   :  { %v5621_v44 = vadd.f32 %v7886_v62, %v2397_v37  ;;  %v2398_v46 = vpop.f32.mrf.mxu3 }
  0xec   :  { %v5628_v47 = vadd.f32 %v7874_v55, %v2111_v43 }
  0xed   :  { %6053 = vst [vmem:[%s10936_s3 + $0x208] sm:$0xff] %v5621_v44 }
  0xee   :  { %6060 = vst [vmem:[%s10936_s3 + $0x240] sm:$0xff] %v5628_v47 }
  0xf0   :  { %v2113_v57 = vpop.f32.mrf.mxu1  ;;  %v2254_v59 = vpop.f32.mrf.mxu2  ;;  %7096 = vmatmul.msk.bf16.gmra.mxu3 %vm1828_vm1, %v8084_v50 }
  0xf1   :  { %v2399_v63 = vadd.f32 %v2398_v46, %v2254_v59  ;;  %v1969_v0 = vpop.f32.mrf.mxu0  ;;  %v6548_v59 = vld [vmem:[%s10934_s0 + $0xf8] sm:$0xf0] }
  0xf2   :  { %v2114_v1 = vadd.f32 %v2113_v57, %v1969_v0  ;;  %v7302_v57 = vld [vmem:[%s10934_s0 + $0xf4] sm:$0xf] }
  0xf3   :  { %7069 = vmatmul.msk.bf16.gmra.mxu1 %vm1828_vm1, %v8084_v50  ;;  %v5629_v3 = vadd.f32 %v7886_v62, %v2399_v63  ;;  %v2401_v4 = vpop.f32.mrf.mxu3 }
  0xf4   :  { %v5636_v6 = vadd.f32 %v7874_v55, %v2114_v1  ;;  %2008 = vmatmul.bf16.gmra.mxu0 %v8100_v61 }
  0xf5   :  { %6061 = vst [vmem:[%s10936_s3 + $0x248] sm:$0xff] %v5629_v3  ;;  %2296 = vmatmul.bf16.gmra.mxu2 %v8100_v61 }
  0xf6   :  { %6068 = vst [vmem:[%s10936_s3 + $0x280] sm:$0xff] %v5636_v6  ;;  %v6546_v6 = vld [vmem:[%s10934_s0 + $0xf0] sm:$0xf] }
  0xf8   :  { %v2115_v7 = vpop.f32.mrf.mxu1  ;;  %v2257_v10 = vpop.f32.mrf.mxu2 }
  0xf9   :  { %v2402_v13 = vadd.f32 %v2401_v4, %v2257_v10  ;;  %v1971_v15 = vpop.f32.mrf.mxu0  ;;  %v8160_v4 = vor.u32 %v7302_v57, %v6548_v59  ;;  %v7347_v57 = vld [vmem:[%s10933_s1 + $0xa4] sm:$0xf0] }
  0xfa   :  { %v2116_v19 = vadd.f32 %v2115_v7, %v1971_v15  ;;  %v7303_v7 = vld [vmem:[%s10934_s0 + $0xf4] sm:$0xf0] }
  0xfb   :  { %v5637_v20 = vadd.f32 %v7886_v62, %v2402_v13  ;;  %v2403_v22 = vpop.f32.mrf.mxu3  ;;  %v8176_v15 = vor.u32 %v7303_v7, %v6546_v6 }
  0xfc   :  { %v5644_v23 = vadd.f32 %v7874_v55, %v2116_v19 }
  0xfd   :  { %6069 = vst [vmem:[%s10936_s3 + $0x288] sm:$0xff] %v5637_v20 }
  0xfe   :  { %6076 = vst [vmem:[%s10936_s3 + $0x2c0] sm:$0xff] %v5644_v23 }
 0x100   :  { %v2118_v32 = vpop.f32.mrf.mxu1  ;;  %v2259_v34 = vpop.f32.mrf.mxu2  ;;  %7097 = vmatmul.msk.bf16.gmra.mxu3 %vm1828_vm1, %v8122_v25 }
 0x101   :  { %v2404_v37 = vadd.f32 %v2403_v22, %v2259_v34  ;;  %v1974_v39 = vpop.f32.mrf.mxu0 }
 0x102   :  { %v2119_v40 = vadd.f32 %v2118_v32, %v1974_v39  ;;  %v6556_v39 = vld [vmem:[%s10934_s0 + $0x108] sm:$0xf0] }
 0x103   :  { %7070 = vmatmul.msk.bf16.gmra.mxu1 %vm1828_vm1, %v8122_v25  ;;  %v5645_v41 = vadd.f32 %v7886_v62, %v2404_v37  ;;  %v2406_v43 = vpop.f32.mrf.mxu3  ;;  %v7304_v37 = vld [vmem:[%s10934_s0 + $0x104] sm:$0xf] }
 0x104   :  { %v5652_v44 = vadd.f32 %v7874_v55, %v2119_v40  ;;  %2013 = vmatmul.bf16.gmra.mxu0 %v8138_v35 }
 0x105   :  { %6077 = vst [vmem:[%s10936_s3 + $0x2c8] sm:$0xff] %v5645_v41  ;;  %2301 = vmatmul.bf16.gmra.mxu2 %v8138_v35 }
 0x106   :  { %6084 = vst [vmem:[%s10936_s3 + $0x300] sm:$0xff] %v5652_v44 }
 0x108   :  { %v2120_v46 = vpop.f32.mrf.mxu1  ;;  %v2262_v47 = vpop.f32.mrf.mxu2 }
 0x109   :  { %v2407_v52 = vadd.f32 %v2406_v43, %v2262_v47  ;;  %v1976_v54 = vpop.f32.mrf.mxu0  ;;  %v6554_v47 = vld [vmem:[%s10934_s0 + $0x100] sm:$0xf] }
 0x10a   :  { %v2121_v63 = vadd.f32 %v2120_v46, %v1976_v54  ;;  %v8198_v46 = vor.u32 %v7304_v37, %v6556_v39  ;;  %v6714_v54 = vld [vmem:[%s10933_s1 + $0x88] sm:$0xf] }
 0x10b   :  { %v5653_v0 = vadd.f32 %v7886_v62, %v2407_v52  ;;  %v2408_v1 = vpop.f32.mrf.mxu3  ;;  %v7305_v52 = vld [vmem:[%s10934_s0 + $0x104] sm:$0xf0] }
 0x10c   :  { %v5660_v3 = vadd.f32 %v7874_v55, %v2121_v63  ;;  %v6715_v63 = vor.u32 %v7347_v57, %v6714_v54  ;;  %v8226_v7 = vor.u32 %v7305_v52, %v6554_v47 }
 0x10d   :  { %6085 = vst [vmem:[%s10936_s3 + $0x308] sm:$0xff] %v5653_v0  ;;  %v7343_v0 = vld [vmem:[%s10933_s1 + $0x8c] sm:$0xf] }
 0x10e   :  { %6092 = vst [vmem:[%s10936_s3 + $0x340] sm:$0xff] %v5660_v3  ;;  %2516 = vmatpush.bf16.msrb.mxu1 %v6715_v63  ;;  %v6562_v63 = vld [vmem:[%s10934_s0 + $0x110] sm:$0xf] }
 0x110   :  { %v2123_v10 = vpop.f32.mrf.mxu1  ;;  %v2264_v13 = vpop.f32.mrf.mxu2  ;;  %7098 = vmatmul.msk.bf16.gmra.mxu3 %vm1828_vm1, %v8160_v4 }
 0x111   :  { %v2409_v16 = vadd.f32 %v2408_v1, %v2264_v13  ;;  %v1979_v18 = vpop.f32.mrf.mxu0  ;;  %v6716_v1 = vld [vmem:[%s10933_s1 + $0xa8] sm:$0xf0] }
 0x112   :  { %v2124_v19 = vadd.f32 %v2123_v10, %v1979_v18  ;;  %v6719_v3 = vor.u32 %v7343_v0, %v6716_v1  ;;  %v7307_v0 = vld [vmem:[%s10934_s0 + $0x114] sm:$0xf0] }
 0x113   :  { %7071 = vmatmul.msk.bf16.gmra.mxu1 %vm1828_vm1, %v8160_v4  ;;  %v5661_v20 = vadd.f32 %v7886_v62, %v2409_v16  ;;  %v2411_v22 = vpop.f32.mrf.mxu3 }
 0x114   :  { %v5668_v23 = vadd.f32 %v7874_v55, %v2124_v19  ;;  %2018 = vmatmul.bf16.gmra.mxu0 %v8176_v15 }
 0x115   :  { %6093 = vst [vmem:[%s10936_s3 + $0x348] sm:$0xff] %v5661_v20  ;;  %2306 = vmatmul.bf16.gmra.mxu2 %v8176_v15  ;;  %2804 = vmatpush.bf16.msrb.mxu0 %v6719_v3 }
 0x116   :  { %6100 = vst [vmem:[%s10936_s3 + $0x380] sm:$0xff] %v5668_v23  ;;  %v6938_v23 = vld [vmem:[%s10933_s1 + $0x248] sm:$0xf] }
 0x118   :  { %v2125_v27 = vpop.f32.mrf.mxu1  ;;  %v2267_v31 = vpop.f32.mrf.mxu2 }
 0x119   :  { %v2412_v32 = vadd.f32 %v2411_v22, %v2267_v31  ;;  %v1981_v34 = vpop.f32.mrf.mxu0 }
 0x11a   :  { %v2126_v40 = vadd.f32 %v2125_v27, %v1981_v34  ;;  %v7403_v27 = vld [vmem:[%s10933_s1 + $0x264] sm:$0xf0]  ;;  %v6940_v34 = vld [vmem:[%s10933_s1 + $0x268] sm:$0xf0] }
 0x11b   :  { %v5669_v41 = vadd.f32 %v7886_v62, %v2412_v32  ;;  %v2413_v43 = vpop.f32.mrf.mxu3  ;;  %v6939_v31 = vor.u32 %v7403_v27, %v6938_v23  ;;  %v7399_v32 = vld [vmem:[%s10933_s1 + $0x24c] sm:$0xf] }
 0x11c   :  { %v5676_v44 = vadd.f32 %v7874_v55, %v2126_v40  ;;  %v6943_v39 = vor.u32 %v7399_v32, %v6940_v34  ;;  %v7308_v32 = vld [vmem:[%s10934_s0 + $0x124] sm:$0xf]  ;;  %v6572_v34 = vld [vmem:[%s10934_s0 + $0x128] sm:$0xf0] }
 0x11d   :  { %6101 = vst [vmem:[%s10936_s3 + $0x388] sm:$0xff] %v5669_v41  ;;  %2661 = vmatpush.bf16.msrb.mxu3 %v6939_v31 }
 0x11e   :  { %6108 = vst [vmem:[%s10936_s3 + $0x3c0] sm:$0xff] %v5676_v44  ;;  %v6564_v44 = vld [vmem:[%s10934_s0 + $0x118] sm:$0xf0]  ;;  %2949 = vmatpush.bf16.msrb.mxu2 %v6943_v39 }
 0x120   :  { %v2128_v59 = vpop.f32.mrf.mxu1  ;;  %v2269_v6 = vpop.f32.mrf.mxu2  ;;  %7099 = vmatmul.msk.bf16.gmra.mxu3 %vm1828_vm1, %v8198_v46 }
 0x121   :  { %v2414_v10 = vadd.f32 %v2413_v43, %v2269_v6  ;;  %v1984_v13 = vpop.f32.mrf.mxu0  ;;  %v7306_v43 = vld [vmem:[%s10934_s0 + $0x114] sm:$0xf]  ;;  %v8276_v6 = vor.u32 %v7307_v0, %v6562_v63 }
 0x122   :  { %v2129_v16 = vadd.f32 %v2128_v59, %v1984_v13  ;;  %v8260_v59 = vor.u32 %v7306_v43, %v6564_v44  ;;  %v8298_v43 = vor.u32 %v7308_v32, %v6572_v34  ;;  %v6570_v44 = vld [vmem:[%s10934_s0 + $0x120] sm:$0xf] }
 0x123   :  { %7072 = vmatmul.msk.bf16.gmra.mxu1 %vm1828_vm1, %v8198_v46  ;;  %v5677_v18 = vadd.f32 %v7886_v62, %v2414_v10  ;;  %v2416_v19 = vpop.f32.mrf.mxu3 }
 0x124   :  { %v5684_v20 = vadd.f32 %v7874_v55, %v2129_v16  ;;  %2023 = vmatmul.bf16.gmra.mxu0 %v8226_v7 }
 0x125   :  { %6109 = vst [vmem:[%s10936_s3 + $0x3c8] sm:$0xff] %v5677_v18  ;;  %2311 = vmatmul.bf16.gmra.mxu2 %v8226_v7 }
 0x126   :  { %6116 = vst [vmem:[%s10936_s3 + $0x400] sm:$0xff] %v5684_v20 }
 0x128   :  { %v2130_v22 = vpop.f32.mrf.mxu1  ;;  %v2272_v37 = vpop.f32.mrf.mxu2 }
 0x129   :  { %v2417_v40 = vadd.f32 %v2416_v19, %v2272_v37  ;;  %v1986_v41 = vpop.f32.mrf.mxu0 }
 0x12a   :  { %v2131_v47 = vadd.f32 %v2130_v22, %v1986_v41 }
 0x12b   :  { %v5685_v52 = vadd.f32 %v7886_v62, %v2417_v40  ;;  %v2418_v54 = vpop.f32.mrf.mxu3 }
 0x12c   :  { %v5692_v57 = vadd.f32 %v7874_v55, %v2131_v47  ;;  %v7309_v47 = vld [vmem:[%s10934_s0 + $0x124] sm:$0xf0] }
 0x12d   :  { %6117 = vst [vmem:[%s10936_s3 + $0x408] sm:$0xff] %v5685_v52 }
 0x12e   :  { %6124 = vst [vmem:[%s10936_s3 + $0x440] sm:$0xff] %v5692_v57  ;;  %v8314_v57 = vor.u32 %v7309_v47, %v6570_v44  ;;  %v6682_v44 = vld [vmem:[%s10933_s1 + $0x48] sm:$0xf] }
 0x12f   :  { %v7339_v47 = vld [vmem:[%s10933_s1 + $0x64] sm:$0xf0] }
 0x130   :  { %v2133_v1 = vpop.f32.mrf.mxu1  ;;  %v2274_v3 = vpop.f32.mrf.mxu2  ;;  %7100 = vmatmul.msk.bf16.gmra.mxu3 %vm1828_vm1, %v8260_v59 }
 0x131   :  { %v2419_v10 = vadd.f32 %v2418_v54, %v2274_v3  ;;  %v1989_v13 = vpop.f32.mrf.mxu0 }
 0x132   :  { %v2134_v16 = vadd.f32 %v2133_v1, %v1989_v13 }
 0x133   :  { %7073 = vmatmul.msk.bf16.gmra.mxu1 %vm1828_vm1, %v8260_v59  ;;  %v5693_v18 = vadd.f32 %v7886_v62, %v2419_v10  ;;  %v2421_v19 = vpop.f32.mrf.mxu3 }
 0x134   :  { %v5700_v20 = vadd.f32 %v7874_v55, %v2134_v16  ;;  %2028 = vmatmul.bf16.gmra.mxu0 %v8276_v6 }
 0x135   :  { %6125 = vst [vmem:[%s10936_s3 + $0x448] sm:$0xff] %v5693_v18  ;;  %2316 = vmatmul.bf16.gmra.mxu2 %v8276_v6 }
 0x136   :  { %6132 = vst [vmem:[%s10936_s3 + $0x480] sm:$0xff] %v5700_v20 }
 0x138   :  { %v2135_v22 = vpop.f32.mrf.mxu1  ;;  %v2277_v23 = vpop.f32.mrf.mxu2 }
 0x139   :  { %v2422_v27 = vadd.f32 %v2421_v19, %v2277_v23  ;;  %v1991_v31 = vpop.f32.mrf.mxu0  ;;  %v6580_v23 = vld [vmem:[%s10934_s0 + $0x138] sm:$0xf0] }
 0x13a   :  { %v2136_v37 = vadd.f32 %v2135_v22, %v1991_v31  ;;  %v7310_v22 = vld [vmem:[%s10934_s0 + $0x134] sm:$0xf] }
 0x13b   :  { %v5701_v39 = vadd.f32 %v7886_v62, %v2422_v27  ;;  %v2423_v40 = vpop.f32.mrf.mxu3 }
 0x13c   :  { %v5708_v41 = vadd.f32 %v7874_v55, %v2136_v37  ;;  %v8336_v37 = vor.u32 %v7310_v22, %v6580_v23 }
 0x13d   :  { %6133 = vst [vmem:[%s10936_s3 + $0x488] sm:$0xff] %v5701_v39  ;;  %v6578_v39 = vld [vmem:[%s10934_s0 + $0x130] sm:$0xf] }
 0x13e   :  { %6140 = vst [vmem:[%s10936_s3 + $0x4c0] sm:$0xff] %v5708_v41 }
 0x140   :  { %v2138_v52 = vpop.f32.mrf.mxu1  ;;  %v2279_v54 = vpop.f32.mrf.mxu2  ;;  %7101 = vmatmul.msk.bf16.gmra.mxu3 %vm1828_vm1, %v8298_v43 }
 0x141   :  { %v2424_v63 = vadd.f32 %v2423_v40, %v2279_v54  ;;  %v1994_v0 = vpop.f32.mrf.mxu0  ;;  %v7311_v40 = vld [vmem:[%s10934_s0 + $0x134] sm:$0xf0]  ;;  %v7335_v54 = vld [vmem:[%s10933_s1 + $0x4c] sm:$0xf] }
 0x142   :  { %v2139_v1 = vadd.f32 %v2138_v52, %v1994_v0  ;;  %v6683_v52 = vor.u32 %v7339_v47, %v6682_v44 }
 0x143   :  { %7074 = vmatmul.msk.bf16.gmra.mxu1 %vm1828_vm1, %v8298_v43  ;;  %v5709_v3 = vadd.f32 %v7886_v62, %v2424_v63  ;;  %v2426_v10 = vpop.f32.mrf.mxu3  ;;  %v6684_v63 = vld [vmem:[%s10933_s1 + $0x68] sm:$0xf0] }
 0x144   :  { %v5716_v13 = vadd.f32 %v7874_v55, %v2139_v1  ;;  %2033 = vmatmul.bf16.gmra.mxu0 %v8314_v57  ;;  %v8364_v1 = vor.u32 %v7311_v40, %v6578_v39  ;;  %2517 = vmatpush.bf16.msrb.mxu1 %v6683_v52  ;;  %v6586_v52 = vld [vmem:[%s10934_s0 + $0x140] sm:$0xf] }
 0x145   :  { %6141 = vst [vmem:[%s10936_s3 + $0x4c8] sm:$0xff] %v5709_v3  ;;  %2321 = vmatmul.bf16.gmra.mxu2 %v8314_v57  ;;  %v6687_v3 = vor.u32 %v7335_v54, %v6684_v63  ;;  %v7313_v54 = vld [vmem:[%s10934_s0 + $0x144] sm:$0xf0] }
 0x146   :  { %6148 = vst [vmem:[%s10936_s3 + $0x500] sm:$0xff] %v5716_v13 }
 0x147   :  { %2805 = vmatpush.bf16.msrb.mxu0 %v6687_v3  ;;  %v8402_v3 = vor.u32 %v7313_v54, %v6586_v52  ;;  %v6594_v54 = vld [vmem:[%s10934_s0 + $0x150] sm:$0xf] }
 0x148   :  { %v2140_v16 = vpop.f32.mrf.mxu1  ;;  %v2282_v18 = vpop.f32.mrf.mxu2 }
 0x149   :  { %v2427_v19 = vadd.f32 %v2426_v10, %v2282_v18  ;;  %v1996_v20 = vpop.f32.mrf.mxu0 }
 0x14a   :  { %v2141_v27 = vadd.f32 %v2140_v16, %v1996_v20 }
 0x14b   :  { %v5717_v31 = vadd.f32 %v7886_v62, %v2427_v19  ;;  %v2428_v32 = vpop.f32.mrf.mxu3 }
 0x14c   :  { %v5724_v34 = vadd.f32 %v7874_v55, %v2141_v27 }
 0x14d   :  { %6149 = vst [vmem:[%s10936_s3 + $0x508] sm:$0xff] %v5717_v31 }
 0x14e   :  { %6156 = vst [vmem:[%s10936_s3 + $0x540] sm:$0xff] %v5724_v34  ;;  %v6588_v34 = vld [vmem:[%s10934_s0 + $0x148] sm:$0xf0] }
 0x150   :  { %v2143_v41 = vpop.f32.mrf.mxu1  ;;  %v2284_v0 = vpop.f32.mrf.mxu2  ;;  %7102 = vmatmul.msk.bf16.gmra.mxu3 %vm1828_vm1, %v8336_v37 }
 0x151   :  { %v2429_v10 = vadd.f32 %v2428_v32, %v2284_v0  ;;  %v1999_v13 = vpop.f32.mrf.mxu0  ;;  %v7312_v32 = vld [vmem:[%s10934_s0 + $0x144] sm:$0xf] }
 0x152   :  { %v2144_v16 = vadd.f32 %v2143_v41, %v1999_v13  ;;  %v8386_v47 = vor.u32 %v7312_v32, %v6588_v34  ;;  %v7314_v32 = vld [vmem:[%s10934_s0 + $0x154] sm:$0xf]  ;;  %v6596_v34 = vld [vmem:[%s10934_s0 + $0x158] sm:$0xf0] }
 0x153   :  { %7075 = vmatmul.msk.bf16.gmra.mxu1 %vm1828_vm1, %v8336_v37  ;;  %v5725_v18 = vadd.f32 %v7886_v62, %v2429_v10  ;;  %v2431_v19 = vpop.f32.mrf.mxu3  ;;  %v8424_v52 = vor.u32 %v7314_v32, %v6596_v34 }
 0x154   :  { %v5732_v20 = vadd.f32 %v7874_v55, %v2144_v16  ;;  %2038 = vmatmul.bf16.gmra.mxu0 %v8364_v1 }
 0x155   :  { %6157 = vst [vmem:[%s10936_s3 + $0x548] sm:$0xff] %v5725_v18  ;;  %2326 = vmatmul.bf16.gmra.mxu2 %v8364_v1 }
 0x156   :  { %6164 = vst [vmem:[%s10936_s3 + $0x580] sm:$0xff] %v5732_v20 }
 0x158   :  { %v2145_v22 = vpop.f32.mrf.mxu1  ;;  %v2287_v23 = vpop.f32.mrf.mxu2 }
 0x159   :  { %v2432_v27 = vadd.f32 %v2431_v19, %v2287_v23  ;;  %v2001_v31 = vpop.f32.mrf.mxu0 }
 0x15a   :  { %v2146_v39 = vadd.f32 %v2145_v22, %v2001_v31 }
 0x15b   :  { %v5733_v40 = vadd.f32 %v7886_v62, %v2432_v27  ;;  %v2433_v41 = vpop.f32.mrf.mxu3 }
 0x15c   :  { %v5740_v44 = vadd.f32 %v7874_v55, %v2146_v39 }
 0x15d   :  { %6165 = vst [vmem:[%s10936_s3 + $0x588] sm:$0xff] %v5733_v40 }
 0x15e   :  { %6172 = vst [vmem:[%s10936_s3 + $0x5c0] sm:$0xff] %v5740_v44 }
 0x160   :  { %v2148_v63 = vpop.f32.mrf.mxu1  ;;  %v2289_v0 = vpop.f32.mrf.mxu2  ;;  %7103 = vmatmul.msk.bf16.gmra.mxu3 %vm1828_vm1, %v8386_v47 }
 0x161   :  { %v2434_v10 = vadd.f32 %v2433_v41, %v2289_v0  ;;  %v2004_v13 = vpop.f32.mrf.mxu0 }
 0x162   :  { %v2149_v16 = vadd.f32 %v2148_v63, %v2004_v13  ;;  %v7315_v63 = vld [vmem:[%s10934_s0 + $0x154] sm:$0xf0]  ;;  %v7395_v13 = vld [vmem:[%s10933_s1 + $0x224] sm:$0xf0] }
 0x163   :  { %7076 = vmatmul.msk.bf16.gmra.mxu1 %vm1828_vm1, %v8386_v47  ;;  %v5741_v18 = vadd.f32 %v7886_v62, %v2434_v10  ;;  %v2436_v19 = vpop.f32.mrf.mxu3  ;;  %v6906_v10 = vld [vmem:[%s10933_s1 + $0x208] sm:$0xf] }
 0x164   :  { %v5748_v20 = vadd.f32 %v7874_v55, %v2149_v16  ;;  %2043 = vmatmul.bf16.gmra.mxu0 %v8402_v3  ;;  %v6907_v16 = vor.u32 %v7395_v13, %v6906_v10  ;;  %v6604_v10 = vld [vmem:[%s10934_s0 + $0x168] sm:$0xf0] }
 0x165   :  { %6173 = vst [vmem:[%s10936_s3 + $0x5c8] sm:$0xff] %v5741_v18  ;;  %2331 = vmatmul.bf16.gmra.mxu2 %v8402_v3  ;;  %v7391_v18 = vld [vmem:[%s10933_s1 + $0x20c] sm:$0xf] }
 0x166   :  { %6180 = vst [vmem:[%s10936_s3 + $0x600] sm:$0xff] %v5748_v20  ;;  %2662 = vmatpush.bf16.msrb.mxu3 %v6907_v16 }
 0x168   :  { %v2150_v22 = vpop.f32.mrf.mxu1  ;;  %v2292_v23 = vpop.f32.mrf.mxu2 }
 0x169   :  { %v2437_v27 = vadd.f32 %v2436_v19, %v2292_v23  ;;  %v2006_v31 = vpop.f32.mrf.mxu0  ;;  %v6908_v19 = vld [vmem:[%s10933_s1 + $0x228] sm:$0xf0] }
 0x16a   :  { %v2151_v39 = vadd.f32 %v2150_v22, %v2006_v31  ;;  %v8452_v22 = vor.u32 %v7315_v63, %v6594_v54  ;;  %v6911_v23 = vor.u32 %v7391_v18, %v6908_v19 }
 0x16b   :  { %v5749_v40 = vadd.f32 %v7886_v62, %v2437_v27  ;;  %v2438_v41 = vpop.f32.mrf.mxu3 }
 0x16c   :  { %v5756_v44 = vadd.f32 %v7874_v55, %v2151_v39  ;;  %2950 = vmatpush.bf16.msrb.mxu2 %v6911_v23  ;;  %v6602_v23 = vld [vmem:[%s10934_s0 + $0x160] sm:$0xf] }
 0x16d   :  { %6181 = vst [vmem:[%s10936_s3 + $0x608] sm:$0xff] %v5749_v40 }
 0x16e   :  { %6188 = vst [vmem:[%s10936_s3 + $0x640] sm:$0xff] %v5756_v44 }
 0x170   :  { %v2153_v0 = vpop.f32.mrf.mxu1  ;;  %v2294_v20 = vpop.f32.mrf.mxu2  ;;  %7104 = vmatmul.msk.bf16.gmra.mxu3 %vm1828_vm1, %v8424_v52 }
 0x171   :  { %v2439_v27 = vadd.f32 %v2438_v41, %v2294_v20  ;;  %v2009_v31 = vpop.f32.mrf.mxu0 }
 0x172   :  { %v2154_v32 = vadd.f32 %v2153_v0, %v2009_v31  ;;  %v7316_v0 = vld [vmem:[%s10934_s0 + $0x164] sm:$0xf] }
 0x173   :  { %7077 = vmatmul.msk.bf16.gmra.mxu1 %vm1828_vm1, %v8424_v52  ;;  %v5757_v34 = vadd.f32 %v7886_v62, %v2439_v27  ;;  %v2441_v39 = vpop.f32.mrf.mxu3  ;;  %v8474_v20 = vor.u32 %v7316_v0, %v6604_v10  ;;  %v7317_v27 = vld [vmem:[%s10934_s0 + $0x164] sm:$0xf0] }
 0x174   :  { %v5764_v40 = vadd.f32 %v7874_v55, %v2154_v32  ;;  %2048 = vmatmul.bf16.gmra.mxu0 %v8452_v22  ;;  %v6650_v10 = vld [vmem:[%s10933_s1 + $0x8] sm:$0xf] }
 0x175   :  { %6189 = vst [vmem:[%s10936_s3 + $0x648] sm:$0xff] %v5757_v34  ;;  %2336 = vmatmul.bf16.gmra.mxu2 %v8452_v22  ;;  %v8490_v34 = vor.u32 %v7317_v27, %v6602_v23 }
 0x176   :  { %6196 = vst [vmem:[%s10936_s3 + $0x680] sm:$0xff] %v5764_v40 }
 0x177   :  { %10964 = vst [vmem:[#allocation3_spill] sm:$0xff] %v8474_v20 }
 0x178   :  { %v2155_v41 = vpop.f32.mrf.mxu1  ;;  %v2297_v44 = vpop.f32.mrf.mxu2  ;;  %10965 = vst [vmem:[#allocation4_spill] sm:$0xff] %v8490_v34 }
 0x179   :  { %v2442_v54 = vadd.f32 %v2441_v39, %v2297_v44  ;;  %v2011_v63 = vpop.f32.mrf.mxu0 }
 0x17a   :  { %v2156_v13 = vadd.f32 %v2155_v41, %v2011_v63 }
 0x17b   :  { %v5765_v16 = vadd.f32 %v7886_v62, %v2442_v54  ;;  %v2443_v18 = vpop.f32.mrf.mxu3 }
 0x17c   :  { %v5772_v19 = vadd.f32 %v7874_v55, %v2156_v13  ;;  %v7331_v13 = vld [vmem:[%s10933_s1 + $0x24] sm:$0xf0] }
 0x17d   :  { %6197 = vst [vmem:[%s10936_s3 + $0x688] sm:$0xff] %v5765_v16  ;;  %v6651_v16 = vor.u32 %v7331_v13, %v6650_v10 }
 0x17e   :  { %6204 = vst [vmem:[%s10936_s3 + $0x6c0] sm:$0xff] %v5772_v19  ;;  %v6652_v19 = vld [vmem:[%s10933_s1 + $0x28] sm:$0xf0] }
 0x17f   :  { %2518 = vmatpush.bf16.msrb.mxu1 %v6651_v16 }
 0x180   :  { %v2158_v31 = vpop.f32.mrf.mxu1  ;;  %v2299_v32 = vpop.f32.mrf.mxu2  ;;  %7105 = vmatmul.msk.bf16.gmra.mxu3 %vm1828_vm1, %v8474_v20 }
 0x181   :  { %v2444_v39 = vadd.f32 %v2443_v18, %v2299_v32  ;;  %v2014_v40 = vpop.f32.mrf.mxu0  ;;  %v7327_v18 = vld [vmem:[%s10933_s1 + $0xc] sm:$0xf] }
 0x182   :  { %v2159_v41 = vadd.f32 %v2158_v31, %v2014_v40  ;;  %v6655_v27 = vor.u32 %v7327_v18, %v6652_v19  ;;  %v6612_v40 = vld [vmem:[%s10934_s0 + $0x178] sm:$0xf0] }
 0x183   :  { %7078 = vmatmul.msk.bf16.gmra.mxu1 %vm1828_vm1, %v8474_v20  ;;  %v5773_v44 = vadd.f32 %v7886_v62, %v2444_v39  ;;  %v2446_v54 = vpop.f32.mrf.mxu3  ;;  %v7318_v39 = vld [vmem:[%s10934_s0 + $0x174] sm:$0xf] }
 0x184   :  { %v5780_v63 = vadd.f32 %v7874_v55, %v2159_v41  ;;  %2053 = vmatmul.bf16.gmra.mxu0 %v8490_v34  ;;  %v8524_v13 = vor.u32 %v7318_v39, %v6612_v40 }
 0x185   :  { %6205 = vst [vmem:[%s10936_s3 + $0x6c8] sm:$0xff] %v5773_v44  ;;  %2341 = vmatmul.bf16.gmra.mxu2 %v8490_v34  ;;  %2806 = vmatpush.bf16.msrb.mxu0 %v6655_v27 }
 0x186   :  { %6212 = vst [vmem:[%s10936_s3 + $0x700] sm:$0xff] %v5780_v63 }
 0x187   :  { %10966 = vst [vmem:[#allocation5_spill] sm:$0xff] %v8524_v13 }
 0x188   :  { %v2160_v0 = vpop.f32.mrf.mxu1  ;;  %v2302_v23 = vpop.f32.mrf.mxu2 }
 0x189   :  { %v2447_v31 = vadd.f32 %v2446_v54, %v2302_v23  ;;  %v2016_v32 = vpop.f32.mrf.mxu0  ;;  %v6610_v54 = vld [vmem:[%s10934_s0 + $0x170] sm:$0xf] }
 0x18a   :  { %v2161_v41 = vadd.f32 %v2160_v0, %v2016_v32  ;;  %v7319_v0 = vld [vmem:[%s10934_s0 + $0x174] sm:$0xf0] }
 0x18b   :  { %v5781_v44 = vadd.f32 %v7886_v62, %v2447_v31  ;;  %v2448_v63 = vpop.f32.mrf.mxu3  ;;  %v8540_v19 = vor.u32 %v7319_v0, %v6610_v54  ;;  %v7320_v54 = vld [vmem:[%s10934_s0 + $0x184] sm:$0xf]  ;;  %v6620_v0 = vld [vmem:[%s10934_s0 + $0x188] sm:$0xf0] }
 0x18c   :  { %v5788_v10 = vadd.f32 %v7874_v55, %v2161_v41 }
 0x18d   :  { %6213 = vst [vmem:[%s10936_s3 + $0x708] sm:$0xff] %v5781_v44 }
 0x18e   :  { %6220 = vst [vmem:[%s10936_s3 + $0x740] sm:$0xff] %v5788_v10 }
 0x18f   :  { %10967 = vst [vmem:[#allocation6_spill] sm:$0xff] %v8540_v19 }
 0x190   :  { %v2163_v16 = vpop.f32.mrf.mxu1  ;;  %v2304_v18 = vpop.f32.mrf.mxu2  ;;  %7106 = vmatmul.msk.bf16.gmra.mxu3 %vm1828_vm1, %v8524_v13 }
 0x191   :  { %v2449_v23 = vadd.f32 %v2448_v63, %v2304_v18  ;;  %v2019_v27 = vpop.f32.mrf.mxu0 }
 0x192   :  { %v2164_v31 = vadd.f32 %v2163_v16, %v2019_v27 }
 0x193   :  { %7079 = vmatmul.msk.bf16.gmra.mxu1 %vm1828_vm1, %v8524_v13  ;;  %v5789_v32 = vadd.f32 %v7886_v62, %v2449_v23  ;;  %v2451_v39 = vpop.f32.mrf.mxu3 }
 0x194   :  { %v5796_v40 = vadd.f32 %v7874_v55, %v2164_v31  ;;  %2058 = vmatmul.bf16.gmra.mxu0 %v8540_v19  ;;  %v8562_v31 = vor.u32 %v7320_v54, %v6620_v0 }
 0x195   :  { %6221 = vst [vmem:[%s10936_s3 + $0x748] sm:$0xff] %v5789_v32  ;;  %2346 = vmatmul.bf16.gmra.mxu2 %v8540_v19  ;;  %v6618_v32 = vld [vmem:[%s10934_s0 + $0x180] sm:$0xf] }
 0x196   :  { %6228 = vst [vmem:[%s10936_s3 + $0x780] sm:$0xff] %v5796_v40 }
 0x197   :  { %10968 = vst [vmem:[#allocation7_spill] sm:$0xff] %v8562_v31 }
 0x198   :  { %v2165_v41 = vpop.f32.mrf.mxu1  ;;  %v2307_v44 = vpop.f32.mrf.mxu2 }
 0x199   :  { %v2452_v63 = vadd.f32 %v2451_v39, %v2307_v44  ;;  %v2021_v10 = vpop.f32.mrf.mxu0  ;;  %v7321_v39 = vld [vmem:[%s10934_s0 + $0x184] sm:$0xf0] }
 0x19a   :  { %v2166_v16 = vadd.f32 %v2165_v41, %v2021_v10  ;;  %v8578_v44 = vor.u32 %v7321_v39, %v6618_v32 }
 0x19b   :  { %v5797_v18 = vadd.f32 %v7886_v62, %v2452_v63  ;;  %v2453_v23 = vpop.f32.mrf.mxu3 }
 0x19c   :  { %v5804_v27 = vadd.f32 %v7874_v55, %v2166_v16  ;;  %10969 = vst [vmem:[#allocation8_spill] sm:$0xff] %v8578_v44 }
 0x19d   :  { %6229 = vst [vmem:[%s10936_s3 + $0x788] sm:$0xff] %v5797_v18 }
 0x19e   :  { %6236 = vst [vmem:[%s10936_s3 + $0x7c0] sm:$0xff] %v5804_v27 }
 0x1a0   :  { %v2168_v40 = vpop.f32.mrf.mxu1  ;;  %v2309_v41 = vpop.f32.mrf.mxu2  ;;  %7107 = vmatmul.msk.bf16.gmra.mxu3 %vm1828_vm1, %v8562_v31 }
 0x1a1   :  { %v2454_v63 = vadd.f32 %v2453_v23, %v2309_v41  ;;  %v2024_v10 = vpop.f32.mrf.mxu0  ;;  %v6628_v41 = vld [vmem:[%s10934_s0 + $0x198] sm:$0xf0] }
 0x1a2   :  { %v2169_v54 = vadd.f32 %v2168_v40, %v2024_v10  ;;  %v7322_v40 = vld [vmem:[%s10934_s0 + $0x194] sm:$0xf] }
 0x1a3   :  { %7080 = vmatmul.msk.bf16.gmra.mxu1 %vm1828_vm1, %v8562_v31  ;;  %v5805_v0 = vadd.f32 %v7886_v62, %v2454_v63  ;;  %v2456_v16 = vpop.f32.mrf.mxu3 }
 0x1a4   :  { %v5812_v18 = vadd.f32 %v7874_v55, %v2169_v54  ;;  %2063 = vmatmul.bf16.gmra.mxu0 %v8578_v44 }
 0x1a5   :  { %6237 = vst [vmem:[%s10936_s3 + $0x7c8] sm:$0xff] %v5805_v0  ;;  %2351 = vmatmul.bf16.gmra.mxu2 %v8578_v44  ;;  %v8600_v44 = vor.u32 %v7322_v40, %v6628_v41 }
 0x1a6   :  { %6244 = vst [vmem:[%s10936_s3 + $0x800] sm:$0xff] %v5812_v18  ;;  %v7323_v18 = vld [vmem:[%s10934_s0 + $0x194] sm:$0xf0] }
 0x1a7   :  { %10970 = vst [vmem:[#allocation9_spill] sm:$0xff] %v8600_v44 }
 0x1a8   :  { %v2170_v23 = vpop.f32.mrf.mxu1  ;;  %v2312_v27 = vpop.f32.mrf.mxu2 }
 0x1a9   :  { %v2457_v32 = vadd.f32 %v2456_v16, %v2312_v27  ;;  %v2026_v39 = vpop.f32.mrf.mxu0  ;;  %v6626_v16 = vld [vmem:[%s10934_s0 + $0x190] sm:$0xf] }
 0x1aa   :  { %v2171_v63 = vadd.f32 %v2170_v23, %v2026_v39 }
 0x1ab   :  { %v5813_v10 = vadd.f32 %v7886_v62, %v2457_v32  ;;  %v2458_v54 = vpop.f32.mrf.mxu3  ;;  %v8616_v32 = vor.u32 %v7323_v18, %v6626_v16 }
 0x1ac   :  { %v5820_v0 = vadd.f32 %v7874_v55, %v2171_v63 }
 0x1ad   :  { %6245 = vst [vmem:[%s10936_s3 + $0x808] sm:$0xff] %v5813_v10 }
 0x1ae   :  { %6252 = vst [vmem:[%s10936_s3 + $0x840] sm:$0xff] %v5820_v0  ;;  %v1043_v0 = vld [vmem:[%s10933_s1 + $0x350] sm:$0xff] }
 0x1af   :  { %10971 = vst [vmem:[#allocation10_spill] sm:$0xff] %v8616_v32  ;;  %v1608_v16 = vunpack.c.l.b16 %v1043_v0  ;;  %v1609_v18 = vunpack.c.h.b16 %v1043_v0 }
 0x1b0   :  { %v2173_v23 = vpop.f32.mrf.mxu1  ;;  %v2314_v27 = vpop.f32.mrf.mxu2  ;;  %7108 = vmatmul.msk.bf16.gmra.mxu3 %vm1828_vm1, %v8600_v44 }
 0x1b1   :  { %v2459_v39 = vadd.f32 %v2458_v54, %v2314_v27  ;;  %v2029_v40 = vpop.f32.mrf.mxu0 }
 0x1b2   :  { %v2174_v41 = vadd.f32 %v2173_v23, %v2029_v40  ;;  %v7324_v40 = vld [vmem:[%s10934_s0 + $0x1a4] sm:$0xf] }
 0x1b3   :  { %7081 = vmatmul.msk.bf16.gmra.mxu1 %vm1828_vm1, %v8600_v44  ;;  %v5821_v63 = vadd.f32 %v7886_v62, %v2459_v39  ;;  %v2461_v10 = vpop.f32.mrf.mxu3 }
 0x1b4   :  { %v5828_v31 = vadd.f32 %v7874_v55, %v2174_v41  ;;  %2068 = vmatmul.bf16.gmra.mxu0 %v8616_v32  ;;  %v6636_v41 = vld [vmem:[%s10934_s0 + $0x1a8] sm:$0xf0] }
 0x1b5   :  { %6253 = vst [vmem:[%s10936_s3 + $0x848] sm:$0xff] %v5821_v63  ;;  %2356 = vmatmul.bf16.gmra.mxu2 %v8616_v32  ;;  %v1720_v63 = vpack.c.b16 %v1608_v16, %v1608_v16  ;;  %v7325_v16 = vld [vmem:[%s10934_s0 + $0x1a4] sm:$0xf0] }
 0x1b6   :  { %6260 = vst [vmem:[%s10936_s3 + $0x880] sm:$0xff] %v5828_v31  ;;  %v1721_v31 = vpack.c.b16 %v1609_v18, %v1609_v18 }
 0x1b7   :  { %v1924_v13 = vsel %vm1910_vm0, %v1720_v63, 0 }
 0x1b8   :  { %v2175_v54 = vpop.f32.mrf.mxu1  ;;  %v2317_v23 = vpop.f32.mrf.mxu2  ;;  %v1927_v0 = vsel %vm1910_vm0, %v1721_v31, 0  ;;  %3233 = vmatpush.bf16.msra.mxu3 %v1924_v13  ;;  %v6882_v13 = vld [vmem:[%s10933_s1 + $0x1d0] sm:$0xf] }
 0x1b9   :  { %v2462_v27 = vadd.f32 %v2461_v10, %v2317_v23  ;;  %v2031_v39 = vpop.f32.mrf.mxu0  ;;  %v8643_v23 = vor.u32 %v7324_v40, %v6636_v41  ;;  %3521 = vmatpush.bf16.msra.mxu2 %v1927_v0 }
 0x1ba   :  { %v2176_v32 = vadd.f32 %v2175_v54, %v2031_v39  ;;  %v6634_v54 = vld [vmem:[%s10934_s0 + $0x1a0] sm:$0xf]  ;;  %v6884_v39 = vld [vmem:[%s10933_s1 + $0x1f0] sm:$0xf0] }
 0x1bb   :  { %v5829_v44 = vadd.f32 %v7886_v62, %v2462_v27  ;;  %v2463_v19 = vpop.f32.mrf.mxu3  ;;  %v7384_v27 = vld [vmem:[%s10933_s1 + $0x1d4] sm:$0xf]  ;;  %v8671_v41 = vor.u32 %v7325_v16, %v6634_v54 }
 0x1bc   :  { %v5836_v10 = vadd.f32 %v7874_v55, %v2176_v32  ;;  %v6887_v63 = vor.u32 %v7384_v27, %v6884_v39 }
 0x1bd   :  { %6261 = vst [vmem:[%s10936_s3 + $0x888] sm:$0xff] %v5829_v44  ;;  %v7388_v44 = vld [vmem:[%s10933_s1 + $0x1ec] sm:$0xf0] }
 0x1be   :  { %6268 = vst [vmem:[%s10936_s3 + $0x8c0] sm:$0xff] %v5836_v10  ;;  %v6883_v18 = vor.u32 %v7388_v44, %v6882_v13  ;;  %3375 = vmatpush.bf16.msra.mxu0 %v6887_v63 }
 0x1c0   :  { %v2178_v32 = vpop.f32.mrf.mxu1  ;;  %v2319_v40 = vpop.f32.mrf.mxu2  ;;  %7109 = vmatmul.msk.bf16.gmra.mxu3 %vm1828_vm1, %v8643_v23  ;;  %3087 = vmatpush.bf16.msra.mxu1 %v6883_v18 }
 0x1c1   :  { %v2464_v31 = vadd.f32 %v2463_v19, %v2319_v40  ;;  %v2034_v0 = vpop.f32.mrf.mxu0 }
 0x1c2   :  { %v2179_v10 = vadd.f32 %v2178_v32, %v2034_v0 }
 0x1c3   :  { %7082 = vmatmul.msk.bf16.gmra.mxu1 %vm1828_vm1, %v8643_v23  ;;  %v5837_v13 = vadd.f32 %v7886_v62, %v2464_v31  ;;  %v2466_v44 = vpop.f32.mrf.mxu3 }
 0x1c4   :  { %v5844_v34 = vadd.f32 %v7874_v55, %v2179_v10  ;;  %2073 = vmatmul.bf16.gmra.mxu0 %v8671_v41 }
 0x1c5   :  { %6269 = vst [vmem:[%s10936_s3 + $0x8c8] sm:$0xff] %v5837_v13  ;;  %2361 = vmatmul.bf16.gmra.mxu2 %v8671_v41 }
 0x1c6   :  { %6276 = vst [vmem:[%s10936_s3 + $0x900] sm:$0xff] %v5844_v34 }
 0x1c8   :  { %v2180_v19 = vpop.f32.mrf.mxu1  ;;  %v2322_v54 = vpop.f32.mrf.mxu2 }
 0x1c9   :  { %v2467_v16 = vadd.f32 %v2466_v44, %v2322_v54  ;;  %v2036_v32 = vpop.f32.mrf.mxu0 }
 0x1ca   :  { %v2181_v18 = vadd.f32 %v2180_v19, %v2036_v32 }
 0x1cb   :  { %v5845_v27 = vadd.f32 %v7886_v62, %v2467_v16  ;;  %v2468_v39 = vpop.f32.mrf.mxu3 }
 0x1cc   :  { %v5852_v40 = vadd.f32 %v7874_v55, %v2181_v18 }
 0x1cd   :  { %6277 = vst [vmem:[%s10936_s3 + $0x908] sm:$0xff] %v5845_v27 }
 0x1ce   :  { %6284 = vst [vmem:[%s10936_s3 + $0x940] sm:$0xff] %v5852_v40 }
 0x1d0   :  { %v2183_v63 = vpop.f32.mrf.mxu1  ;;  %v2324_v34 = vpop.f32.mrf.mxu2  ;;  %7110 = vmatmul.msk.bf16.vlgmr.msrb.gmra.mxu3 %vm1828_vm1, %v7635_v30 }
 0x1d1   :  { %v2469_v31 = vadd.f32 %v2468_v39, %v2324_v34  ;;  %v2039_v0 = vpop.f32.mrf.mxu0 }
 0x1d2   :  { %v2184_v10 = vadd.f32 %v2183_v63, %v2039_v0 }
 0x1d3   :  { %2519 = vmatmul.bf16.vlgmr.msrb.gmra.mxu1 %v7646_v38  ;;  %v5853_v13 = vadd.f32 %v7886_v62, %v2469_v31  ;;  %v2471_v44 = vpop.f32.mrf.mxu3 }
 0x1d4   :  { %v5860_v19 = vadd.f32 %v7874_v55, %v2184_v10  ;;  %2807 = vmatmul.bf16.vlgmr.msrb.gmra.mxu0 %v7646_v38 }
 0x1d5   :  { %6285 = vst [vmem:[%s10936_s3 + $0x948] sm:$0xff] %v5853_v13  ;;  %7137 = vmatmul.msk.bf16.vlgmr.msrb.gmra.mxu2 %vm1828_vm1, %v7635_v30 }
 0x1d6   :  { %6292 = vst [vmem:[%s10936_s3 + $0x980] sm:$0xff] %v5860_v19 }
 0x1d8   :  { %v2185_v54 = vpop.f32.mrf.mxu1  ;;  %v2327_v16 = vpop.f32.mrf.mxu2 }
 0x1d9   :  { %v2472_v32 = vadd.f32 %v2471_v44, %v2327_v16  ;;  %v2041_v18 = vpop.f32.mrf.mxu0 }
 0x1da   :  { %v2186_v27 = vadd.f32 %v2185_v54, %v2041_v18 }
 0x1db   :  { %v5861_v39 = vadd.f32 %v7886_v62, %v2472_v32  ;;  %v2473_v40 = vpop.f32.mrf.mxu3 }
 0x1dc   :  { %v5868_v63 = vadd.f32 %v7874_v55, %v2186_v27 }
 0x1dd   :  { %6293 = vst [vmem:[%s10936_s3 + $0x988] sm:$0xff] %v5861_v39 }
 0x1de   :  { %6300 = vst [vmem:[%s10936_s3 + $0x9c0] sm:$0xff] %v5868_v63 }
 0x1e0   :  { %v2188_v34 = vpop.f32.mrf.mxu1  ;;  %v2329_v31 = vpop.f32.mrf.mxu2  ;;  %7111 = vmatmul.msk.bf16.gmra.mxu3 %vm1828_vm1, %v7659_v42 }
 0x1e1   :  { %v2474_v0 = vadd.f32 %v2473_v40, %v2329_v31  ;;  %v2044_v10 = vpop.f32.mrf.mxu0 }
 0x1e2   :  { %v2189_v13 = vadd.f32 %v2188_v34, %v2044_v10 }
 0x1e3   :  { %2524 = vmatmul.bf16.gmra.mxu1 %v7669_v45  ;;  %v5869_v44 = vadd.f32 %v7886_v62, %v2474_v0  ;;  %v2476_v19 = vpop.f32.mrf.mxu3 }
 0x1e4   :  { %v5876_v54 = vadd.f32 %v7874_v55, %v2189_v13  ;;  %2812 = vmatmul.bf16.gmra.mxu0 %v7669_v45 }
 0x1e5   :  { %6301 = vst [vmem:[%s10936_s3 + $0x9c8] sm:$0xff] %v5869_v44  ;;  %7138 = vmatmul.msk.bf16.gmra.mxu2 %vm1828_vm1, %v7659_v42 }
 0x1e6   :  { %6308 = vst [vmem:[%s10936_s3 + $0xa00] sm:$0xff] %v5876_v54 }
 0x1e8   :  { %v2190_v16 = vpop.f32.mrf.mxu1  ;;  %v2332_v32 = vpop.f32.mrf.mxu2 }
 0x1e9   :  { %v2477_v18 = vadd.f32 %v2476_v19, %v2332_v32  ;;  %v2046_v27 = vpop.f32.mrf.mxu0  ;;  %v6850_v32 = vld [vmem:[%s10933_s1 + $0x190] sm:$0xf] }
 0x1ea   :  { %v2191_v39 = vadd.f32 %v2190_v16, %v2046_v27 }
 0x1eb   :  { %v5877_v40 = vadd.f32 %v7886_v62, %v2477_v18  ;;  %v2478_v63 = vpop.f32.mrf.mxu3  ;;  %v7380_v18 = vld [vmem:[%s10933_s1 + $0x1ac] sm:$0xf0] }
 0x1ec   :  { %v5884_v34 = vadd.f32 %v7874_v55, %v2191_v39  ;;  %v6851_v39 = vor.u32 %v7380_v18, %v6850_v32  ;;  %v7428_v18 = vld [vmem:[%s10933_s1 + $0x32c] sm:$0xf0] }
 0x1ed   :  { %6309 = vst [vmem:[%s10936_s3 + $0xa08] sm:$0xff] %v5877_v40  ;;  %v7376_v40 = vld [vmem:[%s10933_s1 + $0x194] sm:$0xf] }
 0x1ee   :  { %6316 = vst [vmem:[%s10936_s3 + $0xa40] sm:$0xff] %v5884_v34  ;;  %3088 = vmatpush.bf16.msra.mxu1 %v6851_v39  ;;  %v7424_v39 = vld [vmem:[%s10933_s1 + $0x314] sm:$0xf] }
 0x1f0   :  { %v2193_v31 = vpop.f32.mrf.mxu1  ;;  %v2334_v0 = vpop.f32.mrf.mxu2  ;;  %7112 = vmatmul.msk.bf16.gmra.mxu3 %vm1828_vm1, %v7681_v48 }
 0x1f1   :  { %v2479_v10 = vadd.f32 %v2478_v63, %v2334_v0  ;;  %v2049_v13 = vpop.f32.mrf.mxu0  ;;  %v6852_v63 = vld [vmem:[%s10933_s1 + $0x1b0] sm:$0xf0] }
 0x1f2   :  { %v2194_v44 = vadd.f32 %v2193_v31, %v2049_v13  ;;  %v6855_v34 = vor.u32 %v7376_v40, %v6852_v63  ;;  %v7044_v40 = vld [vmem:[%s10933_s1 + $0x330] sm:$0xf0] }
 0x1f3   :  { %2529 = vmatmul.bf16.gmra.mxu1 %v7691_v51  ;;  %v5885_v19 = vadd.f32 %v7886_v62, %v2479_v10  ;;  %v2481_v54 = vpop.f32.mrf.mxu3 }
 0x1f4   :  { %v5892_v16 = vadd.f32 %v7874_v55, %v2194_v44  ;;  %2817 = vmatmul.bf16.gmra.mxu0 %v7691_v51 }
 0x1f5   :  { %6317 = vst [vmem:[%s10936_s3 + $0xa48] sm:$0xff] %v5885_v19  ;;  %7139 = vmatmul.msk.bf16.gmra.mxu2 %vm1828_vm1, %v7681_v48  ;;  %3376 = vmatpush.bf16.msra.mxu0 %v6855_v34  ;;  %v7047_v34 = vor.u32 %v7424_v39, %v7044_v40 }
 0x1f6   :  { %6324 = vst [vmem:[%s10936_s3 + $0xa80] sm:$0xff] %v5892_v16 }
 0x1f7   :  { %3522 = vmatpush.bf16.msra.mxu2 %v7047_v34 }
 0x1f8   :  { %v2195_v27 = vpop.f32.mrf.mxu1  ;;  %v2337_v31 = vpop.f32.mrf.mxu2 }
 0x1f9   :  { %v2482_v0 = vadd.f32 %v2481_v54, %v2337_v31  ;;  %v2051_v10 = vpop.f32.mrf.mxu0  ;;  %v7042_v54 = vld [vmem:[%s10933_s1 + $0x310] sm:$0xf] }
 0x1fa   :  { %v2196_v13 = vadd.f32 %v2195_v27, %v2051_v10  ;;  %v7043_v27 = vor.u32 %v7428_v18, %v7042_v54 }
 0x1fb   :  { %v5893_v44 = vadd.f32 %v7886_v62, %v2482_v0  ;;  %v2483_v19 = vpop.f32.mrf.mxu3 }
 0x1fc   :  { %v5900_v16 = vadd.f32 %v7874_v55, %v2196_v13  ;;  %3234 = vmatpush.bf16.msra.mxu3 %v7043_v27 }
 0x1fd   :  { %6325 = vst [vmem:[%s10936_s3 + $0xa88] sm:$0xff] %v5893_v44 }
 0x1fe   :  { %6332 = vst [vmem:[%s10936_s3 + $0xac0] sm:$0xff] %v5900_v16 }
 0x200   :  { %v2198_v32 = vpop.f32.mrf.mxu1  ;;  %v2339_v63 = vpop.f32.mrf.mxu2  ;;  %7113 = vmatmul.msk.bf16.gmra.mxu3 %vm1828_vm1, %v7727_v2 }
 0x201   :  { %v2484_v31 = vadd.f32 %v2483_v19, %v2339_v63  ;;  %v2054_v0 = vpop.f32.mrf.mxu0 }
 0x202   :  { %v2199_v10 = vadd.f32 %v2198_v32, %v2054_v0 }
 0x203   :  { %2534 = vmatmul.bf16.gmra.mxu1 %v7737_v5  ;;  %v5901_v13 = vadd.f32 %v7886_v62, %v2484_v31  ;;  %v2486_v44 = vpop.f32.mrf.mxu3 }
 0x204   :  { %v5908_v16 = vadd.f32 %v7874_v55, %v2199_v10  ;;  %2822 = vmatmul.bf16.gmra.mxu0 %v7737_v5 }
 0x205   :  { %6333 = vst [vmem:[%s10936_s3 + $0xac8] sm:$0xff] %v5901_v13  ;;  %7140 = vmatmul.msk.bf16.gmra.mxu2 %vm1828_vm1, %v7727_v2 }
 0x206   :  { %6340 = vst [vmem:[%s10936_s3 + $0xb00] sm:$0xff] %v5908_v16 }
 0x208   :  { %v2200_v19 = vpop.f32.mrf.mxu1  ;;  %v2342_v32 = vpop.f32.mrf.mxu2 }
 0x209   :  { %v2487_v54 = vadd.f32 %v2486_v44, %v2342_v32  ;;  %v2056_v18 = vpop.f32.mrf.mxu0 }
 0x20a   :  { %v2201_v27 = vadd.f32 %v2200_v19, %v2056_v18 }
 0x20b   :  { %v5909_v39 = vadd.f32 %v7886_v62, %v2487_v54  ;;  %v2488_v40 = vpop.f32.mrf.mxu3 }
 0x20c   :  { %v5916_v63 = vadd.f32 %v7874_v55, %v2201_v27 }
 0x20d   :  { %6341 = vst [vmem:[%s10936_s3 + $0xb08] sm:$0xff] %v5909_v39 }
 0x20e   :  { %6348 = vst [vmem:[%s10936_s3 + $0xb40] sm:$0xff] %v5916_v63 }
 0x210   :  { %v2203_v34 = vpop.f32.mrf.mxu1  ;;  %v2344_v31 = vpop.f32.mrf.mxu2  ;;  %7114 = vmatmul.msk.bf16.gmra.mxu3 %vm1828_vm1, %v7749_v8 }
 0x211   :  { %v2489_v0 = vadd.f32 %v2488_v40, %v2344_v31  ;;  %v2059_v10 = vpop.f32.mrf.mxu0 }
 0x212   :  { %v2204_v13 = vadd.f32 %v2203_v34, %v2059_v10 }
 0x213   :  { %2539 = vmatmul.bf16.gmra.mxu1 %v7759_v11  ;;  %v5917_v44 = vadd.f32 %v7886_v62, %v2489_v0  ;;  %v2491_v16 = vpop.f32.mrf.mxu3 }
 0x214   :  { %v5924_v19 = vadd.f32 %v7874_v55, %v2204_v13  ;;  %2827 = vmatmul.bf16.gmra.mxu0 %v7759_v11 }
 0x215   :  { %6349 = vst [vmem:[%s10936_s3 + $0xb48] sm:$0xff] %v5917_v44  ;;  %7141 = vmatmul.msk.bf16.gmra.mxu2 %vm1828_vm1, %v7749_v8 }
 0x216   :  { %6356 = vst [vmem:[%s10936_s3 + $0xb80] sm:$0xff] %v5924_v19 }
 0x218   :  { %v2205_v32 = vpop.f32.mrf.mxu1  ;;  %v2347_v54 = vpop.f32.mrf.mxu2 }
 0x219   :  { %v2492_v18 = vadd.f32 %v2491_v16, %v2347_v54  ;;  %v2061_v27 = vpop.f32.mrf.mxu0 }
 0x21a   :  { %v2206_v39 = vadd.f32 %v2205_v32, %v2061_v27  ;;  %v7372_v27 = vld [vmem:[%s10933_s1 + $0x16c] sm:$0xf0] }
 0x21b   :  { %v5925_v40 = vadd.f32 %v7886_v62, %v2492_v18  ;;  %v2493_v63 = vpop.f32.mrf.mxu3  ;;  %v6818_v18 = vld [vmem:[%s10933_s1 + $0x150] sm:$0xf] }
 0x21c   :  { %v5932_v34 = vadd.f32 %v7874_v55, %v2206_v39  ;;  %v6819_v39 = vor.u32 %v7372_v27, %v6818_v18 }
 0x21d   :  { %6357 = vst [vmem:[%s10936_s3 + $0xb88] sm:$0xff] %v5925_v40  ;;  %v7368_v40 = vld [vmem:[%s10933_s1 + $0x154] sm:$0xf] }
 0x21e   :  { %6364 = vst [vmem:[%s10936_s3 + $0xbc0] sm:$0xff] %v5932_v34  ;;  %3089 = vmatpush.bf16.msra.mxu1 %v6819_v39 }
 0x220   :  { %v2208_v31 = vpop.f32.mrf.mxu1  ;;  %v2349_v0 = vpop.f32.mrf.mxu2  ;;  %7115 = vmatmul.msk.bf16.gmra.mxu3 %vm1828_vm1, %v7771_v14 }
 0x221   :  { %v2494_v10 = vadd.f32 %v2493_v63, %v2349_v0  ;;  %v2064_v13 = vpop.f32.mrf.mxu0  ;;  %v6820_v63 = vld [vmem:[%s10933_s1 + $0x170] sm:$0xf0] }
 0x222   :  { %v2209_v44 = vadd.f32 %v2208_v31, %v2064_v13  ;;  %v6823_v31 = vor.u32 %v7368_v40, %v6820_v63 }
 0x223   :  { %2544 = vmatmul.bf16.gmra.mxu1 %v7781_v17  ;;  %v5933_v16 = vadd.f32 %v7886_v62, %v2494_v10  ;;  %v2496_v19 = vpop.f32.mrf.mxu3 }
 0x224   :  { %v5940_v32 = vadd.f32 %v7874_v55, %v2209_v44  ;;  %2832 = vmatmul.bf16.gmra.mxu0 %v7781_v17 }
 0x225   :  { %6365 = vst [vmem:[%s10936_s3 + $0xbc8] sm:$0xff] %v5933_v16  ;;  %7142 = vmatmul.msk.bf16.gmra.mxu2 %vm1828_vm1, %v7771_v14  ;;  %3377 = vmatpush.bf16.msra.mxu0 %v6823_v31 }
 0x226   :  { %6372 = vst [vmem:[%s10936_s3 + $0xc00] sm:$0xff] %v5940_v32 }
 0x228   :  { %v2210_v54 = vpop.f32.mrf.mxu1  ;;  %v2352_v34 = vpop.f32.mrf.mxu2 }
 0x229   :  { %v2497_v0 = vadd.f32 %v2496_v19, %v2352_v34  ;;  %v2066_v10 = vpop.f32.mrf.mxu0 }
 0x22a   :  { %v2211_v13 = vadd.f32 %v2210_v54, %v2066_v10 }
 0x22b   :  { %v5941_v44 = vadd.f32 %v7886_v62, %v2497_v0  ;;  %v2498_v16 = vpop.f32.mrf.mxu3 }
 0x22c   :  { %v5948_v32 = vadd.f32 %v7874_v55, %v2211_v13 }
 0x22d   :  { %6373 = vst [vmem:[%s10936_s3 + $0xc08] sm:$0xff] %v5941_v44 }
 0x22e   :  { %6380 = vst [vmem:[%s10936_s3 + $0xc40] sm:$0xff] %v5948_v32 }
 0x230   :  { %v2213_v18 = vpop.f32.mrf.mxu1  ;;  %v2354_v27 = vpop.f32.mrf.mxu2  ;;  %7116 = vmatmul.msk.bf16.gmra.mxu3 %vm1828_vm1, %v7805_v26 }
 0x231   :  { %v2499_v19 = vadd.f32 %v2498_v16, %v2354_v27  ;;  %v2069_v54 = vpop.f32.mrf.mxu0 }
 0x232   :  { %v2214_v39 = vadd.f32 %v2213_v18, %v2069_v54 }
 0x233   :  { %2549 = vmatmul.bf16.gmra.mxu1 %v7815_v29  ;;  %v5949_v40 = vadd.f32 %v7886_v62, %v2499_v19  ;;  %v2501_v63 = vpop.f32.mrf.mxu3 }
 0x234   :  { %v5956_v34 = vadd.f32 %v7874_v55, %v2214_v39  ;;  %2837 = vmatmul.bf16.gmra.mxu0 %v7815_v29 }
 0x235   :  { %6381 = vst [vmem:[%s10936_s3 + $0xc48] sm:$0xff] %v5949_v40  ;;  %7143 = vmatmul.msk.bf16.gmra.mxu2 %vm1828_vm1, %v7805_v26 }
 0x236   :  { %6388 = vst [vmem:[%s10936_s3 + $0xc80] sm:$0xff] %v5956_v34 }
 0x238   :  { %v2215_v31 = vpop.f32.mrf.mxu1  ;;  %v2357_v0 = vpop.f32.mrf.mxu2 }
 0x239   :  { %v2502_v10 = vadd.f32 %v2501_v63, %v2357_v0  ;;  %v2071_v13 = vpop.f32.mrf.mxu0 }
 0x23a   :  { %v2216_v44 = vadd.f32 %v2215_v31, %v2071_v13  ;;  %v7010_v13 = vld [vmem:[%s10933_s1 + $0x2d0] sm:$0xf] }
 0x23b   :  { %v5957_v16 = vadd.f32 %v7886_v62, %v2502_v10  ;;  %v2503_v32 = vpop.f32.mrf.mxu3 }
 0x23c   :  { %v5964_v18 = vadd.f32 %v7874_v55, %v2216_v44  ;;  %v7420_v44 = vld [vmem:[%s10933_s1 + $0x2ec] sm:$0xf0] }
 0x23d   :  { %6389 = vst [vmem:[%s10936_s3 + $0xc88] sm:$0xff] %v5957_v16  ;;  %v7416_v16 = vld [vmem:[%s10933_s1 + $0x2d4] sm:$0xf] }
 0x23e   :  { %6396 = vst [vmem:[%s10936_s3 + $0xcc0] sm:$0xff] %v5964_v18 }
 0x240   :  { %v2218_v27 = vpop.f32.mrf.mxu1  ;;  %v2359_v19 = vpop.f32.mrf.mxu2  ;;  %7117 = vmatmul.msk.bf16.gmra.mxu3 %vm1828_vm1, %v7827_v33 }
 0x241   :  { %v2504_v54 = vadd.f32 %v2503_v32, %v2359_v19  ;;  %v2074_v39 = vpop.f32.mrf.mxu0  ;;  %v7012_v19 = vld [vmem:[%s10933_s1 + $0x2f0] sm:$0xf0] }
 0x242   :  { %v2219_v40 = vadd.f32 %v2218_v27, %v2074_v39  ;;  %v7011_v27 = vor.u32 %v7420_v44, %v7010_v13  ;;  %v7015_v39 = vor.u32 %v7416_v16, %v7012_v19 }
 0x243   :  { %2554 = vmatmul.bf16.gmra.mxu1 %v7837_v36  ;;  %v5965_v63 = vadd.f32 %v7886_v62, %v2504_v54  ;;  %v2506_v34 = vpop.f32.mrf.mxu3 }
 0x244   :  { %v5972_v31 = vadd.f32 %v7874_v55, %v2219_v40  ;;  %2842 = vmatmul.bf16.gmra.mxu0 %v7837_v36  ;;  %3235 = vmatpush.bf16.msra.mxu3 %v7011_v27 }
 0x245   :  { %6397 = vst [vmem:[%s10936_s3 + $0xcc8] sm:$0xff] %v5965_v63  ;;  %7144 = vmatmul.msk.bf16.gmra.mxu2 %vm1828_vm1, %v7827_v33 }
 0x246   :  { %6404 = vst [vmem:[%s10936_s3 + $0xd00] sm:$0xff] %v5972_v31  ;;  %3523 = vmatpush.bf16.msra.mxu2 %v7015_v39 }
 0x248   :  { %v2220_v0 = vpop.f32.mrf.mxu1  ;;  %v2362_v10 = vpop.f32.mrf.mxu2 }
 0x249   :  { %v2507_v32 = vadd.f32 %v2506_v34, %v2362_v10  ;;  %v2076_v18 = vpop.f32.mrf.mxu0 }
 0x24a   :  { %v2221_v54 = vadd.f32 %v2220_v0, %v2076_v18 }
 0x24b   :  { %v5973_v40 = vadd.f32 %v7886_v62, %v2507_v32  ;;  %v2508_v63 = vpop.f32.mrf.mxu3 }
 0x24c   :  { %v5980_v31 = vadd.f32 %v7874_v55, %v2221_v54  ;;  %v7430_v55 = vld [vmem:[%s10935_s2] sm:$0xff] }
 0x24d   :  { %6405 = vst [vmem:[%s10936_s3 + $0xd08] sm:$0xff] %v5973_v40  ;;  %v8923_v44 = vperm.slane %v7430_v55, 2  ;;  %v8933_v54 = vperm.slane %v7430_v55, 3  ;;  %v6786_v55 = vld [vmem:[%s10933_s1 + $0x110] sm:$0xf] }
 0x24e   :  { %6412 = vst [vmem:[%s10936_s3 + $0xd40] sm:$0xff] %v5980_v31 }
 0x250   :  { %v2520_v34 = vpop.f32.mrf.mxu1  ;;  %v2364_v10 = vpop.f32.mrf.mxu2  ;;  %7118 = vmatmul.msk.bf16.gmra.mxu3 %vm1828_vm1, %v7861_v49 }
 0x251   :  { %v2509_v0 = vadd.f32 %v2508_v63, %v2364_v10  ;;  %v2808_v13 = vpop.f32.mrf.mxu0 }
 0x253   :  { %2559 = vmatmul.bf16.gmra.mxu1 %v7876_v56  ;;  %v5981_v16 = vadd.f32 %v7886_v62, %v2509_v0  ;;  %v2664_v32 = vpop.f32.mrf.mxu3 }
 0x254   :  { %v2665_v18 = vadd.f32 %v2664_v32, %v2520_v34  ;;  %2847 = vmatmul.bf16.gmra.mxu0 %v7876_v56 }
 0x255   :  { %6413 = vst [vmem:[%s10936_s3 + $0xd48] sm:$0xff] %v5981_v16  ;;  %7145 = vmatmul.msk.bf16.gmra.mxu2 %vm1828_vm1, %v7861_v49  ;;  %v7364_v16 = vld [vmem:[%s10933_s1 + $0x12c] sm:$0xf0] }
 0x256   :  { %v5558_v27 = vadd.f32 %v8923_v44, %v2665_v18 }
 0x258   :  { %v2522_v19 = vpop.f32.mrf.mxu1  ;;  %5990 = vst [vmem:[%s10936_s3 + $0x10] sm:$0xff] %v5558_v27  ;;  %v2952_v62 = vpop.f32.mrf.mxu2  ;;  %v6787_v27 = vor.u32 %v7364_v16, %v6786_v55 }
 0x259   :  { %v2953_v39 = vadd.f32 %v2952_v62, %v2808_v13  ;;  %v2810_v40 = vpop.f32.mrf.mxu0  ;;  %v6788_v62 = vld [vmem:[%s10933_s1 + $0x130] sm:$0xf0] }
 0x25a   :  { %3090 = vmatpush.bf16.msra.mxu1 %v6787_v27 }
 0x25b   :  { %v5559_v63 = vadd.f32 %v8933_v54, %v2953_v39  ;;  %v2666_v31 = vpop.f32.mrf.mxu3 }
 0x25c   :  { %v2667_v34 = vadd.f32 %v2666_v31, %v2522_v19  ;;  %v7360_v19 = vld [vmem:[%s10933_s1 + $0x114] sm:$0xf] }
 0x25d   :  { %5991 = vst [vmem:[%s10936_s3 + $0x18] sm:$0xff] %v5559_v63  ;;  %v6791_v39 = vor.u32 %v7360_v19, %v6788_v62 }
 0x25e   :  { %v5566_v10 = vadd.f32 %v8923_v44, %v2667_v34 }
 0x25f   :  { %3378 = vmatpush.bf16.msra.mxu0 %v6791_v39 }
 0x260   :  { %v2525_v0 = vpop.f32.mrf.mxu1  ;;  %5998 = vst [vmem:[%s10936_s3 + $0x50] sm:$0xff] %v5566_v10  ;;  %7119 = vmatmul.msk.bf16.gmra.mxu3 %vm1828_vm1, %v7896_v12  ;;  %v2954_v13 = vpop.f32.mrf.mxu2 }
 0x261   :  { %v2955_v32 = vadd.f32 %v2954_v13, %v2810_v40  ;;  %v2813_v18 = vpop.f32.mrf.mxu0 }
 0x263   :  { %2564 = vmatmul.bf16.gmra.mxu1 %v7924_v24  ;;  %v5567_v63 = vadd.f32 %v8933_v54, %v2955_v32  ;;  %v2669_v31 = vpop.f32.mrf.mxu3 }
 0x264   :  { %v2670_v34 = vadd.f32 %v2669_v31, %v2525_v0  ;;  %2852 = vmatmul.bf16.gmra.mxu0 %v7924_v24 }
 0x265   :  { %5999 = vst [vmem:[%s10936_s3 + $0x58] sm:$0xff] %v5567_v63  ;;  %7146 = vmatmul.msk.bf16.gmra.mxu2 %vm1828_vm1, %v7896_v12 }
 0x266   :  { %v5574_v40 = vadd.f32 %v8923_v44, %v2670_v34 }
 0x268   :  { %v2527_v10 = vpop.f32.mrf.mxu1  ;;  %6006 = vst [vmem:[%s10936_s3 + $0x90] sm:$0xff] %v5574_v40  ;;  %v2957_v13 = vpop.f32.mrf.mxu2 }
 0x269   :  { %v2958_v55 = vadd.f32 %v2957_v13, %v2813_v18  ;;  %v2815_v0 = vpop.f32.mrf.mxu0 }
 0x26b   :  { %v5575_v16 = vadd.f32 %v8933_v54, %v2958_v55  ;;  %v2671_v32 = vpop.f32.mrf.mxu3 }
 0x26c   :  { %v2672_v27 = vadd.f32 %v2671_v32, %v2527_v10 }
 0x26d   :  { %6007 = vst [vmem:[%s10936_s3 + $0x98] sm:$0xff] %v5575_v16 }
 0x26e   :  { %v5582_v19 = vadd.f32 %v8923_v44, %v2672_v27 }
 0x270   :  { %v2530_v62 = vpop.f32.mrf.mxu1  ;;  %6014 = vst [vmem:[%s10936_s3 + $0xd0] sm:$0xff] %v5582_v19  ;;  %7120 = vmatmul.msk.bf16.gmra.mxu3 %vm1828_vm1, %v7946_v53  ;;  %v2959_v18 = vpop.f32.mrf.mxu2 }
 0x271   :  { %v2960_v39 = vadd.f32 %v2959_v18, %v2815_v0  ;;  %v2818_v63 = vpop.f32.mrf.mxu0 }
 0x273   :  { %2569 = vmatmul.bf16.gmra.mxu1 %v7962_v60  ;;  %v5583_v31 = vadd.f32 %v8933_v54, %v2960_v39  ;;  %v2674_v34 = vpop.f32.mrf.mxu3 }
 0x274   :  { %v2675_v40 = vadd.f32 %v2674_v34, %v2530_v62  ;;  %2857 = vmatmul.bf16.gmra.mxu0 %v7962_v60 }
 0x275   :  { %6015 = vst [vmem:[%s10936_s3 + $0xd8] sm:$0xff] %v5583_v31  ;;  %7147 = vmatmul.msk.bf16.gmra.mxu2 %vm1828_vm1, %v7946_v53 }
 0x276   :  { %v5590_v10 = vadd.f32 %v8923_v44, %v2675_v40 }
 0x278   :  { %v2532_v13 = vpop.f32.mrf.mxu1  ;;  %6022 = vst [vmem:[%s10936_s3 + $0x110] sm:$0xff] %v5590_v10  ;;  %v2962_v55 = vpop.f32.mrf.mxu2 }
 0x279   :  { %v2963_v0 = vadd.f32 %v2962_v55, %v2818_v63  ;;  %v2820_v16 = vpop.f32.mrf.mxu0 }
 0x27b   :  { %v5591_v32 = vadd.f32 %v8933_v54, %v2963_v0  ;;  %v2676_v27 = vpop.f32.mrf.mxu3 }
 0x27c   :  { %v2677_v19 = vadd.f32 %v2676_v27, %v2532_v13 }
 0x27d   :  { %6023 = vst [vmem:[%s10936_s3 + $0x118] sm:$0xff] %v5591_v32 }
 0x27e   :  { %v5598_v62 = vadd.f32 %v8923_v44, %v2677_v19 }
 0x280   :  { %v2535_v18 = vpop.f32.mrf.mxu1  ;;  %6030 = vst [vmem:[%s10936_s3 + $0x150] sm:$0xff] %v5598_v62  ;;  %7121 = vmatmul.msk.bf16.gmra.mxu3 %vm1828_vm1, %v7984_v21  ;;  %v2964_v39 = vpop.f32.mrf.mxu2 }
 0x281   :  { %v2965_v63 = vadd.f32 %v2964_v39, %v2820_v16  ;;  %v2823_v31 = vpop.f32.mrf.mxu0 }
 0x283   :  { %2574 = vmatmul.bf16.gmra.mxu1 %v8000_v28  ;;  %v5599_v34 = vadd.f32 %v8933_v54, %v2965_v63  ;;  %v2679_v40 = vpop.f32.mrf.mxu3 }
 0x284   :  { %v2680_v10 = vadd.f32 %v2679_v40, %v2535_v18  ;;  %2862 = vmatmul.bf16.gmra.mxu0 %v8000_v28 }
 0x285   :  { %6031 = vst [vmem:[%s10936_s3 + $0x158] sm:$0xff] %v5599_v34  ;;  %7148 = vmatmul.msk.bf16.gmra.mxu2 %vm1828_vm1, %v7984_v21  ;;  %v7412_v34 = vld [vmem:[%s10933_s1 + $0x2ac] sm:$0xf0] }
 0x286   :  { %v5606_v13 = vadd.f32 %v8923_v44, %v2680_v10 }
 0x288   :  { %v2537_v55 = vpop.f32.mrf.mxu1  ;;  %6038 = vst [vmem:[%s10936_s3 + $0x190] sm:$0xff] %v5606_v13  ;;  %v2967_v0 = vpop.f32.mrf.mxu2 }
 0x289   :  { %v2968_v16 = vadd.f32 %v2967_v0, %v2823_v31  ;;  %v2825_v32 = vpop.f32.mrf.mxu0  ;;  %v6978_v31 = vld [vmem:[%s10933_s1 + $0x290] sm:$0xf]  ;;  %v6980_v0 = vld [vmem:[%s10933_s1 + $0x2b0] sm:$0xf0] }
 0x28a   :  { %v6979_v13 = vor.u32 %v7412_v34, %v6978_v31  ;;  %v7356_v31 = vld [vmem:[%s10933_s1 + $0xec] sm:$0xf0] }
 0x28b   :  { %v5607_v27 = vadd.f32 %v8933_v54, %v2968_v16  ;;  %v2681_v19 = vpop.f32.mrf.mxu3 }
 0x28c   :  { %v2682_v62 = vadd.f32 %v2681_v19, %v2537_v55  ;;  %v7408_v55 = vld [vmem:[%s10933_s1 + $0x294] sm:$0xf]  ;;  %3236 = vmatpush.bf16.msra.mxu3 %v6979_v13 }
 0x28d   :  { %6039 = vst [vmem:[%s10936_s3 + $0x198] sm:$0xff] %v5607_v27  ;;  %v6983_v16 = vor.u32 %v7408_v55, %v6980_v0  ;;  %v7352_v55 = vld [vmem:[%s10933_s1 + $0xd4] sm:$0xf] }
 0x28e   :  { %v5614_v18 = vadd.f32 %v8923_v44, %v2682_v62  ;;  %v6756_v0 = vld [vmem:[%s10933_s1 + $0xf0] sm:$0xf0] }
 0x28f   :  { %3524 = vmatpush.bf16.msra.mxu2 %v6983_v16  ;;  %v6759_v16 = vor.u32 %v7352_v55, %v6756_v0 }
 0x290   :  { %v2540_v39 = vpop.f32.mrf.mxu1  ;;  %6046 = vst [vmem:[%s10936_s3 + $0x1d0] sm:$0xff] %v5614_v18  ;;  %7122 = vmatmul.msk.bf16.gmra.mxu3 %vm1828_vm1, %v8022_v58  ;;  %v2969_v63 = vpop.f32.mrf.mxu2 }
 0x291   :  { %v2970_v40 = vadd.f32 %v2969_v63, %v2825_v32  ;;  %v2828_v10 = vpop.f32.mrf.mxu0  ;;  %3379 = vmatpush.bf16.msra.mxu0 %v6759_v16 }
 0x293   :  { %2579 = vmatmul.bf16.gmra.mxu1 %v8050_v9  ;;  %v5615_v27 = vadd.f32 %v8933_v54, %v2970_v40  ;;  %v2684_v19 = vpop.f32.mrf.mxu3 }
 0x294   :  { %v2685_v62 = vadd.f32 %v2684_v19, %v2540_v39  ;;  %2867 = vmatmul.bf16.gmra.mxu0 %v8050_v9  ;;  %v6754_v39 = vld [vmem:[%s10933_s1 + $0xd0] sm:$0xf] }
 0x295   :  { %6047 = vst [vmem:[%s10936_s3 + $0x1d8] sm:$0xff] %v5615_v27  ;;  %7149 = vmatmul.msk.bf16.gmra.mxu2 %vm1828_vm1, %v8022_v58  ;;  %v6755_v13 = vor.u32 %v7356_v31, %v6754_v39 }
 0x296   :  { %v5622_v32 = vadd.f32 %v8923_v44, %v2685_v62 }
 0x297   :  { %3091 = vmatpush.bf16.msra.mxu1 %v6755_v13 }
 0x298   :  { %v2542_v18 = vpop.f32.mrf.mxu1  ;;  %6054 = vst [vmem:[%s10936_s3 + $0x210] sm:$0xff] %v5622_v32  ;;  %v2972_v63 = vpop.f32.mrf.mxu2 }
 0x299   :  { %v2973_v34 = vadd.f32 %v2972_v63, %v2828_v10  ;;  %v2830_v40 = vpop.f32.mrf.mxu0 }
 0x29b   :  { %v5623_v27 = vadd.f32 %v8933_v54, %v2973_v34  ;;  %v2686_v19 = vpop.f32.mrf.mxu3 }
 0x29c   :  { %v2687_v62 = vadd.f32 %v2686_v19, %v2542_v18 }
 0x29d   :  { %6055 = vst [vmem:[%s10936_s3 + $0x218] sm:$0xff] %v5623_v27 }
 0x29e   :  { %v5630_v10 = vadd.f32 %v8923_v44, %v2687_v62 }
 0x2a0   :  { %v2545_v32 = vpop.f32.mrf.mxu1  ;;  %6062 = vst [vmem:[%s10936_s3 + $0x250] sm:$0xff] %v5630_v10  ;;  %7123 = vmatmul.msk.bf16.gmra.mxu3 %vm1828_vm1, %v8084_v50  ;;  %v2974_v63 = vpop.f32.mrf.mxu2 }
 0x2a1   :  { %v2975_v39 = vadd.f32 %v2974_v63, %v2830_v40  ;;  %v2833_v31 = vpop.f32.mrf.mxu0 }
 0x2a3   :  { %2584 = vmatmul.bf16.gmra.mxu1 %v8100_v61  ;;  %v5631_v18 = vadd.f32 %v8933_v54, %v2975_v39  ;;  %v2689_v34 = vpop.f32.mrf.mxu3 }
 0x2a4   :  { %v2690_v13 = vadd.f32 %v2689_v34, %v2545_v32  ;;  %2872 = vmatmul.bf16.gmra.mxu0 %v8100_v61 }
 0x2a5   :  { %6063 = vst [vmem:[%s10936_s3 + $0x258] sm:$0xff] %v5631_v18  ;;  %7150 = vmatmul.msk.bf16.gmra.mxu2 %vm1828_vm1, %v8084_v50 }
 0x2a6   :  { %v5638_v55 = vadd.f32 %v8923_v44, %v2690_v13 }
 0x2a8   :  { %v2547_v0 = vpop.f32.mrf.mxu1  ;;  %6070 = vst [vmem:[%s10936_s3 + $0x290] sm:$0xff] %v5638_v55  ;;  %v2977_v40 = vpop.f32.mrf.mxu2 }
 0x2a9   :  { %v2978_v16 = vadd.f32 %v2977_v40, %v2833_v31  ;;  %v2835_v27 = vpop.f32.mrf.mxu0 }
 0x2ab   :  { %v5639_v19 = vadd.f32 %v8933_v54, %v2978_v16  ;;  %v2691_v62 = vpop.f32.mrf.mxu3 }
 0x2ac   :  { %v2692_v10 = vadd.f32 %v2691_v62, %v2547_v0 }
 0x2ad   :  { %6071 = vst [vmem:[%s10936_s3 + $0x298] sm:$0xff] %v5639_v19 }
 0x2ae   :  { %v5646_v32 = vadd.f32 %v8923_v44, %v2692_v10 }
 0x2b0   :  { %v2550_v63 = vpop.f32.mrf.mxu1  ;;  %6078 = vst [vmem:[%s10936_s3 + $0x2d0] sm:$0xff] %v5646_v32  ;;  %7124 = vmatmul.msk.bf16.gmra.mxu3 %vm1828_vm1, %v8122_v25  ;;  %v2979_v39 = vpop.f32.mrf.mxu2 }
 0x2b1   :  { %v2980_v31 = vadd.f32 %v2979_v39, %v2835_v27  ;;  %v2838_v18 = vpop.f32.mrf.mxu0 }
 0x2b3   :  { %2589 = vmatmul.bf16.gmra.mxu1 %v8138_v35  ;;  %v5647_v34 = vadd.f32 %v8933_v54, %v2980_v31  ;;  %v2694_v13 = vpop.f32.mrf.mxu3 }
 0x2b4   :  { %v2695_v55 = vadd.f32 %v2694_v13, %v2550_v63  ;;  %2877 = vmatmul.bf16.gmra.mxu0 %v8138_v35 }
 0x2b5   :  { %6079 = vst [vmem:[%s10936_s3 + $0x2d8] sm:$0xff] %v5647_v34  ;;  %7151 = vmatmul.msk.bf16.gmra.mxu2 %vm1828_vm1, %v8122_v25 }
 0x2b6   :  { %v5654_v0 = vadd.f32 %v8923_v44, %v2695_v55 }
 0x2b8   :  { %v2552_v40 = vpop.f32.mrf.mxu1  ;;  %6086 = vst [vmem:[%s10936_s3 + $0x310] sm:$0xff] %v5654_v0  ;;  %v2982_v16 = vpop.f32.mrf.mxu2 }
 0x2b9   :  { %v2983_v27 = vadd.f32 %v2982_v16, %v2838_v18  ;;  %v2840_v19 = vpop.f32.mrf.mxu0 }
 0x2bb   :  { %v5655_v62 = vadd.f32 %v8933_v54, %v2983_v27  ;;  %v2696_v10 = vpop.f32.mrf.mxu3 }
 0x2bc   :  { %v2697_v32 = vadd.f32 %v2696_v10, %v2552_v40 }
 0x2bd   :  { %6087 = vst [vmem:[%s10936_s3 + $0x318] sm:$0xff] %v5655_v62 }
 0x2be   :  { %v5662_v63 = vadd.f32 %v8923_v44, %v2697_v32 }
 0x2c0   :  { %v2555_v39 = vpop.f32.mrf.mxu1  ;;  %6094 = vst [vmem:[%s10936_s3 + $0x350] sm:$0xff] %v5662_v63  ;;  %7125 = vmatmul.msk.bf16.gmra.mxu3 %vm1828_vm1, %v8160_v4  ;;  %v2984_v31 = vpop.f32.mrf.mxu2 }
 0x2c1   :  { %v2985_v18 = vadd.f32 %v2984_v31, %v2840_v19  ;;  %v2843_v34 = vpop.f32.mrf.mxu0  ;;  %v7348_v31 = vld [vmem:[%s10933_s1 + $0xac] sm:$0xf0] }
 0x2c3   :  { %2594 = vmatmul.bf16.gmra.mxu1 %v8176_v15  ;;  %v5663_v13 = vadd.f32 %v8933_v54, %v2985_v18  ;;  %v2699_v55 = vpop.f32.mrf.mxu3 }
 0x2c4   :  { %v2700_v0 = vadd.f32 %v2699_v55, %v2555_v39  ;;  %2882 = vmatmul.bf16.gmra.mxu0 %v8176_v15  ;;  %v6722_v39 = vld [vmem:[%s10933_s1 + $0x90] sm:$0xf]  ;;  %v7344_v55 = vld [vmem:[%s10933_s1 + $0x94] sm:$0xf] }
 0x2c5   :  { %6095 = vst [vmem:[%s10936_s3 + $0x358] sm:$0xff] %v5663_v13  ;;  %7152 = vmatmul.msk.bf16.gmra.mxu2 %vm1828_vm1, %v8160_v4  ;;  %v6723_v13 = vor.u32 %v7348_v31, %v6722_v39 }
 0x2c6   :  { %v5670_v40 = vadd.f32 %v8923_v44, %v2700_v0  ;;  %v6724_v0 = vld [vmem:[%s10933_s1 + $0xb0] sm:$0xf0] }
 0x2c7   :  { %3092 = vmatpush.bf16.msra.mxu1 %v6723_v13 }
 0x2c8   :  { %v2557_v16 = vpop.f32.mrf.mxu1  ;;  %6102 = vst [vmem:[%s10936_s3 + $0x390] sm:$0xff] %v5670_v40  ;;  %v2987_v27 = vpop.f32.mrf.mxu2  ;;  %v6727_v40 = vor.u32 %v7344_v55, %v6724_v0 }
 0x2c9   :  { %v2988_v19 = vadd.f32 %v2987_v27, %v2843_v34  ;;  %v2845_v62 = vpop.f32.mrf.mxu0 }
 0x2ca   :  { %3380 = vmatpush.bf16.msra.mxu0 %v6727_v40  ;;  %v7400_v40 = vld [vmem:[%s10933_s1 + $0x254] sm:$0xf] }
 0x2cb   :  { %v5671_v10 = vadd.f32 %v8933_v54, %v2988_v19  ;;  %v2701_v32 = vpop.f32.mrf.mxu3 }
 0x2cc   :  { %v2702_v63 = vadd.f32 %v2701_v32, %v2557_v16 }
 0x2cd   :  { %6103 = vst [vmem:[%s10936_s3 + $0x398] sm:$0xff] %v5671_v10 }
 0x2ce   :  { %v5678_v18 = vadd.f32 %v8923_v44, %v2702_v63 }
 0x2d0   :  { %v2560_v34 = vpop.f32.mrf.mxu1  ;;  %6110 = vst [vmem:[%s10936_s3 + $0x3d0] sm:$0xff] %v5678_v18  ;;  %7126 = vmatmul.msk.bf16.gmra.mxu3 %vm1828_vm1, %v8198_v46  ;;  %v2989_v16 = vpop.f32.mrf.mxu2  ;;  %v6946_v18 = vld [vmem:[%s10933_s1 + $0x250] sm:$0xf] }
 0x2d1   :  { %v2990_v27 = vadd.f32 %v2989_v16, %v2845_v62  ;;  %v2848_v19 = vpop.f32.mrf.mxu0  ;;  %v6948_v16 = vld [vmem:[%s10933_s1 + $0x270] sm:$0xf0] }
 0x2d3   :  { %2599 = vmatmul.bf16.gmra.mxu1 %v8226_v7  ;;  %v5679_v10 = vadd.f32 %v8933_v54, %v2990_v27  ;;  %v2704_v32 = vpop.f32.mrf.mxu3  ;;  %v6951_v27 = vor.u32 %v7400_v40, %v6948_v16 }
 0x2d4   :  { %v2705_v63 = vadd.f32 %v2704_v32, %v2560_v34  ;;  %2887 = vmatmul.bf16.gmra.mxu0 %v8226_v7  ;;  %v7404_v34 = vld [vmem:[%s10933_s1 + $0x26c] sm:$0xf0] }
 0x2d5   :  { %6111 = vst [vmem:[%s10936_s3 + $0x3d8] sm:$0xff] %v5679_v10  ;;  %7153 = vmatmul.msk.bf16.gmra.mxu2 %vm1828_vm1, %v8198_v46  ;;  %v6947_v0 = vor.u32 %v7404_v34, %v6946_v18 }
 0x2d6   :  { %v5686_v39 = vadd.f32 %v8923_v44, %v2705_v63  ;;  %3525 = vmatpush.bf16.msra.mxu2 %v6951_v27 }
 0x2d7   :  { %3237 = vmatpush.bf16.msra.mxu3 %v6947_v0 }
 0x2d8   :  { %v2562_v62 = vpop.f32.mrf.mxu1  ;;  %6118 = vst [vmem:[%s10936_s3 + $0x410] sm:$0xff] %v5686_v39  ;;  %v2992_v31 = vpop.f32.mrf.mxu2 }
 0x2d9   :  { %v2993_v13 = vadd.f32 %v2992_v31, %v2848_v19  ;;  %v2850_v55 = vpop.f32.mrf.mxu0 }
 0x2db   :  { %v5687_v10 = vadd.f32 %v8933_v54, %v2993_v13  ;;  %v2706_v32 = vpop.f32.mrf.mxu3 }
 0x2dc   :  { %v2707_v63 = vadd.f32 %v2706_v32, %v2562_v62 }
 0x2dd   :  { %6119 = vst [vmem:[%s10936_s3 + $0x418] sm:$0xff] %v5687_v10 }
 0x2de   :  { %v5694_v19 = vadd.f32 %v8923_v44, %v2707_v63 }
 0x2e0   :  { %v2565_v39 = vpop.f32.mrf.mxu1  ;;  %6126 = vst [vmem:[%s10936_s3 + $0x450] sm:$0xff] %v5694_v19  ;;  %7127 = vmatmul.msk.bf16.gmra.mxu3 %vm1828_vm1, %v8260_v59  ;;  %v2994_v31 = vpop.f32.mrf.mxu2 }
 0x2e1   :  { %v2995_v18 = vadd.f32 %v2994_v31, %v2850_v55  ;;  %v2853_v34 = vpop.f32.mrf.mxu0 }
 0x2e3   :  { %2604 = vmatmul.bf16.gmra.mxu1 %v8276_v6  ;;  %v5695_v62 = vadd.f32 %v8933_v54, %v2995_v18  ;;  %v2709_v13 = vpop.f32.mrf.mxu3 }
 0x2e4   :  { %v2710_v0 = vadd.f32 %v2709_v13, %v2565_v39  ;;  %2892 = vmatmul.bf16.gmra.mxu0 %v8276_v6 }
 0x2e5   :  { %6127 = vst [vmem:[%s10936_s3 + $0x458] sm:$0xff] %v5695_v62  ;;  %7154 = vmatmul.msk.bf16.gmra.mxu2 %vm1828_vm1, %v8260_v59 }
 0x2e6   :  { %v5702_v40 = vadd.f32 %v8923_v44, %v2710_v0 }
 0x2e8   :  { %v2567_v16 = vpop.f32.mrf.mxu1  ;;  %6134 = vst [vmem:[%s10936_s3 + $0x490] sm:$0xff] %v5702_v40  ;;  %v2997_v55 = vpop.f32.mrf.mxu2 }
 0x2e9   :  { %v2998_v27 = vadd.f32 %v2997_v55, %v2853_v34  ;;  %v2855_v10 = vpop.f32.mrf.mxu0 }
 0x2eb   :  { %v5703_v32 = vadd.f32 %v8933_v54, %v2998_v27  ;;  %v2711_v63 = vpop.f32.mrf.mxu3 }
 0x2ec   :  { %v2712_v19 = vadd.f32 %v2711_v63, %v2567_v16 }
 0x2ed   :  { %6135 = vst [vmem:[%s10936_s3 + $0x498] sm:$0xff] %v5703_v32 }
 0x2ee   :  { %v5710_v39 = vadd.f32 %v8923_v44, %v2712_v19 }
 0x2f0   :  { %v2570_v31 = vpop.f32.mrf.mxu1  ;;  %6142 = vst [vmem:[%s10936_s3 + $0x4d0] sm:$0xff] %v5710_v39  ;;  %7128 = vmatmul.msk.bf16.gmra.mxu3 %vm1828_vm1, %v8298_v43  ;;  %v2999_v18 = vpop.f32.mrf.mxu2 }
 0x2f1   :  { %v3000_v34 = vadd.f32 %v2999_v18, %v2855_v10  ;;  %v2858_v62 = vpop.f32.mrf.mxu0 }
 0x2f3   :  { %2609 = vmatmul.bf16.gmra.mxu1 %v8314_v57  ;;  %v5711_v13 = vadd.f32 %v8933_v54, %v3000_v34  ;;  %v2714_v0 = vpop.f32.mrf.mxu3 }
 0x2f4   :  { %v2715_v40 = vadd.f32 %v2714_v0, %v2570_v31  ;;  %2897 = vmatmul.bf16.gmra.mxu0 %v8314_v57 }
 0x2f5   :  { %6143 = vst [vmem:[%s10936_s3 + $0x4d8] sm:$0xff] %v5711_v13  ;;  %7155 = vmatmul.msk.bf16.gmra.mxu2 %vm1828_vm1, %v8298_v43  ;;  %v7340_v13 = vld [vmem:[%s10933_s1 + $0x6c] sm:$0xf0] }
 0x2f6   :  { %v5718_v16 = vadd.f32 %v8923_v44, %v2715_v40 }
 0x2f8   :  { %v2572_v55 = vpop.f32.mrf.mxu1  ;;  %6150 = vst [vmem:[%s10936_s3 + $0x510] sm:$0xff] %v5718_v16  ;;  %v3002_v27 = vpop.f32.mrf.mxu2 }
 0x2f9   :  { %v3003_v10 = vadd.f32 %v3002_v27, %v2858_v62  ;;  %v2860_v32 = vpop.f32.mrf.mxu0  ;;  %v6690_v62 = vld [vmem:[%s10933_s1 + $0x50] sm:$0xf]  ;;  %v6692_v27 = vld [vmem:[%s10933_s1 + $0x70] sm:$0xf0] }
 0x2fa   :  { %v6691_v16 = vor.u32 %v7340_v13, %v6690_v62 }
 0x2fb   :  { %v5719_v63 = vadd.f32 %v8933_v54, %v3003_v10  ;;  %v2716_v19 = vpop.f32.mrf.mxu3 }
 0x2fc   :  { %v2717_v39 = vadd.f32 %v2716_v19, %v2572_v55  ;;  %v7336_v55 = vld [vmem:[%s10933_s1 + $0x54] sm:$0xf]  ;;  %3093 = vmatpush.bf16.msra.mxu1 %v6691_v16 }
 0x2fd   :  { %6151 = vst [vmem:[%s10936_s3 + $0x518] sm:$0xff] %v5719_v63  ;;  %v6695_v10 = vor.u32 %v7336_v55, %v6692_v27 }
 0x2fe   :  { %v5726_v31 = vadd.f32 %v8923_v44, %v2717_v39 }
 0x2ff   :  { %3381 = vmatpush.bf16.msra.mxu0 %v6695_v10 }
 0x300   :  { %v2575_v18 = vpop.f32.mrf.mxu1  ;;  %6158 = vst [vmem:[%s10936_s3 + $0x550] sm:$0xff] %v5726_v31  ;;  %7129 = vmatmul.msk.bf16.gmra.mxu3 %vm1828_vm1, %v8336_v37  ;;  %v3004_v34 = vpop.f32.mrf.mxu2 }
 0x301   :  { %v3005_v0 = vadd.f32 %v3004_v34, %v2860_v32  ;;  %v2863_v40 = vpop.f32.mrf.mxu0 }
 0x303   :  { %2614 = vmatmul.bf16.gmra.mxu1 %v8364_v1  ;;  %v5727_v63 = vadd.f32 %v8933_v54, %v3005_v0  ;;  %v2719_v19 = vpop.f32.mrf.mxu3 }
 0x304   :  { %v2720_v39 = vadd.f32 %v2719_v19, %v2575_v18  ;;  %2902 = vmatmul.bf16.gmra.mxu0 %v8364_v1 }
 0x305   :  { %6159 = vst [vmem:[%s10936_s3 + $0x558] sm:$0xff] %v5727_v63  ;;  %7156 = vmatmul.msk.bf16.gmra.mxu2 %vm1828_vm1, %v8336_v37 }
 0x306   :  { %v5734_v32 = vadd.f32 %v8923_v44, %v2720_v39 }
 0x308   :  { %v2577_v31 = vpop.f32.mrf.mxu1  ;;  %6166 = vst [vmem:[%s10936_s3 + $0x590] sm:$0xff] %v5734_v32  ;;  %v3007_v34 = vpop.f32.mrf.mxu2 }
 0x309   :  { %v3008_v62 = vadd.f32 %v3007_v34, %v2863_v40  ;;  %v2865_v18 = vpop.f32.mrf.mxu0 }
 0x30b   :  { %v5735_v13 = vadd.f32 %v8933_v54, %v3008_v62  ;;  %v2721_v0 = vpop.f32.mrf.mxu3 }
 0x30c   :  { %v2722_v16 = vadd.f32 %v2721_v0, %v2577_v31 }
 0x30d   :  { %6167 = vst [vmem:[%s10936_s3 + $0x598] sm:$0xff] %v5735_v13 }
 0x30e   :  { %v5742_v55 = vadd.f32 %v8923_v44, %v2722_v16 }
 0x310   :  { %v2580_v27 = vpop.f32.mrf.mxu1  ;;  %6174 = vst [vmem:[%s10936_s3 + $0x5d0] sm:$0xff] %v5742_v55  ;;  %7130 = vmatmul.msk.bf16.gmra.mxu3 %vm1828_vm1, %v8386_v47  ;;  %v3009_v40 = vpop.f32.mrf.mxu2 }
 0x311   :  { %v3010_v10 = vadd.f32 %v3009_v40, %v2865_v18  ;;  %v2868_v63 = vpop.f32.mrf.mxu0 }
 0x313   :  { %2619 = vmatmul.bf16.gmra.mxu1 %v8402_v3  ;;  %v5743_v19 = vadd.f32 %v8933_v54, %v3010_v10  ;;  %v2724_v39 = vpop.f32.mrf.mxu3 }
 0x314   :  { %v2725_v32 = vadd.f32 %v2724_v39, %v2580_v27  ;;  %2907 = vmatmul.bf16.gmra.mxu0 %v8402_v3 }
 0x315   :  { %6175 = vst [vmem:[%s10936_s3 + $0x5d8] sm:$0xff] %v5743_v19  ;;  %7157 = vmatmul.msk.bf16.gmra.mxu2 %vm1828_vm1, %v8386_v47  ;;  %v7396_v19 = vld [vmem:[%s10933_s1 + $0x22c] sm:$0xf0] }
 0x316   :  { %v5750_v31 = vadd.f32 %v8923_v44, %v2725_v32 }
 0x318   :  { %v2582_v34 = vpop.f32.mrf.mxu1  ;;  %6182 = vst [vmem:[%s10936_s3 + $0x610] sm:$0xff] %v5750_v31  ;;  %v3012_v62 = vpop.f32.mrf.mxu2 }
 0x319   :  { %v3013_v18 = vadd.f32 %v3012_v62, %v2868_v63  ;;  %v2870_v13 = vpop.f32.mrf.mxu0  ;;  %v6914_v63 = vld [vmem:[%s10933_s1 + $0x210] sm:$0xf]  ;;  %v6916_v62 = vld [vmem:[%s10933_s1 + $0x230] sm:$0xf0] }
 0x31a   :  { %v6915_v31 = vor.u32 %v7396_v19, %v6914_v63 }
 0x31b   :  { %v5751_v0 = vadd.f32 %v8933_v54, %v3013_v18  ;;  %v2726_v16 = vpop.f32.mrf.mxu3 }
 0x31c   :  { %v2727_v55 = vadd.f32 %v2726_v16, %v2582_v34  ;;  %v7392_v34 = vld [vmem:[%s10933_s1 + $0x214] sm:$0xf]  ;;  %3238 = vmatpush.bf16.msra.mxu3 %v6915_v31 }
 0x31d   :  { %6183 = vst [vmem:[%s10936_s3 + $0x618] sm:$0xff] %v5751_v0  ;;  %v6919_v18 = vor.u32 %v7392_v34, %v6916_v62 }
 0x31e   :  { %v5758_v27 = vadd.f32 %v8923_v44, %v2727_v55 }
 0x31f   :  { %3526 = vmatpush.bf16.msra.mxu2 %v6919_v18 }
 0x320   :  { %v2585_v40 = vpop.f32.mrf.mxu1  ;;  %6190 = vst [vmem:[%s10936_s3 + $0x650] sm:$0xff] %v5758_v27  ;;  %7131 = vmatmul.msk.bf16.gmra.mxu3 %vm1828_vm1, %v8424_v52  ;;  %v3014_v10 = vpop.f32.mrf.mxu2 }
 0x321   :  { %v3015_v39 = vadd.f32 %v3014_v10, %v2870_v13  ;;  %v2873_v32 = vpop.f32.mrf.mxu0 }
 0x323   :  { %2624 = vmatmul.bf16.gmra.mxu1 %v8452_v22  ;;  %v5759_v0 = vadd.f32 %v8933_v54, %v3015_v39  ;;  %v2729_v16 = vpop.f32.mrf.mxu3 }
 0x324   :  { %v2730_v55 = vadd.f32 %v2729_v16, %v2585_v40  ;;  %2912 = vmatmul.bf16.gmra.mxu0 %v8452_v22  ;;  %v10972_v16 = vld [vmem:[#allocation4_spill] sm:$0xff] }
 0x325   :  { %6191 = vst [vmem:[%s10936_s3 + $0x658] sm:$0xff] %v5759_v0  ;;  %7158 = vmatmul.msk.bf16.gmra.mxu2 %vm1828_vm1, %v8424_v52 }
 0x326   :  { %v5766_v13 = vadd.f32 %v8923_v44, %v2730_v55 }
 0x328   :  { %v2587_v27 = vpop.f32.mrf.mxu1  ;;  %6198 = vst [vmem:[%s10936_s3 + $0x690] sm:$0xff] %v5766_v13  ;;  %v3017_v10 = vpop.f32.mrf.mxu2 }
 0x329   :  { %v3018_v63 = vadd.f32 %v3017_v10, %v2873_v32  ;;  %v2875_v40 = vpop.f32.mrf.mxu0 }
 0x32b   :  { %v5767_v19 = vadd.f32 %v8933_v54, %v3018_v63  ;;  %v2731_v39 = vpop.f32.mrf.mxu3 }
 0x32c   :  { %v2732_v31 = vadd.f32 %v2731_v39, %v2587_v27  ;;  %v7332_v39 = vld [vmem:[%s10933_s1 + $0x2c] sm:$0xf0] }
 0x32d   :  { %6199 = vst [vmem:[%s10936_s3 + $0x698] sm:$0xff] %v5767_v19  ;;  %v6658_v19 = vld [vmem:[%s10933_s1 + $0x10] sm:$0xf] }
 0x32e   :  { %v5774_v34 = vadd.f32 %v8923_v44, %v2732_v31 }
 0x330   :  { %v2590_v62 = vpop.f32.mrf.mxu1  ;;  %6206 = vst [vmem:[%s10936_s3 + $0x6d0] sm:$0xff] %v5774_v34  ;;  %7132 = vmatmul.msk.bf16.gmra.mxu3 %vm1828_vm1, %v8474_v20  ;;  %v3019_v32 = vpop.f32.mrf.mxu2 }
 0x331   :  { %v3020_v18 = vadd.f32 %v3019_v32, %v2875_v40  ;;  %v2878_v0 = vpop.f32.mrf.mxu0  ;;  %v7328_v32 = vld [vmem:[%s10933_s1 + $0x14] sm:$0xf] }
 0x333   :  { %2629 = vmatmul.bf16.gmra.mxu1 %v10972_v16  ;;  %v5775_v55 = vadd.f32 %v8933_v54, %v3020_v18  ;;  %v2734_v13 = vpop.f32.mrf.mxu3  ;;  %v6660_v18 = vld [vmem:[%s10933_s1 + $0x30] sm:$0xf0] }
 0x334   :  { %v2735_v27 = vadd.f32 %v2734_v13, %v2590_v62  ;;  %2917 = vmatmul.bf16.gmra.mxu0 %v10972_v16  ;;  %v6659_v62 = vor.u32 %v7332_v39, %v6658_v19  ;;  %v10973_v19 = vld [vmem:[#allocation5_spill] sm:$0xff] }
 0x335   :  { %6207 = vst [vmem:[%s10936_s3 + $0x6d8] sm:$0xff] %v5775_v55  ;;  %7159 = vmatmul.msk.bf16.gmra.mxu2 %vm1828_vm1, %v8474_v20  ;;  %v6663_v55 = vor.u32 %v7328_v32, %v6660_v18 }
 0x336   :  { %v5782_v10 = vadd.f32 %v8923_v44, %v2735_v27  ;;  %3094 = vmatpush.bf16.msra.mxu1 %v6659_v62  ;;  %v10974_v62 = vld [vmem:[#allocation6_spill] sm:$0xff] }
 0x337   :  { %3382 = vmatpush.bf16.msra.mxu0 %v6663_v55 }
 0x338   :  { %v2592_v63 = vpop.f32.mrf.mxu1  ;;  %6214 = vst [vmem:[%s10936_s3 + $0x710] sm:$0xff] %v5782_v10  ;;  %v3022_v40 = vpop.f32.mrf.mxu2 }
 0x339   :  { %v3023_v31 = vadd.f32 %v3022_v40, %v2878_v0  ;;  %v2880_v34 = vpop.f32.mrf.mxu0 }
 0x33b   :  { %v5783_v13 = vadd.f32 %v8933_v54, %v3023_v31  ;;  %v2736_v27 = vpop.f32.mrf.mxu3 }
 0x33c   :  { %v2737_v10 = vadd.f32 %v2736_v27, %v2592_v63 }
 0x33d   :  { %6215 = vst [vmem:[%s10936_s3 + $0x718] sm:$0xff] %v5783_v13 }
 0x33e   :  { %v5790_v0 = vadd.f32 %v8923_v44, %v2737_v10 }
 0x340   :  { %v2595_v40 = vpop.f32.mrf.mxu1  ;;  %6222 = vst [vmem:[%s10936_s3 + $0x750] sm:$0xff] %v5790_v0  ;;  %7133 = vmatmul.msk.bf16.gmra.mxu3 %vm1828_vm1, %v10973_v19  ;;  %v3024_v39 = vpop.f32.mrf.mxu2 }
 0x341   :  { %v3025_v31 = vadd.f32 %v3024_v39, %v2880_v34  ;;  %v2883_v32 = vpop.f32.mrf.mxu0 }
 0x343   :  { %2634 = vmatmul.bf16.gmra.mxu1 %v10974_v62  ;;  %v5791_v63 = vadd.f32 %v8933_v54, %v3025_v31  ;;  %v2739_v18 = vpop.f32.mrf.mxu3 }
 0x344   :  { %v2740_v55 = vadd.f32 %v2739_v18, %v2595_v40  ;;  %2922 = vmatmul.bf16.gmra.mxu0 %v10974_v62 }
 0x345   :  { %6223 = vst [vmem:[%s10936_s3 + $0x758] sm:$0xff] %v5791_v63  ;;  %7160 = vmatmul.msk.bf16.gmra.mxu2 %vm1828_vm1, %v10973_v19 }
 0x346   :  { %v5798_v13 = vadd.f32 %v8923_v44, %v2740_v55  ;;  %v10975_v55 = vld [vmem:[#allocation7_spill] sm:$0xff] }
 0x348   :  { %v2597_v27 = vpop.f32.mrf.mxu1  ;;  %6230 = vst [vmem:[%s10936_s3 + $0x790] sm:$0xff] %v5798_v13  ;;  %v3027_v34 = vpop.f32.mrf.mxu2 }
 0x349   :  { %v3028_v10 = vadd.f32 %v3027_v34, %v2883_v32  ;;  %v2885_v0 = vpop.f32.mrf.mxu0 }
 0x34b   :  { %v5799_v40 = vadd.f32 %v8933_v54, %v3028_v10  ;;  %v2741_v39 = vpop.f32.mrf.mxu3  ;;  %v10976_v10 = vld [vmem:[#allocation8_spill] sm:$0xff] }
 0x34c   :  { %v2742_v31 = vadd.f32 %v2741_v39, %v2597_v27 }
 0x34d   :  { %6231 = vst [vmem:[%s10936_s3 + $0x798] sm:$0xff] %v5799_v40 }
 0x34e   :  { %v5806_v63 = vadd.f32 %v8923_v44, %v2742_v31 }
 0x350   :  { %v2600_v18 = vpop.f32.mrf.mxu1  ;;  %6238 = vst [vmem:[%s10936_s3 + $0x7d0] sm:$0xff] %v5806_v63  ;;  %7134 = vmatmul.msk.bf16.gmra.mxu3 %vm1828_vm1, %v10975_v55  ;;  %v3029_v32 = vpop.f32.mrf.mxu2 }
 0x351   :  { %v3030_v13 = vadd.f32 %v3029_v32, %v2885_v0  ;;  %v2888_v34 = vpop.f32.mrf.mxu0 }
 0x353   :  { %2639 = vmatmul.bf16.gmra.mxu1 %v10976_v10  ;;  %v5807_v27 = vadd.f32 %v8933_v54, %v3030_v13  ;;  %v2744_v39 = vpop.f32.mrf.mxu3 }
 0x354   :  { %v2745_v62 = vadd.f32 %v2744_v39, %v2600_v18  ;;  %2927 = vmatmul.bf16.gmra.mxu0 %v10976_v10 }
 0x355   :  { %6239 = vst [vmem:[%s10936_s3 + $0x7d8] sm:$0xff] %v5807_v27  ;;  %7161 = vmatmul.msk.bf16.gmra.mxu2 %vm1828_vm1, %v10975_v55 }
 0x356   :  { %v5814_v40 = vadd.f32 %v8923_v44, %v2745_v62  ;;  %v10977_v62 = vld [vmem:[#allocation9_spill] sm:$0xff] }
 0x358   :  { %v2602_v31 = vpop.f32.mrf.mxu1  ;;  %6246 = vst [vmem:[%s10936_s3 + $0x810] sm:$0xff] %v5814_v40  ;;  %v3032_v0 = vpop.f32.mrf.mxu2 }
 0x359   :  { %v3033_v63 = vadd.f32 %v3032_v0, %v2888_v34  ;;  %v2890_v32 = vpop.f32.mrf.mxu0 }
 0x35b   :  { %v5815_v18 = vadd.f32 %v8933_v54, %v3033_v63  ;;  %v2746_v13 = vpop.f32.mrf.mxu3  ;;  %v10978_v63 = vld [vmem:[#allocation10_spill] sm:$0xff] }
 0x35c   :  { %v2747_v39 = vadd.f32 %v2746_v13, %v2602_v31 }
 0x35d   :  { %6247 = vst [vmem:[%s10936_s3 + $0x818] sm:$0xff] %v5815_v18 }
 0x35e   :  { %v5822_v27 = vadd.f32 %v8923_v44, %v2747_v39 }
 0x360   :  { %v2605_v10 = vpop.f32.mrf.mxu1  ;;  %6254 = vst [vmem:[%s10936_s3 + $0x850] sm:$0xff] %v5822_v27  ;;  %7135 = vmatmul.msk.bf16.gmra.mxu3 %vm1828_vm1, %v10977_v62  ;;  %v3034_v34 = vpop.f32.mrf.mxu2 }
 0x361   :  { %v3035_v40 = vadd.f32 %v3034_v34, %v2890_v32  ;;  %v2893_v0 = vpop.f32.mrf.mxu0 }
 0x363   :  { %2644 = vmatmul.bf16.gmra.mxu1 %v10978_v63  ;;  %v5823_v31 = vadd.f32 %v8933_v54, %v3035_v40  ;;  %v2749_v13 = vpop.f32.mrf.mxu3 }
 0x364   :  { %v2750_v55 = vadd.f32 %v2749_v13, %v2605_v10  ;;  %2932 = vmatmul.bf16.gmra.mxu0 %v10978_v63  ;;  %v1044_v10 = vld [vmem:[%s10933_s1 + $0x358] sm:$0xff] }
 0x365   :  { %6255 = vst [vmem:[%s10936_s3 + $0x858] sm:$0xff] %v5823_v31  ;;  %7162 = vmatmul.msk.bf16.gmra.mxu2 %vm1828_vm1, %v10977_v62  ;;  %v1610_v40 = vunpack.c.l.b16 %v1044_v10  ;;  %v1611_v13 = vunpack.c.h.b16 %v1044_v10  ;;  %v6892_v10 = vld [vmem:[%s10933_s1 + $0x1f8] sm:$0xf0] }
 0x366   :  { %v5830_v18 = vadd.f32 %v8923_v44, %v2750_v55 }
 0x367   :  { %v1722_v62 = vpack.c.b16 %v1610_v40, %v1610_v40  ;;  %v1723_v19 = vpack.c.b16 %v1611_v13, %v1611_v13 }
 0x368   :  { %v2607_v39 = vpop.f32.mrf.mxu1  ;;  %6262 = vst [vmem:[%s10936_s3 + $0x890] sm:$0xff] %v5830_v18  ;;  %v3037_v32 = vpop.f32.mrf.mxu2 }
 0x369   :  { %v3038_v27 = vadd.f32 %v3037_v32, %v2893_v0  ;;  %v2895_v34 = vpop.f32.mrf.mxu0  ;;  %v1930_v18 = vsel %vm1910_vm0, %v1722_v62, 0  ;;  %v1933_v16 = vsel %vm1910_vm0, %v1723_v19, 0  ;;  %v7389_v19 = vld [vmem:[%s10933_s1 + $0x1f4] sm:$0xf0] }
 0x36a   :  { %3809 = vmatpush.bf16.msrb.mxu3 %v1930_v18  ;;  %4097 = vmatpush.bf16.msrb.mxu2 %v1933_v16 }
 0x36b   :  { %v5831_v31 = vadd.f32 %v8933_v54, %v3038_v27  ;;  %v2751_v63 = vpop.f32.mrf.mxu3 }
 0x36c   :  { %v2752_v55 = vadd.f32 %v2751_v63, %v2607_v39  ;;  %v6890_v39 = vld [vmem:[%s10933_s1 + $0x1d8] sm:$0xf] }
 0x36d   :  { %6263 = vst [vmem:[%s10936_s3 + $0x898] sm:$0xff] %v5831_v31  ;;  %v6891_v16 = vor.u32 %v7389_v19, %v6890_v39 }
 0x36e   :  { %v5838_v20 = vadd.f32 %v8923_v44, %v2752_v55 }
 0x36f   :  { %3663 = vmatpush.bf16.msrb.mxu1 %v6891_v16 }
 0x370   :  { %v2610_v0 = vpop.f32.mrf.mxu1  ;;  %6270 = vst [vmem:[%s10936_s3 + $0x8d0] sm:$0xff] %v5838_v20  ;;  %7136 = vmatmul.msk.bf16.gmra.mxu3 %vm1828_vm1, %v8643_v23  ;;  %v3039_v63 = vpop.f32.mrf.mxu2  ;;  %v7385_v20 = vld [vmem:[%s10933_s1 + $0x1dc] sm:$0xf] }
 0x371   :  { %v3040_v62 = vadd.f32 %v3039_v63, %v2895_v34  ;;  %v2898_v32 = vpop.f32.mrf.mxu0  ;;  %v6895_v27 = vor.u32 %v7385_v20, %v6892_v10 }
 0x373   :  { %2649 = vmatmul.bf16.gmra.mxu1 %v8671_v41  ;;  %v5839_v40 = vadd.f32 %v8933_v54, %v3040_v62  ;;  %v2754_v13 = vpop.f32.mrf.mxu3  ;;  %3951 = vmatpush.bf16.msrb.mxu0 %v6895_v27 }
 0x374   :  { %v2755_v31 = vadd.f32 %v2754_v13, %v2610_v0  ;;  %2937 = vmatmul.bf16.gmra.mxu0 %v8671_v41 }
 0x375   :  { %6271 = vst [vmem:[%s10936_s3 + $0x8d8] sm:$0xff] %v5839_v40  ;;  %7163 = vmatmul.msk.bf16.gmra.mxu2 %vm1828_vm1, %v8643_v23 }
 0x376   :  { %v5846_v34 = vadd.f32 %v8923_v44, %v2755_v31 }
 0x378   :  { %v2612_v55 = vpop.f32.mrf.mxu1  ;;  %6278 = vst [vmem:[%s10936_s3 + $0x910] sm:$0xff] %v5846_v34  ;;  %v3042_v18 = vpop.f32.mrf.mxu2 }
 0x379   :  { %v3043_v63 = vadd.f32 %v3042_v18, %v2898_v32  ;;  %v2900_v0 = vpop.f32.mrf.mxu0 }
 0x37b   :  { %v5847_v39 = vadd.f32 %v8933_v54, %v3043_v63  ;;  %v2756_v19 = vpop.f32.mrf.mxu3 }
 0x37c   :  { %v2757_v62 = vadd.f32 %v2756_v19, %v2612_v55 }
 0x37d   :  { %6279 = vst [vmem:[%s10936_s3 + $0x918] sm:$0xff] %v5847_v39 }
 0x37e   :  { %v5854_v16 = vadd.f32 %v8923_v44, %v2757_v62 }
 0x380   :  { %v2615_v20 = vpop.f32.mrf.mxu1  ;;  %6286 = vst [vmem:[%s10936_s3 + $0x950] sm:$0xff] %v5854_v16  ;;  %v3044_v10 = vpop.f32.mrf.mxu2  ;;  %7164 = vmatmul.msk.bf16.vlgmr.msra.gmra.mxu3 %vm1828_vm1, %v7635_v30 }
 0x381   :  { %v3045_v32 = vadd.f32 %v3044_v10, %v2900_v0  ;;  %v2903_v27 = vpop.f32.mrf.mxu0 }
 0x383   :  { %3095 = vmatmul.bf16.vlgmr.msra.gmra.mxu1 %v7646_v38  ;;  %v5855_v40 = vadd.f32 %v8933_v54, %v3045_v32  ;;  %v2759_v13 = vpop.f32.mrf.mxu3 }
 0x384   :  { %v2760_v31 = vadd.f32 %v2759_v13, %v2615_v20  ;;  %3383 = vmatmul.bf16.vlgmr.msra.gmra.mxu0 %v7646_v38 }
 0x385   :  { %6287 = vst [vmem:[%s10936_s3 + $0x958] sm:$0xff] %v5855_v40  ;;  %7191 = vmatmul.msk.bf16.vlgmr.msra.gmra.mxu2 %vm1828_vm1, %v7635_v30 }
 0x386   :  { %v5862_v34 = vadd.f32 %v8923_v44, %v2760_v31 }
 0x388   :  { %v2617_v55 = vpop.f32.mrf.mxu1  ;;  %6294 = vst [vmem:[%s10936_s3 + $0x990] sm:$0xff] %v5862_v34  ;;  %v3047_v18 = vpop.f32.mrf.mxu2 }
 0x389   :  { %v3048_v63 = vadd.f32 %v3047_v18, %v2903_v27  ;;  %v2905_v0 = vpop.f32.mrf.mxu0 }
 0x38b   :  { %v5863_v39 = vadd.f32 %v8933_v54, %v3048_v63  ;;  %v2761_v19 = vpop.f32.mrf.mxu3 }
 0x38c   :  { %v2762_v62 = vadd.f32 %v2761_v19, %v2617_v55 }
 0x38d   :  { %6295 = vst [vmem:[%s10936_s3 + $0x998] sm:$0xff] %v5863_v39 }
 0x38e   :  { %v5870_v16 = vadd.f32 %v8923_v44, %v2762_v62 }
 0x390   :  { %v2620_v20 = vpop.f32.mrf.mxu1  ;;  %6302 = vst [vmem:[%s10936_s3 + $0x9d0] sm:$0xff] %v5870_v16  ;;  %v3049_v10 = vpop.f32.mrf.mxu2  ;;  %7165 = vmatmul.msk.bf16.gmra.mxu3 %vm1828_vm1, %v7659_v42 }
 0x391   :  { %v3050_v32 = vadd.f32 %v3049_v10, %v2905_v0  ;;  %v2908_v27 = vpop.f32.mrf.mxu0 }
 0x393   :  { %3100 = vmatmul.bf16.gmra.mxu1 %v7669_v45  ;;  %v5871_v40 = vadd.f32 %v8933_v54, %v3050_v32  ;;  %v2764_v13 = vpop.f32.mrf.mxu3 }
 0x394   :  { %v2765_v31 = vadd.f32 %v2764_v13, %v2620_v20  ;;  %3388 = vmatmul.bf16.gmra.mxu0 %v7669_v45 }
 0x395   :  { %6303 = vst [vmem:[%s10936_s3 + $0x9d8] sm:$0xff] %v5871_v40  ;;  %7192 = vmatmul.msk.bf16.gmra.mxu2 %vm1828_vm1, %v7659_v42 }
 0x396   :  { %v5878_v34 = vadd.f32 %v8923_v44, %v2765_v31 }
 0x398   :  { %v2622_v55 = vpop.f32.mrf.mxu1  ;;  %6310 = vst [vmem:[%s10936_s3 + $0xa10] sm:$0xff] %v5878_v34  ;;  %v3052_v18 = vpop.f32.mrf.mxu2  ;;  %v6858_v34 = vld [vmem:[%s10933_s1 + $0x198] sm:$0xf] }
 0x399   :  { %v3053_v63 = vadd.f32 %v3052_v18, %v2908_v27  ;;  %v2910_v0 = vpop.f32.mrf.mxu0 }
 0x39b   :  { %v5879_v39 = vadd.f32 %v8933_v54, %v3053_v63  ;;  %v2766_v19 = vpop.f32.mrf.mxu3 }
 0x39c   :  { %v2767_v62 = vadd.f32 %v2766_v19, %v2622_v55  ;;  %v7381_v55 = vld [vmem:[%s10933_s1 + $0x1b4] sm:$0xf0]  ;;  %v6860_v19 = vld [vmem:[%s10933_s1 + $0x1b8] sm:$0xf0] }
 0x39d   :  { %6311 = vst [vmem:[%s10936_s3 + $0xa18] sm:$0xff] %v5879_v39  ;;  %v7377_v39 = vld [vmem:[%s10933_s1 + $0x19c] sm:$0xf] }
 0x39e   :  { %v5886_v16 = vadd.f32 %v8923_v44, %v2767_v62  ;;  %v6863_v62 = vor.u32 %v7377_v39, %v6860_v19  ;;  %v7425_v19 = vld [vmem:[%s10933_s1 + $0x31c] sm:$0xf] }
 0x3a0   :  { %v2625_v20 = vpop.f32.mrf.mxu1  ;;  %6318 = vst [vmem:[%s10936_s3 + $0xa50] sm:$0xff] %v5886_v16  ;;  %v3054_v10 = vpop.f32.mrf.mxu2  ;;  %7166 = vmatmul.msk.bf16.gmra.mxu3 %vm1828_vm1, %v7681_v48  ;;  %3952 = vmatpush.bf16.msrb.mxu0 %v6863_v62  ;;  %v7052_v62 = vld [vmem:[%s10933_s1 + $0x338] sm:$0xf0] }
 0x3a1   :  { %v3055_v32 = vadd.f32 %v3054_v10, %v2910_v0  ;;  %v2913_v27 = vpop.f32.mrf.mxu0  ;;  %v6859_v0 = vor.u32 %v7381_v55, %v6858_v34 }
 0x3a3   :  { %3105 = vmatmul.bf16.gmra.mxu1 %v7691_v51  ;;  %v5887_v40 = vadd.f32 %v8933_v54, %v3055_v32  ;;  %v2769_v13 = vpop.f32.mrf.mxu3 }
 0x3a4   :  { %v2770_v31 = vadd.f32 %v2769_v13, %v2625_v20  ;;  %3393 = vmatmul.bf16.gmra.mxu0 %v7691_v51  ;;  %3664 = vmatpush.bf16.msrb.mxu1 %v6859_v0 }
 0x3a5   :  { %6319 = vst [vmem:[%s10936_s3 + $0xa58] sm:$0xff] %v5887_v40  ;;  %7193 = vmatmul.msk.bf16.gmra.mxu2 %vm1828_vm1, %v7681_v48 }
 0x3a6   :  { %v5894_v18 = vadd.f32 %v8923_v44, %v2770_v31 }
 0x3a8   :  { %v2627_v63 = vpop.f32.mrf.mxu1  ;;  %6326 = vst [vmem:[%s10936_s3 + $0xa90] sm:$0xff] %v5894_v18  ;;  %v3057_v16 = vpop.f32.mrf.mxu2  ;;  %v7429_v18 = vld [vmem:[%s10933_s1 + $0x334] sm:$0xf0] }
 0x3a9   :  { %v3058_v20 = vadd.f32 %v3057_v16, %v2913_v27  ;;  %v2915_v10 = vpop.f32.mrf.mxu0  ;;  %v7050_v27 = vld [vmem:[%s10933_s1 + $0x318] sm:$0xf]  ;;  %v7055_v16 = vor.u32 %v7425_v19, %v7052_v62 }
 0x3aa   :  { %v7051_v39 = vor.u32 %v7429_v18, %v7050_v27 }
 0x3ab   :  { %v5895_v32 = vadd.f32 %v8933_v54, %v3058_v20  ;;  %v2771_v40 = vpop.f32.mrf.mxu3  ;;  %4098 = vmatpush.bf16.msrb.mxu2 %v7055_v16 }
 0x3ac   :  { %v2772_v13 = vadd.f32 %v2771_v40, %v2627_v63  ;;  %3810 = vmatpush.bf16.msrb.mxu3 %v7051_v39 }
 0x3ad   :  { %6327 = vst [vmem:[%s10936_s3 + $0xa98] sm:$0xff] %v5895_v32 }
 0x3ae   :  { %v5902_v31 = vadd.f32 %v8923_v44, %v2772_v13 }
 0x3b0   :  { %v2630_v34 = vpop.f32.mrf.mxu1  ;;  %6334 = vst [vmem:[%s10936_s3 + $0xad0] sm:$0xff] %v5902_v31  ;;  %v3059_v55 = vpop.f32.mrf.mxu2  ;;  %7167 = vmatmul.msk.bf16.gmra.mxu3 %vm1828_vm1, %v7727_v2 }
 0x3b1   :  { %v3060_v63 = vadd.f32 %v3059_v55, %v2915_v10  ;;  %v2918_v0 = vpop.f32.mrf.mxu0 }
 0x3b3   :  { %3110 = vmatmul.bf16.gmra.mxu1 %v7737_v5  ;;  %v5903_v20 = vadd.f32 %v8933_v54, %v3060_v63  ;;  %v2774_v32 = vpop.f32.mrf.mxu3 }
 0x3b4   :  { %v2775_v40 = vadd.f32 %v2774_v32, %v2630_v34  ;;  %3398 = vmatmul.bf16.gmra.mxu0 %v7737_v5 }
 0x3b5   :  { %6335 = vst [vmem:[%s10936_s3 + $0xad8] sm:$0xff] %v5903_v20  ;;  %7194 = vmatmul.msk.bf16.gmra.mxu2 %vm1828_vm1, %v7727_v2 }
 0x3b6   :  { %v5910_v10 = vadd.f32 %v8923_v44, %v2775_v40 }
 0x3b8   :  { %v2632_v13 = vpop.f32.mrf.mxu1  ;;  %6342 = vst [vmem:[%s10936_s3 + $0xb10] sm:$0xff] %v5910_v10  ;;  %v3062_v31 = vpop.f32.mrf.mxu2 }
 0x3b9   :  { %v3063_v55 = vadd.f32 %v3062_v31, %v2918_v0  ;;  %v2920_v34 = vpop.f32.mrf.mxu0 }
 0x3bb   :  { %v5911_v27 = vadd.f32 %v8933_v54, %v3063_v55  ;;  %v2776_v18 = vpop.f32.mrf.mxu3 }
 0x3bc   :  { %v2777_v63 = vadd.f32 %v2776_v18, %v2632_v13 }
 0x3bd   :  { %6343 = vst [vmem:[%s10936_s3 + $0xb18] sm:$0xff] %v5911_v27 }
 0x3be   :  { %v5918_v39 = vadd.f32 %v8923_v44, %v2777_v63 }
 0x3c0   :  { %v2635_v19 = vpop.f32.mrf.mxu1  ;;  %6350 = vst [vmem:[%s10936_s3 + $0xb50] sm:$0xff] %v5918_v39  ;;  %v3064_v62 = vpop.f32.mrf.mxu2  ;;  %7168 = vmatmul.msk.bf16.gmra.mxu3 %vm1828_vm1, %v7749_v8 }
 0x3c1   :  { %v3065_v0 = vadd.f32 %v3064_v62, %v2920_v34  ;;  %v2923_v16 = vpop.f32.mrf.mxu0 }
 0x3c3   :  { %3115 = vmatmul.bf16.gmra.mxu1 %v7759_v11  ;;  %v5919_v20 = vadd.f32 %v8933_v54, %v3065_v0  ;;  %v2779_v32 = vpop.f32.mrf.mxu3 }
 0x3c4   :  { %v2780_v40 = vadd.f32 %v2779_v32, %v2635_v19  ;;  %3403 = vmatmul.bf16.gmra.mxu0 %v7759_v11 }
 0x3c5   :  { %6351 = vst [vmem:[%s10936_s3 + $0xb58] sm:$0xff] %v5919_v20  ;;  %7195 = vmatmul.msk.bf16.gmra.mxu2 %vm1828_vm1, %v7749_v8 }
 0x3c6   :  { %v5926_v10 = vadd.f32 %v8923_v44, %v2780_v40 }
 0x3c8   :  { %v2637_v13 = vpop.f32.mrf.mxu1  ;;  %6358 = vst [vmem:[%s10936_s3 + $0xb90] sm:$0xff] %v5926_v10  ;;  %v3067_v31 = vpop.f32.mrf.mxu2 }
 0x3c9   :  { %v3068_v55 = vadd.f32 %v3067_v31, %v2923_v16  ;;  %v2925_v34 = vpop.f32.mrf.mxu0 }
 0x3cb   :  { %v5927_v27 = vadd.f32 %v8933_v54, %v3068_v55  ;;  %v2781_v18 = vpop.f32.mrf.mxu3  ;;  %v6826_v55 = vld [vmem:[%s10933_s1 + $0x158] sm:$0xf] }
 0x3cc   :  { %v2782_v63 = vadd.f32 %v2781_v18, %v2637_v13 }
 0x3cd   :  { %6359 = vst [vmem:[%s10936_s3 + $0xb98] sm:$0xff] %v5927_v27 }
 0x3ce   :  { %v5934_v39 = vadd.f32 %v8923_v44, %v2782_v63 }
 0x3d0   :  { %v2640_v19 = vpop.f32.mrf.mxu1  ;;  %6366 = vst [vmem:[%s10936_s3 + $0xbd0] sm:$0xff] %v5934_v39  ;;  %v3069_v62 = vpop.f32.mrf.mxu2  ;;  %7169 = vmatmul.msk.bf16.gmra.mxu3 %vm1828_vm1, %v7771_v14  ;;  %v7369_v39 = vld [vmem:[%s10933_s1 + $0x15c] sm:$0xf] }
 0x3d1   :  { %v3070_v0 = vadd.f32 %v3069_v62, %v2925_v34  ;;  %v2928_v16 = vpop.f32.mrf.mxu0  ;;  %v7373_v34 = vld [vmem:[%s10933_s1 + $0x174] sm:$0xf0] }
 0x3d2   :  { %v6827_v63 = vor.u32 %v7373_v34, %v6826_v55 }
 0x3d3   :  { %3120 = vmatmul.bf16.gmra.mxu1 %v7781_v17  ;;  %v5935_v20 = vadd.f32 %v8933_v54, %v3070_v0  ;;  %v2784_v32 = vpop.f32.mrf.mxu3 }
 0x3d4   :  { %v2785_v40 = vadd.f32 %v2784_v32, %v2640_v19  ;;  %3408 = vmatmul.bf16.gmra.mxu0 %v7781_v17  ;;  %v6828_v19 = vld [vmem:[%s10933_s1 + $0x178] sm:$0xf0]  ;;  %3665 = vmatpush.bf16.msrb.mxu1 %v6827_v63 }
 0x3d5   :  { %6367 = vst [vmem:[%s10936_s3 + $0xbd8] sm:$0xff] %v5935_v20  ;;  %7196 = vmatmul.msk.bf16.gmra.mxu2 %vm1828_vm1, %v7771_v14  ;;  %v6831_v62 = vor.u32 %v7369_v39, %v6828_v19 }
 0x3d6   :  { %v5942_v10 = vadd.f32 %v8923_v44, %v2785_v40 }
 0x3d7   :  { %3953 = vmatpush.bf16.msrb.mxu0 %v6831_v62 }
 0x3d8   :  { %v2642_v13 = vpop.f32.mrf.mxu1  ;;  %6374 = vst [vmem:[%s10936_s3 + $0xc10] sm:$0xff] %v5942_v10  ;;  %v3072_v31 = vpop.f32.mrf.mxu2 }
 0x3d9   :  { %v3073_v27 = vadd.f32 %v3072_v31, %v2928_v16  ;;  %v2930_v18 = vpop.f32.mrf.mxu0 }
 0x3db   :  { %v5943_v0 = vadd.f32 %v8933_v54, %v3073_v27  ;;  %v2786_v20 = vpop.f32.mrf.mxu3 }
 0x3dc   :  { %v2787_v32 = vadd.f32 %v2786_v20, %v2642_v13 }
 0x3dd   :  { %6375 = vst [vmem:[%s10936_s3 + $0xc18] sm:$0xff] %v5943_v0 }
 0x3de   :  { %v5950_v16 = vadd.f32 %v8923_v44, %v2787_v32 }
 0x3e0   :  { %v2645_v40 = vpop.f32.mrf.mxu1  ;;  %6382 = vst [vmem:[%s10936_s3 + $0xc50] sm:$0xff] %v5950_v16  ;;  %v3074_v10 = vpop.f32.mrf.mxu2  ;;  %7170 = vmatmul.msk.bf16.gmra.mxu3 %vm1828_vm1, %v7805_v26 }
 0x3e1   :  { %v3075_v31 = vadd.f32 %v3074_v10, %v2930_v18  ;;  %v2933_v55 = vpop.f32.mrf.mxu0 }
 0x3e3   :  { %3125 = vmatmul.bf16.gmra.mxu1 %v7815_v29  ;;  %v5951_v13 = vadd.f32 %v8933_v54, %v3075_v31  ;;  %v2789_v34 = vpop.f32.mrf.mxu3 }
 0x3e4   :  { %v2790_v27 = vadd.f32 %v2789_v34, %v2645_v40  ;;  %3413 = vmatmul.bf16.gmra.mxu0 %v7815_v29 }
 0x3e5   :  { %6383 = vst [vmem:[%s10936_s3 + $0xc58] sm:$0xff] %v5951_v13  ;;  %7197 = vmatmul.msk.bf16.gmra.mxu2 %vm1828_vm1, %v7805_v26 }
 0x3e6   :  { %v5958_v63 = vadd.f32 %v8923_v44, %v2790_v27 }
 0x3e8   :  { %v2647_v39 = vpop.f32.mrf.mxu1  ;;  %6390 = vst [vmem:[%s10936_s3 + $0xc90] sm:$0xff] %v5958_v63  ;;  %v3077_v18 = vpop.f32.mrf.mxu2 }
 0x3e9   :  { %v3078_v19 = vadd.f32 %v3077_v18, %v2933_v55  ;;  %v2935_v62 = vpop.f32.mrf.mxu0 }
 0x3eb   :  { %v5959_v0 = vadd.f32 %v8933_v54, %v3078_v19  ;;  %v2791_v20 = vpop.f32.mrf.mxu3  ;;  %v7018_v19 = vld [vmem:[%s10933_s1 + $0x2d8] sm:$0xf] }
 0x3ec   :  { %v2792_v32 = vadd.f32 %v2791_v20, %v2647_v39 }
 0x3ed   :  { %6391 = vst [vmem:[%s10936_s3 + $0xc98] sm:$0xff] %v5959_v0 }
 0x3ee   :  { %v5966_v16 = vadd.f32 %v8923_v44, %v2792_v32 }
 0x3f0   :  { %v2650_v40 = vpop.f32.mrf.mxu1  ;;  %6398 = vst [vmem:[%s10936_s3 + $0xcd0] sm:$0xff] %v5966_v16  ;;  %v3079_v10 = vpop.f32.mrf.mxu2  ;;  %7171 = vmatmul.msk.bf16.gmra.mxu3 %vm1828_vm1, %v7827_v33  ;;  %v7417_v16 = vld [vmem:[%s10933_s1 + $0x2dc] sm:$0xf] }
 0x3f1   :  { %v3080_v31 = vadd.f32 %v3079_v10, %v2935_v62  ;;  %v2938_v55 = vpop.f32.mrf.mxu0  ;;  %v7421_v62 = vld [vmem:[%s10933_s1 + $0x2f4] sm:$0xf0] }
 0x3f2   :  { %v7019_v32 = vor.u32 %v7421_v62, %v7018_v19 }
 0x3f3   :  { %3130 = vmatmul.bf16.gmra.mxu1 %v7837_v36  ;;  %v5967_v13 = vadd.f32 %v8933_v54, %v3080_v31  ;;  %v2794_v34 = vpop.f32.mrf.mxu3 }
 0x3f4   :  { %v2795_v27 = vadd.f32 %v2794_v34, %v2650_v40  ;;  %3418 = vmatmul.bf16.gmra.mxu0 %v7837_v36  ;;  %v7020_v40 = vld [vmem:[%s10933_s1 + $0x2f8] sm:$0xf0]  ;;  %3811 = vmatpush.bf16.msrb.mxu3 %v7019_v32 }
 0x3f5   :  { %6399 = vst [vmem:[%s10936_s3 + $0xcd8] sm:$0xff] %v5967_v13  ;;  %7198 = vmatmul.msk.bf16.gmra.mxu2 %vm1828_vm1, %v7827_v33  ;;  %v7023_v10 = vor.u32 %v7417_v16, %v7020_v40 }
 0x3f6   :  { %v5974_v63 = vadd.f32 %v8923_v44, %v2795_v27 }
 0x3f7   :  { %4099 = vmatpush.bf16.msrb.mxu2 %v7023_v10 }
 0x3f8   :  { %v2652_v39 = vpop.f32.mrf.mxu1  ;;  %6406 = vst [vmem:[%s10936_s3 + $0xd10] sm:$0xff] %v5974_v63  ;;  %v3082_v18 = vpop.f32.mrf.mxu2 }
 0x3f9   :  { %v3083_v0 = vadd.f32 %v3082_v18, %v2938_v55  ;;  %v2940_v20 = vpop.f32.mrf.mxu0 }
 0x3fb   :  { %v5975_v31 = vadd.f32 %v8933_v54, %v3083_v0  ;;  %v2796_v13 = vpop.f32.mrf.mxu3 }
 0x3fc   :  { %v2797_v34 = vadd.f32 %v2796_v13, %v2652_v39  ;;  %v7431_v39 = vld [vmem:[%s10935_s2] sm:$0xff] }
 0x3fd   :  { %6407 = vst [vmem:[%s10936_s3 + $0xd18] sm:$0xff] %v5975_v31  ;;  %v9685_v62 = vperm.slane %v7431_v39, 4  ;;  %v9695_v40 = vperm.slane %v7431_v39, 5  ;;  %v7365_v39 = vld [vmem:[%s10933_s1 + $0x134] sm:$0xf0] }
 0x3fe   :  { %v5982_v55 = vadd.f32 %v8923_v44, %v2797_v34 }
 0x400   :  { %v3096_v27 = vpop.f32.mrf.mxu1  ;;  %6414 = vst [vmem:[%s10936_s3 + $0xd50] sm:$0xff] %v5982_v55  ;;  %v3084_v63 = vpop.f32.mrf.mxu2  ;;  %7172 = vmatmul.msk.bf16.gmra.mxu3 %vm1828_vm1, %v7861_v49 }
 0x401   :  { %v3085_v18 = vadd.f32 %v3084_v63, %v2940_v20  ;;  %v3384_v19 = vpop.f32.mrf.mxu0 }
 0x403   :  { %3135 = vmatmul.bf16.gmra.mxu1 %v7876_v56  ;;  %v5983_v44 = vadd.f32 %v8933_v54, %v3085_v18  ;;  %v3240_v0 = vpop.f32.mrf.mxu3 }
 0x404   :  { %v3241_v32 = vadd.f32 %v3240_v0, %v3096_v27  ;;  %3423 = vmatmul.bf16.gmra.mxu0 %v7876_v56 }
 0x405   :  { %6415 = vst [vmem:[%s10936_s3 + $0xd58] sm:$0xff] %v5983_v44  ;;  %7199 = vmatmul.msk.bf16.gmra.mxu2 %vm1828_vm1, %v7861_v49 }
 0x406   :  { %v5560_v20 = vadd.f32 %v9685_v62, %v3241_v32 }
 0x408   :  { %v3098_v16 = vpop.f32.mrf.mxu1  ;;  %5992 = vst [vmem:[%s10936_s3 + $0x20] sm:$0xff] %v5560_v20  ;;  %v3528_v54 = vpop.f32.mrf.mxu2  ;;  %v7361_v20 = vld [vmem:[%s10933_s1 + $0x11c] sm:$0xf] }
 0x409   :  { %v3529_v10 = vadd.f32 %v3528_v54, %v3384_v19  ;;  %v3386_v31 = vpop.f32.mrf.mxu0  ;;  %v6794_v19 = vld [vmem:[%s10933_s1 + $0x118] sm:$0xf] }
 0x40a   :  { %v6795_v32 = vor.u32 %v7365_v39, %v6794_v19 }
 0x40b   :  { %v5561_v13 = vadd.f32 %v9695_v40, %v3529_v10  ;;  %v3242_v34 = vpop.f32.mrf.mxu3 }
 0x40c   :  { %v3243_v55 = vadd.f32 %v3242_v34, %v3098_v16  ;;  %v6796_v16 = vld [vmem:[%s10933_s1 + $0x138] sm:$0xf0]  ;;  %3666 = vmatpush.bf16.msrb.mxu1 %v6795_v32 }
 0x40d   :  { %5993 = vst [vmem:[%s10936_s3 + $0x28] sm:$0xff] %v5561_v13  ;;  %v6799_v54 = vor.u32 %v7361_v20, %v6796_v16 }
 0x40e   :  { %v5568_v27 = vadd.f32 %v9685_v62, %v3243_v55 }
 0x40f   :  { %3954 = vmatpush.bf16.msrb.mxu0 %v6799_v54 }
 0x410   :  { %v3101_v63 = vpop.f32.mrf.mxu1  ;;  %6000 = vst [vmem:[%s10936_s3 + $0x60] sm:$0xff] %v5568_v27  ;;  %7173 = vmatmul.msk.bf16.gmra.mxu3 %vm1828_vm1, %v7896_v12  ;;  %v3530_v18 = vpop.f32.mrf.mxu2 }
 0x411   :  { %v3531_v44 = vadd.f32 %v3530_v18, %v3386_v31  ;;  %v3389_v0 = vpop.f32.mrf.mxu0 }
 0x413   :  { %3140 = vmatmul.bf16.gmra.mxu1 %v7924_v24  ;;  %v5569_v10 = vadd.f32 %v9695_v40, %v3531_v44  ;;  %v3245_v13 = vpop.f32.mrf.mxu3 }
 0x414   :  { %v3246_v34 = vadd.f32 %v3245_v13, %v3101_v63  ;;  %3428 = vmatmul.bf16.gmra.mxu0 %v7924_v24 }
 0x415   :  { %6001 = vst [vmem:[%s10936_s3 + $0x68] sm:$0xff] %v5569_v10  ;;  %7200 = vmatmul.msk.bf16.gmra.mxu2 %vm1828_vm1, %v7896_v12 }
 0x416   :  { %v5576_v31 = vadd.f32 %v9685_v62, %v3246_v34 }
 0x418   :  { %v3103_v55 = vpop.f32.mrf.mxu1  ;;  %6008 = vst [vmem:[%s10936_s3 + $0xa0] sm:$0xff] %v5576_v31  ;;  %v3533_v27 = vpop.f32.mrf.mxu2 }
 0x419   :  { %v3534_v18 = vadd.f32 %v3533_v27, %v3389_v0  ;;  %v3391_v63 = vpop.f32.mrf.mxu0 }
 0x41b   :  { %v5577_v19 = vadd.f32 %v9695_v40, %v3534_v18  ;;  %v3247_v39 = vpop.f32.mrf.mxu3 }
 0x41c   :  { %v3248_v44 = vadd.f32 %v3247_v39, %v3103_v55 }
 0x41d   :  { %6009 = vst [vmem:[%s10936_s3 + $0xa8] sm:$0xff] %v5577_v19 }
 0x41e   :  { %v5584_v32 = vadd.f32 %v9685_v62, %v3248_v44 }
 0x420   :  { %v3106_v20 = vpop.f32.mrf.mxu1  ;;  %6016 = vst [vmem:[%s10936_s3 + $0xe0] sm:$0xff] %v5584_v32  ;;  %7174 = vmatmul.msk.bf16.gmra.mxu3 %vm1828_vm1, %v7946_v53  ;;  %v3535_v0 = vpop.f32.mrf.mxu2 }
 0x421   :  { %v3536_v16 = vadd.f32 %v3535_v0, %v3391_v63  ;;  %v3394_v54 = vpop.f32.mrf.mxu0 }
 0x423   :  { %3145 = vmatmul.bf16.gmra.mxu1 %v7962_v60  ;;  %v5585_v10 = vadd.f32 %v9695_v40, %v3536_v16  ;;  %v3250_v13 = vpop.f32.mrf.mxu3 }
 0x424   :  { %v3251_v34 = vadd.f32 %v3250_v13, %v3106_v20  ;;  %3433 = vmatmul.bf16.gmra.mxu0 %v7962_v60 }
 0x425   :  { %6017 = vst [vmem:[%s10936_s3 + $0xe8] sm:$0xff] %v5585_v10  ;;  %7201 = vmatmul.msk.bf16.gmra.mxu2 %vm1828_vm1, %v7946_v53 }
 0x426   :  { %v5592_v31 = vadd.f32 %v9685_v62, %v3251_v34 }
 0x428   :  { %v3108_v55 = vpop.f32.mrf.mxu1  ;;  %6024 = vst [vmem:[%s10936_s3 + $0x120] sm:$0xff] %v5592_v31  ;;  %v3538_v27 = vpop.f32.mrf.mxu2 }
 0x429   :  { %v3539_v18 = vadd.f32 %v3538_v27, %v3394_v54  ;;  %v3396_v63 = vpop.f32.mrf.mxu0 }
 0x42b   :  { %v5593_v19 = vadd.f32 %v9695_v40, %v3539_v18  ;;  %v3252_v39 = vpop.f32.mrf.mxu3 }
 0x42c   :  { %v3253_v44 = vadd.f32 %v3252_v39, %v3108_v55 }
 0x42d   :  { %6025 = vst [vmem:[%s10936_s3 + $0x128] sm:$0xff] %v5593_v19 }
 0x42e   :  { %v5600_v32 = vadd.f32 %v9685_v62, %v3253_v44 }
 0x430   :  { %v3111_v20 = vpop.f32.mrf.mxu1  ;;  %6032 = vst [vmem:[%s10936_s3 + $0x160] sm:$0xff] %v5600_v32  ;;  %7175 = vmatmul.msk.bf16.gmra.mxu3 %vm1828_vm1, %v7984_v21  ;;  %v3540_v0 = vpop.f32.mrf.mxu2 }
 0x431   :  { %v3541_v16 = vadd.f32 %v3540_v0, %v3396_v63  ;;  %v3399_v54 = vpop.f32.mrf.mxu0 }
 0x433   :  { %3150 = vmatmul.bf16.gmra.mxu1 %v8000_v28  ;;  %v5601_v10 = vadd.f32 %v9695_v40, %v3541_v16  ;;  %v3255_v13 = vpop.f32.mrf.mxu3  ;;  %v6986_v16 = vld [vmem:[%s10933_s1 + $0x298] sm:$0xf] }
 0x434   :  { %v3256_v34 = vadd.f32 %v3255_v13, %v3111_v20  ;;  %3438 = vmatmul.bf16.gmra.mxu0 %v8000_v28 }
 0x435   :  { %6033 = vst [vmem:[%s10936_s3 + $0x168] sm:$0xff] %v5601_v10  ;;  %7202 = vmatmul.msk.bf16.gmra.mxu2 %vm1828_vm1, %v7984_v21 }
 0x436   :  { %v5608_v31 = vadd.f32 %v9685_v62, %v3256_v34 }
 0x438   :  { %v3113_v55 = vpop.f32.mrf.mxu1  ;;  %6040 = vst [vmem:[%s10936_s3 + $0x1a0] sm:$0xff] %v5608_v31  ;;  %v3543_v27 = vpop.f32.mrf.mxu2  ;;  %v7409_v31 = vld [vmem:[%s10933_s1 + $0x29c] sm:$0xf] }
 0x439   :  { %v3544_v18 = vadd.f32 %v3543_v27, %v3399_v54  ;;  %v3401_v63 = vpop.f32.mrf.mxu0  ;;  %v7413_v54 = vld [vmem:[%s10933_s1 + $0x2b4] sm:$0xf0] }
 0x43a   :  { %v6987_v34 = vor.u32 %v7413_v54, %v6986_v16 }
 0x43b   :  { %v5609_v19 = vadd.f32 %v9695_v40, %v3544_v18  ;;  %v3257_v39 = vpop.f32.mrf.mxu3 }
 0x43c   :  { %v3258_v44 = vadd.f32 %v3257_v39, %v3113_v55  ;;  %v6988_v55 = vld [vmem:[%s10933_s1 + $0x2b8] sm:$0xf0]  ;;  %3812 = vmatpush.bf16.msrb.mxu3 %v6987_v34 }
 0x43d   :  { %6041 = vst [vmem:[%s10936_s3 + $0x1a8] sm:$0xff] %v5609_v19  ;;  %v6991_v27 = vor.u32 %v7409_v31, %v6988_v55  ;;  %v7353_v34 = vld [vmem:[%s10933_s1 + $0xdc] sm:$0xf] }
 0x43e   :  { %v5616_v32 = vadd.f32 %v9685_v62, %v3258_v44  ;;  %v6764_v31 = vld [vmem:[%s10933_s1 + $0xf8] sm:$0xf0] }
 0x43f   :  { %4100 = vmatpush.bf16.msrb.mxu2 %v6991_v27  ;;  %v6767_v55 = vor.u32 %v7353_v34, %v6764_v31 }
 0x440   :  { %v3116_v20 = vpop.f32.mrf.mxu1  ;;  %6048 = vst [vmem:[%s10936_s3 + $0x1e0] sm:$0xff] %v5616_v32  ;;  %7176 = vmatmul.msk.bf16.gmra.mxu3 %vm1828_vm1, %v8022_v58  ;;  %v3545_v0 = vpop.f32.mrf.mxu2 }
 0x441   :  { %v3546_v10 = vadd.f32 %v3545_v0, %v3401_v63  ;;  %v3404_v13 = vpop.f32.mrf.mxu0  ;;  %v7357_v0 = vld [vmem:[%s10933_s1 + $0xf4] sm:$0xf0]  ;;  %3955 = vmatpush.bf16.msrb.mxu0 %v6767_v55 }
 0x443   :  { %3155 = vmatmul.bf16.gmra.mxu1 %v8050_v9  ;;  %v5617_v18 = vadd.f32 %v9695_v40, %v3546_v10  ;;  %v3260_v19 = vpop.f32.mrf.mxu3 }
 0x444   :  { %v3261_v39 = vadd.f32 %v3260_v19, %v3116_v20  ;;  %3443 = vmatmul.bf16.gmra.mxu0 %v8050_v9  ;;  %v6762_v20 = vld [vmem:[%s10933_s1 + $0xd8] sm:$0xf] }
 0x445   :  { %6049 = vst [vmem:[%s10936_s3 + $0x1e8] sm:$0xff] %v5617_v18  ;;  %7203 = vmatmul.msk.bf16.gmra.mxu2 %vm1828_vm1, %v8022_v58  ;;  %v6763_v10 = vor.u32 %v7357_v0, %v6762_v20 }
 0x446   :  { %v5624_v63 = vadd.f32 %v9685_v62, %v3261_v39 }
 0x447   :  { %3667 = vmatpush.bf16.msrb.mxu1 %v6763_v10 }
 0x448   :  { %v3118_v44 = vpop.f32.mrf.mxu1  ;;  %6056 = vst [vmem:[%s10936_s3 + $0x220] sm:$0xff] %v5624_v63  ;;  %v3548_v32 = vpop.f32.mrf.mxu2 }
 0x449   :  { %v3549_v16 = vadd.f32 %v3548_v32, %v3404_v13  ;;  %v3406_v54 = vpop.f32.mrf.mxu0 }
 0x44b   :  { %v5625_v27 = vadd.f32 %v9695_v40, %v3549_v16  ;;  %v3262_v18 = vpop.f32.mrf.mxu3 }
 0x44c   :  { %v3263_v19 = vadd.f32 %v3262_v18, %v3118_v44 }
 0x44d   :  { %6057 = vst [vmem:[%s10936_s3 + $0x228] sm:$0xff] %v5625_v27 }
 0x44e   :  { %v5632_v13 = vadd.f32 %v9685_v62, %v3263_v19 }
 0x450   :  { %v3121_v39 = vpop.f32.mrf.mxu1  ;;  %6064 = vst [vmem:[%s10936_s3 + $0x260] sm:$0xff] %v5632_v13  ;;  %7177 = vmatmul.msk.bf16.gmra.mxu3 %vm1828_vm1, %v8084_v50  ;;  %v3550_v63 = vpop.f32.mrf.mxu2 }
 0x451   :  { %v3551_v32 = vadd.f32 %v3550_v63, %v3406_v54  ;;  %v3409_v20 = vpop.f32.mrf.mxu0 }
 0x453   :  { %3160 = vmatmul.bf16.gmra.mxu1 %v8100_v61  ;;  %v5633_v44 = vadd.f32 %v9695_v40, %v3551_v32  ;;  %v3265_v0 = vpop.f32.mrf.mxu3 }
 0x454   :  { %v3266_v16 = vadd.f32 %v3265_v0, %v3121_v39  ;;  %3448 = vmatmul.bf16.gmra.mxu0 %v8100_v61 }
 0x455   :  { %6065 = vst [vmem:[%s10936_s3 + $0x268] sm:$0xff] %v5633_v44  ;;  %7204 = vmatmul.msk.bf16.gmra.mxu2 %vm1828_vm1, %v8084_v50 }
 0x456   :  { %v5640_v10 = vadd.f32 %v9685_v62, %v3266_v16 }
 0x458   :  { %v3123_v34 = vpop.f32.mrf.mxu1  ;;  %6072 = vst [vmem:[%s10936_s3 + $0x2a0] sm:$0xff] %v5640_v10  ;;  %v3553_v54 = vpop.f32.mrf.mxu2 }
 0x459   :  { %v3554_v31 = vadd.f32 %v3553_v54, %v3409_v20  ;;  %v3411_v55 = vpop.f32.mrf.mxu0 }
 0x45b   :  { %v5641_v27 = vadd.f32 %v9695_v40, %v3554_v31  ;;  %v3267_v18 = vpop.f32.mrf.mxu3 }
 0x45c   :  { %v3268_v19 = vadd.f32 %v3267_v18, %v3123_v34 }
 0x45d   :  { %6073 = vst [vmem:[%s10936_s3 + $0x2a8] sm:$0xff] %v5641_v27 }
 0x45e   :  { %v5648_v13 = vadd.f32 %v9685_v62, %v3268_v19 }
 0x460   :  { %v3126_v39 = vpop.f32.mrf.mxu1  ;;  %6080 = vst [vmem:[%s10936_s3 + $0x2e0] sm:$0xff] %v5648_v13  ;;  %7178 = vmatmul.msk.bf16.gmra.mxu3 %vm1828_vm1, %v8122_v25  ;;  %v3555_v63 = vpop.f32.mrf.mxu2 }
 0x461   :  { %v3556_v32 = vadd.f32 %v3555_v63, %v3411_v55  ;;  %v3414_v20 = vpop.f32.mrf.mxu0 }
 0x463   :  { %3165 = vmatmul.bf16.gmra.mxu1 %v8138_v35  ;;  %v5649_v44 = vadd.f32 %v9695_v40, %v3556_v32  ;;  %v3270_v0 = vpop.f32.mrf.mxu3 }
 0x464   :  { %v3271_v16 = vadd.f32 %v3270_v0, %v3126_v39  ;;  %3453 = vmatmul.bf16.gmra.mxu0 %v8138_v35 }
 0x465   :  { %6081 = vst [vmem:[%s10936_s3 + $0x2e8] sm:$0xff] %v5649_v44  ;;  %7205 = vmatmul.msk.bf16.gmra.mxu2 %vm1828_vm1, %v8122_v25 }
 0x466   :  { %v5656_v10 = vadd.f32 %v9685_v62, %v3271_v16 }
 0x468   :  { %v3128_v34 = vpop.f32.mrf.mxu1  ;;  %6088 = vst [vmem:[%s10936_s3 + $0x320] sm:$0xff] %v5656_v10  ;;  %v3558_v54 = vpop.f32.mrf.mxu2 }
 0x469   :  { %v3559_v31 = vadd.f32 %v3558_v54, %v3414_v20  ;;  %v3416_v55 = vpop.f32.mrf.mxu0 }
 0x46b   :  { %v5657_v27 = vadd.f32 %v9695_v40, %v3559_v31  ;;  %v3272_v18 = vpop.f32.mrf.mxu3 }
 0x46c   :  { %v3273_v19 = vadd.f32 %v3272_v18, %v3128_v34 }
 0x46d   :  { %6089 = vst [vmem:[%s10936_s3 + $0x328] sm:$0xff] %v5657_v27 }
 0x46e   :  { %v5664_v13 = vadd.f32 %v9685_v62, %v3273_v19 }
 0x470   :  { %v3131_v39 = vpop.f32.mrf.mxu1  ;;  %6096 = vst [vmem:[%s10936_s3 + $0x360] sm:$0xff] %v5664_v13  ;;  %7179 = vmatmul.msk.bf16.gmra.mxu3 %vm1828_vm1, %v8160_v4  ;;  %v3560_v63 = vpop.f32.mrf.mxu2  ;;  %v6730_v13 = vld [vmem:[%s10933_s1 + $0x98] sm:$0xf] }
 0x471   :  { %v3561_v32 = vadd.f32 %v3560_v63, %v3416_v55  ;;  %v3419_v20 = vpop.f32.mrf.mxu0 }
 0x473   :  { %3170 = vmatmul.bf16.gmra.mxu1 %v8176_v15  ;;  %v5665_v44 = vadd.f32 %v9695_v40, %v3561_v32  ;;  %v3275_v0 = vpop.f32.mrf.mxu3 }
 0x474   :  { %v3276_v16 = vadd.f32 %v3275_v0, %v3131_v39  ;;  %3458 = vmatmul.bf16.gmra.mxu0 %v8176_v15  ;;  %v7349_v39 = vld [vmem:[%s10933_s1 + $0xb4] sm:$0xf0]  ;;  %v6732_v0 = vld [vmem:[%s10933_s1 + $0xb8] sm:$0xf0] }
 0x475   :  { %6097 = vst [vmem:[%s10936_s3 + $0x368] sm:$0xff] %v5665_v44  ;;  %7206 = vmatmul.msk.bf16.gmra.mxu2 %vm1828_vm1, %v8160_v4  ;;  %v7345_v44 = vld [vmem:[%s10933_s1 + $0x9c] sm:$0xf] }
 0x476   :  { %v5672_v10 = vadd.f32 %v9685_v62, %v3276_v16  ;;  %v6735_v16 = vor.u32 %v7345_v44, %v6732_v0  ;;  %v7401_v0 = vld [vmem:[%s10933_s1 + $0x25c] sm:$0xf] }
 0x478   :  { %v3133_v34 = vpop.f32.mrf.mxu1  ;;  %6104 = vst [vmem:[%s10936_s3 + $0x3a0] sm:$0xff] %v5672_v10  ;;  %v3563_v54 = vpop.f32.mrf.mxu2  ;;  %3956 = vmatpush.bf16.msrb.mxu0 %v6735_v16  ;;  %v6956_v16 = vld [vmem:[%s10933_s1 + $0x278] sm:$0xf0] }
 0x479   :  { %v3564_v31 = vadd.f32 %v3563_v54, %v3419_v20  ;;  %v3421_v55 = vpop.f32.mrf.mxu0  ;;  %v6731_v20 = vor.u32 %v7349_v39, %v6730_v13  ;;  %v6954_v39 = vld [vmem:[%s10933_s1 + $0x258] sm:$0xf] }
 0x47b   :  { %v5673_v27 = vadd.f32 %v9695_v40, %v3564_v31  ;;  %v3277_v18 = vpop.f32.mrf.mxu3  ;;  %3668 = vmatpush.bf16.msrb.mxu1 %v6731_v20 }
 0x47c   :  { %v3278_v19 = vadd.f32 %v3277_v18, %v3133_v34 }
 0x47d   :  { %6105 = vst [vmem:[%s10936_s3 + $0x3a8] sm:$0xff] %v5673_v27 }
 0x47e   :  { %v5680_v63 = vadd.f32 %v9685_v62, %v3278_v19 }
 0x480   :  { %v3136_v32 = vpop.f32.mrf.mxu1  ;;  %6112 = vst [vmem:[%s10936_s3 + $0x3e0] sm:$0xff] %v5680_v63  ;;  %7180 = vmatmul.msk.bf16.gmra.mxu3 %vm1828_vm1, %v8198_v46  ;;  %v3565_v10 = vpop.f32.mrf.mxu2  ;;  %v7405_v63 = vld [vmem:[%s10933_s1 + $0x274] sm:$0xf0] }
 0x481   :  { %v3566_v34 = vadd.f32 %v3565_v10, %v3421_v55  ;;  %v3424_v54 = vpop.f32.mrf.mxu0  ;;  %v6955_v44 = vor.u32 %v7405_v63, %v6954_v39  ;;  %v6959_v10 = vor.u32 %v7401_v0, %v6956_v16 }
 0x483   :  { %3175 = vmatmul.bf16.gmra.mxu1 %v8226_v7  ;;  %v5681_v31 = vadd.f32 %v9695_v40, %v3566_v34  ;;  %v3280_v27 = vpop.f32.mrf.mxu3  ;;  %3813 = vmatpush.bf16.msrb.mxu3 %v6955_v44 }
 0x484   :  { %v3281_v18 = vadd.f32 %v3280_v27, %v3136_v32  ;;  %3463 = vmatmul.bf16.gmra.mxu0 %v8226_v7  ;;  %4101 = vmatpush.bf16.msrb.mxu2 %v6959_v10 }
 0x485   :  { %6113 = vst [vmem:[%s10936_s3 + $0x3e8] sm:$0xff] %v5681_v31  ;;  %7207 = vmatmul.msk.bf16.gmra.mxu2 %vm1828_vm1, %v8198_v46 }
 0x486   :  { %v5688_v19 = vadd.f32 %v9685_v62, %v3281_v18 }
 0x488   :  { %v3138_v55 = vpop.f32.mrf.mxu1  ;;  %6120 = vst [vmem:[%s10936_s3 + $0x420] sm:$0xff] %v5688_v19  ;;  %v3568_v13 = vpop.f32.mrf.mxu2 }
 0x489   :  { %v3569_v32 = vadd.f32 %v3568_v13, %v3424_v54  ;;  %v3426_v20 = vpop.f32.mrf.mxu0 }
 0x48b   :  { %v5689_v34 = vadd.f32 %v9695_v40, %v3569_v32  ;;  %v3282_v31 = vpop.f32.mrf.mxu3 }
 0x48c   :  { %v3283_v27 = vadd.f32 %v3282_v31, %v3138_v55 }
 0x48d   :  { %6121 = vst [vmem:[%s10936_s3 + $0x428] sm:$0xff] %v5689_v34 }
 0x48e   :  { %v5696_v54 = vadd.f32 %v9685_v62, %v3283_v27 }
 0x490   :  { %v3141_v18 = vpop.f32.mrf.mxu1  ;;  %6128 = vst [vmem:[%s10936_s3 + $0x460] sm:$0xff] %v5696_v54  ;;  %7181 = vmatmul.msk.bf16.gmra.mxu3 %vm1828_vm1, %v8260_v59  ;;  %v3570_v19 = vpop.f32.mrf.mxu2 }
 0x491   :  { %v3571_v13 = vadd.f32 %v3570_v19, %v3426_v20  ;;  %v3429_v39 = vpop.f32.mrf.mxu0 }
 0x493   :  { %3180 = vmatmul.bf16.gmra.mxu1 %v8276_v6  ;;  %v5697_v55 = vadd.f32 %v9695_v40, %v3571_v13  ;;  %v3285_v63 = vpop.f32.mrf.mxu3 }
 0x494   :  { %v3286_v32 = vadd.f32 %v3285_v63, %v3141_v18  ;;  %3468 = vmatmul.bf16.gmra.mxu0 %v8276_v6 }
 0x495   :  { %6129 = vst [vmem:[%s10936_s3 + $0x468] sm:$0xff] %v5697_v55  ;;  %7208 = vmatmul.msk.bf16.gmra.mxu2 %vm1828_vm1, %v8260_v59 }
 0x496   :  { %v5704_v44 = vadd.f32 %v9685_v62, %v3286_v32 }
 0x498   :  { %v3143_v0 = vpop.f32.mrf.mxu1  ;;  %6136 = vst [vmem:[%s10936_s3 + $0x4a0] sm:$0xff] %v5704_v44  ;;  %v3573_v20 = vpop.f32.mrf.mxu2 }
 0x499   :  { %v3574_v16 = vadd.f32 %v3573_v20, %v3429_v39  ;;  %v3431_v10 = vpop.f32.mrf.mxu0 }
 0x49b   :  { %v5705_v34 = vadd.f32 %v9695_v40, %v3574_v16  ;;  %v3287_v31 = vpop.f32.mrf.mxu3 }
 0x49c   :  { %v3288_v27 = vadd.f32 %v3287_v31, %v3143_v0 }
 0x49d   :  { %6137 = vst [vmem:[%s10936_s3 + $0x4a8] sm:$0xff] %v5705_v34 }
 0x49e   :  { %v5712_v54 = vadd.f32 %v9685_v62, %v3288_v27 }
 0x4a0   :  { %v3146_v18 = vpop.f32.mrf.mxu1  ;;  %6144 = vst [vmem:[%s10936_s3 + $0x4e0] sm:$0xff] %v5712_v54  ;;  %7182 = vmatmul.msk.bf16.gmra.mxu3 %vm1828_vm1, %v8298_v43  ;;  %v3575_v19 = vpop.f32.mrf.mxu2 }
 0x4a1   :  { %v3576_v13 = vadd.f32 %v3575_v19, %v3431_v10  ;;  %v3434_v39 = vpop.f32.mrf.mxu0 }
 0x4a3   :  { %3185 = vmatmul.bf16.gmra.mxu1 %v8314_v57  ;;  %v5713_v55 = vadd.f32 %v9695_v40, %v3576_v13  ;;  %v3290_v63 = vpop.f32.mrf.mxu3  ;;  %v6698_v13 = vld [vmem:[%s10933_s1 + $0x58] sm:$0xf] }
 0x4a4   :  { %v3291_v32 = vadd.f32 %v3290_v63, %v3146_v18  ;;  %3473 = vmatmul.bf16.gmra.mxu0 %v8314_v57 }
 0x4a5   :  { %6145 = vst [vmem:[%s10936_s3 + $0x4e8] sm:$0xff] %v5713_v55  ;;  %7209 = vmatmul.msk.bf16.gmra.mxu2 %vm1828_vm1, %v8298_v43 }
 0x4a6   :  { %v5720_v44 = vadd.f32 %v9685_v62, %v3291_v32 }
 0x4a8   :  { %v3148_v0 = vpop.f32.mrf.mxu1  ;;  %6152 = vst [vmem:[%s10936_s3 + $0x520] sm:$0xff] %v5720_v44  ;;  %v3578_v20 = vpop.f32.mrf.mxu2  ;;  %v7337_v44 = vld [vmem:[%s10933_s1 + $0x5c] sm:$0xf] }
 0x4a9   :  { %v3579_v16 = vadd.f32 %v3578_v20, %v3434_v39  ;;  %v3436_v10 = vpop.f32.mrf.mxu0  ;;  %v7341_v39 = vld [vmem:[%s10933_s1 + $0x74] sm:$0xf0] }
 0x4aa   :  { %v6699_v32 = vor.u32 %v7341_v39, %v6698_v13 }
 0x4ab   :  { %v5721_v34 = vadd.f32 %v9695_v40, %v3579_v16  ;;  %v3292_v31 = vpop.f32.mrf.mxu3 }
 0x4ac   :  { %v3293_v27 = vadd.f32 %v3292_v31, %v3148_v0  ;;  %v6700_v0 = vld [vmem:[%s10933_s1 + $0x78] sm:$0xf0]  ;;  %3669 = vmatpush.bf16.msrb.mxu1 %v6699_v32 }
 0x4ad   :  { %6153 = vst [vmem:[%s10936_s3 + $0x528] sm:$0xff] %v5721_v34  ;;  %v6703_v20 = vor.u32 %v7337_v44, %v6700_v0 }
 0x4ae   :  { %v5728_v54 = vadd.f32 %v9685_v62, %v3293_v27 }
 0x4af   :  { %3957 = vmatpush.bf16.msrb.mxu0 %v6703_v20 }
 0x4b0   :  { %v3151_v18 = vpop.f32.mrf.mxu1  ;;  %6160 = vst [vmem:[%s10936_s3 + $0x560] sm:$0xff] %v5728_v54  ;;  %7183 = vmatmul.msk.bf16.gmra.mxu3 %vm1828_vm1, %v8336_v37  ;;  %v3580_v19 = vpop.f32.mrf.mxu2 }
 0x4b1   :  { %v3581_v55 = vadd.f32 %v3580_v19, %v3436_v10  ;;  %v3439_v63 = vpop.f32.mrf.mxu0 }
 0x4b3   :  { %3190 = vmatmul.bf16.gmra.mxu1 %v8364_v1  ;;  %v5729_v16 = vadd.f32 %v9695_v40, %v3581_v55  ;;  %v3295_v34 = vpop.f32.mrf.mxu3 }
 0x4b4   :  { %v3296_v31 = vadd.f32 %v3295_v34, %v3151_v18  ;;  %3478 = vmatmul.bf16.gmra.mxu0 %v8364_v1 }
 0x4b5   :  { %6161 = vst [vmem:[%s10936_s3 + $0x568] sm:$0xff] %v5729_v16  ;;  %7210 = vmatmul.msk.bf16.gmra.mxu2 %vm1828_vm1, %v8336_v37 }
 0x4b6   :  { %v5736_v10 = vadd.f32 %v9685_v62, %v3296_v31 }
 0x4b8   :  { %v3153_v27 = vpop.f32.mrf.mxu1  ;;  %6168 = vst [vmem:[%s10936_s3 + $0x5a0] sm:$0xff] %v5736_v10  ;;  %v3583_v54 = vpop.f32.mrf.mxu2 }
 0x4b9   :  { %v3584_v19 = vadd.f32 %v3583_v54, %v3439_v63  ;;  %v3441_v18 = vpop.f32.mrf.mxu0 }
 0x4bb   :  { %v5737_v13 = vadd.f32 %v9695_v40, %v3584_v19  ;;  %v3297_v39 = vpop.f32.mrf.mxu3 }
 0x4bc   :  { %v3298_v55 = vadd.f32 %v3297_v39, %v3153_v27 }
 0x4bd   :  { %6169 = vst [vmem:[%s10936_s3 + $0x5a8] sm:$0xff] %v5737_v13 }
 0x4be   :  { %v5744_v32 = vadd.f32 %v9685_v62, %v3298_v55 }
 0x4c0   :  { %v3156_v44 = vpop.f32.mrf.mxu1  ;;  %6176 = vst [vmem:[%s10936_s3 + $0x5e0] sm:$0xff] %v5744_v32  ;;  %7184 = vmatmul.msk.bf16.gmra.mxu3 %vm1828_vm1, %v8386_v47  ;;  %v3585_v63 = vpop.f32.mrf.mxu2 }
 0x4c1   :  { %v3586_v0 = vadd.f32 %v3585_v63, %v3441_v18  ;;  %v3444_v20 = vpop.f32.mrf.mxu0 }
 0x4c3   :  { %3195 = vmatmul.bf16.gmra.mxu1 %v8402_v3  ;;  %v5745_v16 = vadd.f32 %v9695_v40, %v3586_v0  ;;  %v3300_v34 = vpop.f32.mrf.mxu3  ;;  %v6922_v0 = vld [vmem:[%s10933_s1 + $0x218] sm:$0xf] }
 0x4c4   :  { %v3301_v31 = vadd.f32 %v3300_v34, %v3156_v44  ;;  %3483 = vmatmul.bf16.gmra.mxu0 %v8402_v3 }
 0x4c5   :  { %6177 = vst [vmem:[%s10936_s3 + $0x5e8] sm:$0xff] %v5745_v16  ;;  %7211 = vmatmul.msk.bf16.gmra.mxu2 %vm1828_vm1, %v8386_v47 }
 0x4c6   :  { %v5752_v10 = vadd.f32 %v9685_v62, %v3301_v31 }
 0x4c8   :  { %v3158_v27 = vpop.f32.mrf.mxu1  ;;  %6184 = vst [vmem:[%s10936_s3 + $0x620] sm:$0xff] %v5752_v10  ;;  %v3588_v54 = vpop.f32.mrf.mxu2  ;;  %v7393_v10 = vld [vmem:[%s10933_s1 + $0x21c] sm:$0xf] }
 0x4c9   :  { %v3589_v19 = vadd.f32 %v3588_v54, %v3444_v20  ;;  %v3446_v18 = vpop.f32.mrf.mxu0  ;;  %v7397_v20 = vld [vmem:[%s10933_s1 + $0x234] sm:$0xf0] }
 0x4ca   :  { %v6923_v31 = vor.u32 %v7397_v20, %v6922_v0 }
 0x4cb   :  { %v5753_v13 = vadd.f32 %v9695_v40, %v3589_v19  ;;  %v3302_v39 = vpop.f32.mrf.mxu3 }
 0x4cc   :  { %v3303_v55 = vadd.f32 %v3302_v39, %v3158_v27  ;;  %v6924_v27 = vld [vmem:[%s10933_s1 + $0x238] sm:$0xf0]  ;;  %3814 = vmatpush.bf16.msrb.mxu3 %v6923_v31 }
 0x4cd   :  { %6185 = vst [vmem:[%s10936_s3 + $0x628] sm:$0xff] %v5753_v13  ;;  %v6927_v54 = vor.u32 %v7393_v10, %v6924_v27  ;;  %v10979_v27 = vld [vmem:[#allocation3_spill] sm:$0xff] }
 0x4ce   :  { %v5760_v32 = vadd.f32 %v9685_v62, %v3303_v55 }
 0x4cf   :  { %4102 = vmatpush.bf16.msrb.mxu2 %v6927_v54 }
 0x4d0   :  { %v3161_v44 = vpop.f32.mrf.mxu1  ;;  %6192 = vst [vmem:[%s10936_s3 + $0x660] sm:$0xff] %v5760_v32  ;;  %7185 = vmatmul.msk.bf16.gmra.mxu3 %vm1828_vm1, %v8424_v52  ;;  %v3590_v63 = vpop.f32.mrf.mxu2 }
 0x4d1   :  { %v3591_v16 = vadd.f32 %v3590_v63, %v3446_v18  ;;  %v3449_v34 = vpop.f32.mrf.mxu0 }
 0x4d3   :  { %3200 = vmatmul.bf16.gmra.mxu1 %v8452_v22  ;;  %v5761_v19 = vadd.f32 %v9695_v40, %v3591_v16  ;;  %v3305_v13 = vpop.f32.mrf.mxu3 }
 0x4d4   :  { %v3306_v39 = vadd.f32 %v3305_v13, %v3161_v44  ;;  %3488 = vmatmul.bf16.gmra.mxu0 %v8452_v22  ;;  %v10980_v13 = vld [vmem:[#allocation4_spill] sm:$0xff] }
 0x4d5   :  { %6193 = vst [vmem:[%s10936_s3 + $0x668] sm:$0xff] %v5761_v19  ;;  %7212 = vmatmul.msk.bf16.gmra.mxu2 %vm1828_vm1, %v8424_v52 }
 0x4d6   :  { %v5768_v18 = vadd.f32 %v9685_v62, %v3306_v39 }
 0x4d8   :  { %v3163_v55 = vpop.f32.mrf.mxu1  ;;  %6200 = vst [vmem:[%s10936_s3 + $0x6a0] sm:$0xff] %v5768_v18  ;;  %v3593_v32 = vpop.f32.mrf.mxu2 }
 0x4d9   :  { %v3594_v63 = vadd.f32 %v3593_v32, %v3449_v34  ;;  %v3451_v44 = vpop.f32.mrf.mxu0 }
 0x4db   :  { %v5769_v0 = vadd.f32 %v9695_v40, %v3594_v63  ;;  %v3307_v20 = vpop.f32.mrf.mxu3 }
 0x4dc   :  { %v3308_v16 = vadd.f32 %v3307_v20, %v3163_v55  ;;  %v7333_v20 = vld [vmem:[%s10933_s1 + $0x34] sm:$0xf0] }
 0x4dd   :  { %6201 = vst [vmem:[%s10936_s3 + $0x6a8] sm:$0xff] %v5769_v0  ;;  %v6666_v0 = vld [vmem:[%s10933_s1 + $0x18] sm:$0xf] }
 0x4de   :  { %v5776_v31 = vadd.f32 %v9685_v62, %v3308_v16 }
 0x4e0   :  { %v3166_v10 = vpop.f32.mrf.mxu1  ;;  %6208 = vst [vmem:[%s10936_s3 + $0x6e0] sm:$0xff] %v5776_v31  ;;  %7186 = vmatmul.msk.bf16.gmra.mxu3 %vm1828_vm1, %v10979_v27  ;;  %v3595_v34 = vpop.f32.mrf.mxu2 }
 0x4e1   :  { %v3596_v54 = vadd.f32 %v3595_v34, %v3451_v44  ;;  %v3454_v19 = vpop.f32.mrf.mxu0  ;;  %v7329_v34 = vld [vmem:[%s10933_s1 + $0x1c] sm:$0xf] }
 0x4e3   :  { %3205 = vmatmul.bf16.gmra.mxu1 %v10980_v13  ;;  %v5777_v39 = vadd.f32 %v9695_v40, %v3596_v54  ;;  %v3310_v18 = vpop.f32.mrf.mxu3  ;;  %v6668_v54 = vld [vmem:[%s10933_s1 + $0x38] sm:$0xf0] }
 0x4e4   :  { %v3311_v55 = vadd.f32 %v3310_v18, %v3166_v10  ;;  %3493 = vmatmul.bf16.gmra.mxu0 %v10980_v13  ;;  %v6667_v10 = vor.u32 %v7333_v20, %v6666_v0  ;;  %v10981_v0 = vld [vmem:[#allocation5_spill] sm:$0xff] }
 0x4e5   :  { %6209 = vst [vmem:[%s10936_s3 + $0x6e8] sm:$0xff] %v5777_v39  ;;  %7213 = vmatmul.msk.bf16.gmra.mxu2 %vm1828_vm1, %v10979_v27  ;;  %v6671_v39 = vor.u32 %v7329_v34, %v6668_v54 }
 0x4e6   :  { %v5784_v32 = vadd.f32 %v9685_v62, %v3311_v55  ;;  %3670 = vmatpush.bf16.msrb.mxu1 %v6667_v10  ;;  %v10982_v10 = vld [vmem:[#allocation6_spill] sm:$0xff] }
 0x4e7   :  { %3958 = vmatpush.bf16.msrb.mxu0 %v6671_v39 }
 0x4e8   :  { %v3168_v63 = vpop.f32.mrf.mxu1  ;;  %6216 = vst [vmem:[%s10936_s3 + $0x720] sm:$0xff] %v5784_v32  ;;  %v3598_v44 = vpop.f32.mrf.mxu2 }
 0x4e9   :  { %v3599_v16 = vadd.f32 %v3598_v44, %v3454_v19  ;;  %v3456_v31 = vpop.f32.mrf.mxu0 }
 0x4eb   :  { %v5785_v18 = vadd.f32 %v9695_v40, %v3599_v16  ;;  %v3312_v55 = vpop.f32.mrf.mxu3 }
 0x4ec   :  { %v3313_v32 = vadd.f32 %v3312_v55, %v3168_v63 }
 0x4ed   :  { %6217 = vst [vmem:[%s10936_s3 + $0x728] sm:$0xff] %v5785_v18 }
 0x4ee   :  { %v5792_v19 = vadd.f32 %v9685_v62, %v3313_v32 }
 0x4f0   :  { %v3171_v44 = vpop.f32.mrf.mxu1  ;;  %6224 = vst [vmem:[%s10936_s3 + $0x760] sm:$0xff] %v5792_v19  ;;  %7187 = vmatmul.msk.bf16.gmra.mxu3 %vm1828_vm1, %v10981_v0  ;;  %v3600_v20 = vpop.f32.mrf.mxu2 }
 0x4f1   :  { %v3601_v16 = vadd.f32 %v3600_v20, %v3456_v31  ;;  %v3459_v34 = vpop.f32.mrf.mxu0 }
 0x4f3   :  { %3210 = vmatmul.bf16.gmra.mxu1 %v10982_v10  ;;  %v5793_v63 = vadd.f32 %v9695_v40, %v3601_v16  ;;  %v3315_v54 = vpop.f32.mrf.mxu3 }
 0x4f4   :  { %v3316_v39 = vadd.f32 %v3315_v54, %v3171_v44  ;;  %3498 = vmatmul.bf16.gmra.mxu0 %v10982_v10 }
 0x4f5   :  { %6225 = vst [vmem:[%s10936_s3 + $0x768] sm:$0xff] %v5793_v63  ;;  %7214 = vmatmul.msk.bf16.gmra.mxu2 %vm1828_vm1, %v10981_v0 }
 0x4f6   :  { %v5800_v18 = vadd.f32 %v9685_v62, %v3316_v39  ;;  %v10983_v39 = vld [vmem:[#allocation7_spill] sm:$0xff] }
 0x4f8   :  { %v3173_v55 = vpop.f32.mrf.mxu1  ;;  %6232 = vst [vmem:[%s10936_s3 + $0x7a0] sm:$0xff] %v5800_v18  ;;  %v3603_v31 = vpop.f32.mrf.mxu2 }
 0x4f9   :  { %v3604_v32 = vadd.f32 %v3603_v31, %v3459_v34  ;;  %v3461_v19 = vpop.f32.mrf.mxu0 }
 0x4fb   :  { %v5801_v44 = vadd.f32 %v9695_v40, %v3604_v32  ;;  %v3317_v20 = vpop.f32.mrf.mxu3  ;;  %v10984_v32 = vld [vmem:[#allocation8_spill] sm:$0xff] }
 0x4fc   :  { %v3318_v16 = vadd.f32 %v3317_v20, %v3173_v55 }
 0x4fd   :  { %6233 = vst [vmem:[%s10936_s3 + $0x7a8] sm:$0xff] %v5801_v44 }
 0x4fe   :  { %v5808_v63 = vadd.f32 %v9685_v62, %v3318_v16 }
 0x500   :  { %v3176_v54 = vpop.f32.mrf.mxu1  ;;  %6240 = vst [vmem:[%s10936_s3 + $0x7e0] sm:$0xff] %v5808_v63  ;;  %7188 = vmatmul.msk.bf16.gmra.mxu3 %vm1828_vm1, %v10983_v39  ;;  %v3605_v34 = vpop.f32.mrf.mxu2 }
 0x501   :  { %v3606_v18 = vadd.f32 %v3605_v34, %v3461_v19  ;;  %v3464_v31 = vpop.f32.mrf.mxu0 }
 0x503   :  { %3215 = vmatmul.bf16.gmra.mxu1 %v10984_v32  ;;  %v5809_v55 = vadd.f32 %v9695_v40, %v3606_v18  ;;  %v3320_v20 = vpop.f32.mrf.mxu3 }
 0x504   :  { %v3321_v10 = vadd.f32 %v3320_v20, %v3176_v54  ;;  %3503 = vmatmul.bf16.gmra.mxu0 %v10984_v32 }
 0x505   :  { %6241 = vst [vmem:[%s10936_s3 + $0x7e8] sm:$0xff] %v5809_v55  ;;  %7215 = vmatmul.msk.bf16.gmra.mxu2 %vm1828_vm1, %v10983_v39 }
 0x506   :  { %v5816_v44 = vadd.f32 %v9685_v62, %v3321_v10  ;;  %v10985_v10 = vld [vmem:[#allocation9_spill] sm:$0xff] }
 0x508   :  { %v3178_v16 = vpop.f32.mrf.mxu1  ;;  %6248 = vst [vmem:[%s10936_s3 + $0x820] sm:$0xff] %v5816_v44  ;;  %v3608_v19 = vpop.f32.mrf.mxu2 }
 0x509   :  { %v3609_v63 = vadd.f32 %v3608_v19, %v3464_v31  ;;  %v3466_v34 = vpop.f32.mrf.mxu0 }
 0x50b   :  { %v5817_v54 = vadd.f32 %v9695_v40, %v3609_v63  ;;  %v3322_v18 = vpop.f32.mrf.mxu3  ;;  %v10986_v63 = vld [vmem:[#allocation10_spill] sm:$0xff] }
 0x50c   :  { %v3323_v20 = vadd.f32 %v3322_v18, %v3178_v16 }
 0x50d   :  { %6249 = vst [vmem:[%s10936_s3 + $0x828] sm:$0xff] %v5817_v54 }
 0x50e   :  { %v5824_v55 = vadd.f32 %v9685_v62, %v3323_v20 }
 0x510   :  { %v3181_v32 = vpop.f32.mrf.mxu1  ;;  %6256 = vst [vmem:[%s10936_s3 + $0x860] sm:$0xff] %v5824_v55  ;;  %7189 = vmatmul.msk.bf16.gmra.mxu3 %vm1828_vm1, %v10985_v10  ;;  %v3610_v31 = vpop.f32.mrf.mxu2 }
 0x511   :  { %v3611_v44 = vadd.f32 %v3610_v31, %v3466_v34  ;;  %v3469_v19 = vpop.f32.mrf.mxu0 }
 0x513   :  { %3220 = vmatmul.bf16.gmra.mxu1 %v10986_v63  ;;  %v5825_v16 = vadd.f32 %v9695_v40, %v3611_v44  ;;  %v3325_v18 = vpop.f32.mrf.mxu3 }
 0x514   :  { %v3326_v39 = vadd.f32 %v3325_v18, %v3181_v32  ;;  %3508 = vmatmul.bf16.gmra.mxu0 %v10986_v63 }
 0x515   :  { %6257 = vst [vmem:[%s10936_s3 + $0x868] sm:$0xff] %v5825_v16  ;;  %7216 = vmatmul.msk.bf16.gmra.mxu2 %vm1828_vm1, %v10985_v10 }
 0x516   :  { %v5832_v54 = vadd.f32 %v9685_v62, %v3326_v39 }
 0x518   :  { %v3183_v20 = vpop.f32.mrf.mxu1  ;;  %6264 = vst [vmem:[%s10936_s3 + $0x8a0] sm:$0xff] %v5832_v54  ;;  %v3613_v34 = vpop.f32.mrf.mxu2 }
 0x519   :  { %v3614_v55 = vadd.f32 %v3613_v34, %v3469_v19  ;;  %v3471_v31 = vpop.f32.mrf.mxu0 }
 0x51b   :  { %v5833_v32 = vadd.f32 %v9695_v40, %v3614_v55  ;;  %v3327_v44 = vpop.f32.mrf.mxu3 }
 0x51c   :  { %v3328_v18 = vadd.f32 %v3327_v44, %v3183_v20 }
 0x51d   :  { %6265 = vst [vmem:[%s10936_s3 + $0x8a8] sm:$0xff] %v5833_v32 }
 0x51e   :  { %v5840_v16 = vadd.f32 %v9685_v62, %v3328_v18 }
 0x520   :  { %v3186_v63 = vpop.f32.mrf.mxu1  ;;  %6272 = vst [vmem:[%s10936_s3 + $0x8e0] sm:$0xff] %v5840_v16  ;;  %7190 = vmatmul.msk.bf16.gmra.mxu3 %vm1828_vm1, %v8643_v23  ;;  %v3615_v39 = vpop.f32.mrf.mxu2 }
 0x521   :  { %v3616_v19 = vadd.f32 %v3615_v39, %v3471_v31  ;;  %v3474_v54 = vpop.f32.mrf.mxu0 }
 0x523   :  { %3225 = vmatmul.bf16.gmra.mxu1 %v8671_v41  ;;  %v5841_v20 = vadd.f32 %v9695_v40, %v3616_v19  ;;  %v3330_v34 = vpop.f32.mrf.mxu3 }
 0x524   :  { %v3331_v55 = vadd.f32 %v3330_v34, %v3186_v63  ;;  %3513 = vmatmul.bf16.gmra.mxu0 %v8671_v41 }
 0x525   :  { %6273 = vst [vmem:[%s10936_s3 + $0x8e8] sm:$0xff] %v5841_v20  ;;  %7217 = vmatmul.msk.bf16.gmra.mxu2 %vm1828_vm1, %v8643_v23 }
 0x526   :  { %v5848_v32 = vadd.f32 %v9685_v62, %v3331_v55 }
 0x528   :  { %v3188_v44 = vpop.f32.mrf.mxu1  ;;  %6280 = vst [vmem:[%s10936_s3 + $0x920] sm:$0xff] %v5848_v32  ;;  %v3618_v31 = vpop.f32.mrf.mxu2 }
 0x529   :  { %v3619_v18 = vadd.f32 %v3618_v31, %v3474_v54  ;;  %v3476_v16 = vpop.f32.mrf.mxu0 }
 0x52b   :  { %v5849_v63 = vadd.f32 %v9695_v40, %v3619_v18  ;;  %v3332_v39 = vpop.f32.mrf.mxu3 }
 0x52c   :  { %v3333_v19 = vadd.f32 %v3332_v39, %v3188_v44 }
 0x52d   :  { %6281 = vst [vmem:[%s10936_s3 + $0x928] sm:$0xff] %v5849_v63 }
 0x52e   :  { %v5856_v20 = vadd.f32 %v9685_v62, %v3333_v19 }
 0x530   :  { %v3191_v34 = vpop.f32.mrf.mxu1  ;;  %6288 = vst [vmem:[%s10936_s3 + $0x960] sm:$0xff] %v5856_v20  ;;  %v3620_v55 = vpop.f32.mrf.mxu2  ;;  %7218 = vmatmul.msk.bf16.vlgmr.msrb.gmra.mxu3 %vm1828_vm1, %v7635_v30 }
 0x531   :  { %v3621_v54 = vadd.f32 %v3620_v55, %v3476_v16  ;;  %v3479_v32 = vpop.f32.mrf.mxu0 }
 0x533   :  { %3671 = vmatmul.bf16.vlgmr.msrb.gmra.mxu1 %v7646_v38  ;;  %v5857_v44 = vadd.f32 %v9695_v40, %v3621_v54  ;;  %v3335_v31 = vpop.f32.mrf.mxu3 }
 0x534   :  { %v3336_v18 = vadd.f32 %v3335_v31, %v3191_v34  ;;  %3959 = vmatmul.bf16.vlgmr.msrb.gmra.mxu0 %v7646_v38 }
 0x535   :  { %6289 = vst [vmem:[%s10936_s3 + $0x968] sm:$0xff] %v5857_v44  ;;  %7245 = vmatmul.msk.bf16.vlgmr.msrb.gmra.mxu2 %vm1828_vm1, %v7635_v30 }
 0x536   :  { %v5864_v63 = vadd.f32 %v9685_v62, %v3336_v18 }
 0x538   :  { %v3193_v39 = vpop.f32.mrf.mxu1  ;;  %6296 = vst [vmem:[%s10936_s3 + $0x9a0] sm:$0xff] %v5864_v63  ;;  %v3623_v16 = vpop.f32.mrf.mxu2 }
 0x539   :  { %v3624_v19 = vadd.f32 %v3623_v16, %v3479_v32  ;;  %v3481_v20 = vpop.f32.mrf.mxu0 }
 0x53b   :  { %v5865_v34 = vadd.f32 %v9695_v40, %v3624_v19  ;;  %v3337_v38 = vpop.f32.mrf.mxu3 }
 0x53c   :  { %v3338_v55 = vadd.f32 %v3337_v38, %v3193_v39 }
 0x53d   :  { %6297 = vst [vmem:[%s10936_s3 + $0x9a8] sm:$0xff] %v5865_v34 }
 0x53e   :  { %v5872_v30 = vadd.f32 %v9685_v62, %v3338_v55 }
 0x540   :  { %v3196_v54 = vpop.f32.mrf.mxu1  ;;  %6304 = vst [vmem:[%s10936_s3 + $0x9e0] sm:$0xff] %v5872_v30  ;;  %v3625_v44 = vpop.f32.mrf.mxu2  ;;  %7219 = vmatmul.msk.bf16.gmra.mxu3 %vm1828_vm1, %v7659_v42 }
 0x541   :  { %v3626_v32 = vadd.f32 %v3625_v44, %v3481_v20  ;;  %v3484_v31 = vpop.f32.mrf.mxu0 }
 0x543   :  { %3676 = vmatmul.bf16.gmra.mxu1 %v7669_v45  ;;  %v5873_v18 = vadd.f32 %v9695_v40, %v3626_v32  ;;  %v3340_v63 = vpop.f32.mrf.mxu3 }
 0x544   :  { %v3341_v39 = vadd.f32 %v3340_v63, %v3196_v54  ;;  %3964 = vmatmul.bf16.gmra.mxu0 %v7669_v45 }
 0x545   :  { %6305 = vst [vmem:[%s10936_s3 + $0x9e8] sm:$0xff] %v5873_v18  ;;  %7246 = vmatmul.msk.bf16.gmra.mxu2 %vm1828_vm1, %v7659_v42 }
 0x546   :  { %v5880_v16 = vadd.f32 %v9685_v62, %v3341_v39 }
 0x548   :  { %v3198_v19 = vpop.f32.mrf.mxu1  ;;  %6312 = vst [vmem:[%s10936_s3 + $0xa20] sm:$0xff] %v5880_v16  ;;  %v3628_v20 = vpop.f32.mrf.mxu2 }
 0x549   :  { %v3629_v34 = vadd.f32 %v3628_v20, %v3484_v31  ;;  %v3486_v38 = vpop.f32.mrf.mxu0 }
 0x54b   :  { %v5881_v55 = vadd.f32 %v9695_v40, %v3629_v34  ;;  %v3342_v45 = vpop.f32.mrf.mxu3 }
 0x54c   :  { %v3343_v30 = vadd.f32 %v3342_v45, %v3198_v19 }
 0x54d   :  { %6313 = vst [vmem:[%s10936_s3 + $0xa28] sm:$0xff] %v5881_v55 }
 0x54e   :  { %v5888_v42 = vadd.f32 %v9685_v62, %v3343_v30 }
 0x550   :  { %v3201_v54 = vpop.f32.mrf.mxu1  ;;  %6320 = vst [vmem:[%s10936_s3 + $0xa60] sm:$0xff] %v5888_v42  ;;  %v3630_v44 = vpop.f32.mrf.mxu2  ;;  %7220 = vmatmul.msk.bf16.gmra.mxu3 %vm1828_vm1, %v7681_v48 }
 0x551   :  { %v3631_v32 = vadd.f32 %v3630_v44, %v3486_v38  ;;  %v3489_v31 = vpop.f32.mrf.mxu0 }
 0x553   :  { %3681 = vmatmul.bf16.gmra.mxu1 %v7691_v51  ;;  %v5889_v18 = vadd.f32 %v9695_v40, %v3631_v32  ;;  %v3345_v63 = vpop.f32.mrf.mxu3 }
 0x554   :  { %v3346_v39 = vadd.f32 %v3345_v63, %v3201_v54  ;;  %3969 = vmatmul.bf16.gmra.mxu0 %v7691_v51 }
 0x555   :  { %6321 = vst [vmem:[%s10936_s3 + $0xa68] sm:$0xff] %v5889_v18  ;;  %7247 = vmatmul.msk.bf16.gmra.mxu2 %vm1828_vm1, %v7681_v48 }
 0x556   :  { %v5896_v16 = vadd.f32 %v9685_v62, %v3346_v39 }
 0x558   :  { %v3203_v19 = vpop.f32.mrf.mxu1  ;;  %6328 = vst [vmem:[%s10936_s3 + $0xaa0] sm:$0xff] %v5896_v16  ;;  %v3633_v20 = vpop.f32.mrf.mxu2 }
 0x559   :  { %v3634_v34 = vadd.f32 %v3633_v20, %v3489_v31  ;;  %v3491_v38 = vpop.f32.mrf.mxu0 }
 0x55b   :  { %v5897_v55 = vadd.f32 %v9695_v40, %v3634_v34  ;;  %v3347_v51 = vpop.f32.mrf.mxu3 }
 0x55c   :  { %v3348_v45 = vadd.f32 %v3347_v51, %v3203_v19 }
 0x55d   :  { %6329 = vst [vmem:[%s10936_s3 + $0xaa8] sm:$0xff] %v5897_v55 }
 0x55e   :  { %v5904_v48 = vadd.f32 %v9685_v62, %v3348_v45 }
 0x560   :  { %v3206_v30 = vpop.f32.mrf.mxu1  ;;  %6336 = vst [vmem:[%s10936_s3 + $0xae0] sm:$0xff] %v5904_v48  ;;  %v3635_v42 = vpop.f32.mrf.mxu2  ;;  %7221 = vmatmul.msk.bf16.gmra.mxu3 %vm1828_vm1, %v7727_v2 }
 0x561   :  { %v3636_v54 = vadd.f32 %v3635_v42, %v3491_v38  ;;  %v3494_v44 = vpop.f32.mrf.mxu0 }
 0x563   :  { %3686 = vmatmul.bf16.gmra.mxu1 %v7737_v5  ;;  %v5905_v32 = vadd.f32 %v9695_v40, %v3636_v54  ;;  %v3350_v31 = vpop.f32.mrf.mxu3 }
 0x564   :  { %v3351_v18 = vadd.f32 %v3350_v31, %v3206_v30  ;;  %3974 = vmatmul.bf16.gmra.mxu0 %v7737_v5 }
 0x565   :  { %6337 = vst [vmem:[%s10936_s3 + $0xae8] sm:$0xff] %v5905_v32  ;;  %7248 = vmatmul.msk.bf16.gmra.mxu2 %vm1828_vm1, %v7727_v2 }
 0x566   :  { %v5912_v63 = vadd.f32 %v9685_v62, %v3351_v18 }
 0x568   :  { %v3208_v39 = vpop.f32.mrf.mxu1  ;;  %6344 = vst [vmem:[%s10936_s3 + $0xb20] sm:$0xff] %v5912_v63  ;;  %v3638_v16 = vpop.f32.mrf.mxu2 }
 0x569   :  { %v3639_v19 = vadd.f32 %v3638_v16, %v3494_v44  ;;  %v3496_v20 = vpop.f32.mrf.mxu0 }
 0x56b   :  { %v5913_v34 = vadd.f32 %v9695_v40, %v3639_v19  ;;  %v3352_v5 = vpop.f32.mrf.mxu3 }
 0x56c   :  { %v3353_v38 = vadd.f32 %v3352_v5, %v3208_v39 }
 0x56d   :  { %6345 = vst [vmem:[%s10936_s3 + $0xb28] sm:$0xff] %v5913_v34 }
 0x56e   :  { %v5920_v2 = vadd.f32 %v9685_v62, %v3353_v38 }
 0x570   :  { %v3211_v55 = vpop.f32.mrf.mxu1  ;;  %6352 = vst [vmem:[%s10936_s3 + $0xb60] sm:$0xff] %v5920_v2  ;;  %v3640_v51 = vpop.f32.mrf.mxu2  ;;  %7222 = vmatmul.msk.bf16.gmra.mxu3 %vm1828_vm1, %v7749_v8 }
 0x571   :  { %v3641_v45 = vadd.f32 %v3640_v51, %v3496_v20  ;;  %v3499_v48 = vpop.f32.mrf.mxu0 }
 0x573   :  { %3691 = vmatmul.bf16.gmra.mxu1 %v7759_v11  ;;  %v5921_v30 = vadd.f32 %v9695_v40, %v3641_v45  ;;  %v3355_v42 = vpop.f32.mrf.mxu3 }
 0x574   :  { %v3356_v54 = vadd.f32 %v3355_v42, %v3211_v55  ;;  %3979 = vmatmul.bf16.gmra.mxu0 %v7759_v11 }
 0x575   :  { %6353 = vst [vmem:[%s10936_s3 + $0xb68] sm:$0xff] %v5921_v30  ;;  %7249 = vmatmul.msk.bf16.gmra.mxu2 %vm1828_vm1, %v7749_v8 }
 0x576   :  { %v5928_v44 = vadd.f32 %v9685_v62, %v3356_v54 }
 0x578   :  { %v3213_v32 = vpop.f32.mrf.mxu1  ;;  %6360 = vst [vmem:[%s10936_s3 + $0xba0] sm:$0xff] %v5928_v44  ;;  %v3643_v31 = vpop.f32.mrf.mxu2 }
 0x579   :  { %v3644_v18 = vadd.f32 %v3643_v31, %v3499_v48  ;;  %v3501_v63 = vpop.f32.mrf.mxu0 }
 0x57b   :  { %v5929_v39 = vadd.f32 %v9695_v40, %v3644_v18  ;;  %v3357_v11 = vpop.f32.mrf.mxu3 }
 0x57c   :  { %v3358_v16 = vadd.f32 %v3357_v11, %v3213_v32 }
 0x57d   :  { %6361 = vst [vmem:[%s10936_s3 + $0xba8] sm:$0xff] %v5929_v39 }
 0x57e   :  { %v5936_v8 = vadd.f32 %v9685_v62, %v3358_v16 }
 0x580   :  { %v3216_v19 = vpop.f32.mrf.mxu1  ;;  %6368 = vst [vmem:[%s10936_s3 + $0xbe0] sm:$0xff] %v5936_v8  ;;  %v3645_v20 = vpop.f32.mrf.mxu2  ;;  %7223 = vmatmul.msk.bf16.gmra.mxu3 %vm1828_vm1, %v7771_v14 }
 0x581   :  { %v3646_v34 = vadd.f32 %v3645_v20, %v3501_v63  ;;  %v3504_v5 = vpop.f32.mrf.mxu0 }
 0x583   :  { %3696 = vmatmul.bf16.gmra.mxu1 %v7781_v17  ;;  %v5937_v38 = vadd.f32 %v9695_v40, %v3646_v34  ;;  %v3360_v2 = vpop.f32.mrf.mxu3 }
 0x584   :  { %v3361_v55 = vadd.f32 %v3360_v2, %v3216_v19  ;;  %3984 = vmatmul.bf16.gmra.mxu0 %v7781_v17 }
 0x585   :  { %6369 = vst [vmem:[%s10936_s3 + $0xbe8] sm:$0xff] %v5937_v38  ;;  %7250 = vmatmul.msk.bf16.gmra.mxu2 %vm1828_vm1, %v7771_v14 }
 0x586   :  { %v5944_v51 = vadd.f32 %v9685_v62, %v3361_v55 }
 0x588   :  { %v3218_v45 = vpop.f32.mrf.mxu1  ;;  %6376 = vst [vmem:[%s10936_s3 + $0xc20] sm:$0xff] %v5944_v51  ;;  %v3648_v48 = vpop.f32.mrf.mxu2 }
 0x589   :  { %v3649_v30 = vadd.f32 %v3648_v48, %v3504_v5  ;;  %v3506_v42 = vpop.f32.mrf.mxu0 }
 0x58b   :  { %v5945_v54 = vadd.f32 %v9695_v40, %v3649_v30  ;;  %v3362_v17 = vpop.f32.mrf.mxu3 }
 0x58c   :  { %v3363_v44 = vadd.f32 %v3362_v17, %v3218_v45 }
 0x58d   :  { %6377 = vst [vmem:[%s10936_s3 + $0xc28] sm:$0xff] %v5945_v54 }
 0x58e   :  { %v5952_v14 = vadd.f32 %v9685_v62, %v3363_v44 }
 0x590   :  { %v3221_v32 = vpop.f32.mrf.mxu1  ;;  %6384 = vst [vmem:[%s10936_s3 + $0xc60] sm:$0xff] %v5952_v14  ;;  %v3650_v31 = vpop.f32.mrf.mxu2  ;;  %7224 = vmatmul.msk.bf16.gmra.mxu3 %vm1828_vm1, %v7805_v26 }
 0x591   :  { %v3651_v18 = vadd.f32 %v3650_v31, %v3506_v42  ;;  %v3509_v63 = vpop.f32.mrf.mxu0 }
 0x593   :  { %3701 = vmatmul.bf16.gmra.mxu1 %v7815_v29  ;;  %v5953_v39 = vadd.f32 %v9695_v40, %v3651_v18  ;;  %v3365_v11 = vpop.f32.mrf.mxu3 }
 0x594   :  { %v3366_v16 = vadd.f32 %v3365_v11, %v3221_v32  ;;  %3989 = vmatmul.bf16.gmra.mxu0 %v7815_v29 }
 0x595   :  { %6385 = vst [vmem:[%s10936_s3 + $0xc68] sm:$0xff] %v5953_v39  ;;  %7251 = vmatmul.msk.bf16.gmra.mxu2 %vm1828_vm1, %v7805_v26 }
 0x596   :  { %v5960_v8 = vadd.f32 %v9685_v62, %v3366_v16 }
 0x598   :  { %v3223_v19 = vpop.f32.mrf.mxu1  ;;  %6392 = vst [vmem:[%s10936_s3 + $0xca0] sm:$0xff] %v5960_v8  ;;  %v3653_v20 = vpop.f32.mrf.mxu2 }
 0x599   :  { %v3654_v34 = vadd.f32 %v3653_v20, %v3509_v63  ;;  %v3511_v5 = vpop.f32.mrf.mxu0 }
 0x59b   :  { %v5961_v38 = vadd.f32 %v9695_v40, %v3654_v34  ;;  %v3367_v29 = vpop.f32.mrf.mxu3 }
 0x59c   :  { %v3368_v2 = vadd.f32 %v3367_v29, %v3223_v19  ;;  %v7432_v19 = vld [vmem:[%s10935_s2] sm:$0xff] }
 0x59d   :  { %6393 = vst [vmem:[%s10936_s3 + $0xca8] sm:$0xff] %v5961_v38  ;;  %v10382_v20 = vperm.slane %v7432_v19, 6 }
 0x59e   :  { %v5968_v26 = vadd.f32 %v9685_v62, %v3368_v2  ;;  %v10392_v2 = vperm.slane %v7432_v19, 7 }
 0x5a0   :  { %v3226_v55 = vpop.f32.mrf.mxu1  ;;  %6400 = vst [vmem:[%s10936_s3 + $0xce0] sm:$0xff] %v5968_v26  ;;  %v3655_v51 = vpop.f32.mrf.mxu2  ;;  %7225 = vmatmul.msk.bf16.gmra.mxu3 %vm1828_vm1, %v7827_v33 }
 0x5a1   :  { %v3656_v45 = vadd.f32 %v3655_v51, %v3511_v5  ;;  %v3514_v48 = vpop.f32.mrf.mxu0 }
 0x5a3   :  { %3706 = vmatmul.bf16.gmra.mxu1 %v7837_v36  ;;  %v5969_v30 = vadd.f32 %v9695_v40, %v3656_v45  ;;  %v3370_v42 = vpop.f32.mrf.mxu3 }
 0x5a4   :  { %v3371_v54 = vadd.f32 %v3370_v42, %v3226_v55  ;;  %3994 = vmatmul.bf16.gmra.mxu0 %v7837_v36 }
 0x5a5   :  { %6401 = vst [vmem:[%s10936_s3 + $0xce8] sm:$0xff] %v5969_v30  ;;  %7252 = vmatmul.msk.bf16.gmra.mxu2 %vm1828_vm1, %v7827_v33 }
 0x5a6   :  { %v5976_v17 = vadd.f32 %v9685_v62, %v3371_v54 }
 0x5a8   :  { %v3228_v44 = vpop.f32.mrf.mxu1  ;;  %6408 = vst [vmem:[%s10936_s3 + $0xd20] sm:$0xff] %v5976_v17  ;;  %v3658_v14 = vpop.f32.mrf.mxu2 }
 0x5a9   :  { %v3659_v32 = vadd.f32 %v3658_v14, %v3514_v48  ;;  %v3516_v31 = vpop.f32.mrf.mxu0 }
 0x5ab   :  { %v5977_v18 = vadd.f32 %v9695_v40, %v3659_v32  ;;  %v3372_v36 = vpop.f32.mrf.mxu3 }
 0x5ac   :  { %v3373_v63 = vadd.f32 %v3372_v36, %v3228_v44 }
 0x5ad   :  { %6409 = vst [vmem:[%s10936_s3 + $0xd28] sm:$0xff] %v5977_v18 }
 0x5ae   :  { %v5984_v33 = vadd.f32 %v9685_v62, %v3373_v63 }
 0x5b0   :  { %v3672_v39 = vpop.f32.mrf.mxu1  ;;  %6416 = vst [vmem:[%s10936_s3 + $0xd60] sm:$0xff] %v5984_v33  ;;  %v3660_v11 = vpop.f32.mrf.mxu2  ;;  %7226 = vmatmul.msk.bf16.gmra.mxu3 %vm1828_vm1, %v7861_v49 }
 0x5b1   :  { %v3661_v16 = vadd.f32 %v3660_v11, %v3516_v31  ;;  %v3960_v8 = vpop.f32.mrf.mxu0 }
 0x5b3   :  { %3711 = vmatmul.bf16.gmra.mxu1 %v7876_v56  ;;  %v5985_v62 = vadd.f32 %v9695_v40, %v3661_v16  ;;  %v3816_v34 = vpop.f32.mrf.mxu3 }
 0x5b4   :  { %v3817_v5 = vadd.f32 %v3816_v34, %v3672_v39  ;;  %3999 = vmatmul.bf16.gmra.mxu0 %v7876_v56 }
 0x5b5   :  { %6417 = vst [vmem:[%s10936_s3 + $0xd68] sm:$0xff] %v5985_v62  ;;  %7253 = vmatmul.msk.bf16.gmra.mxu2 %vm1828_vm1, %v7861_v49 }
 0x5b6   :  { %v5562_v38 = vadd.f32 %v10382_v20, %v3817_v5 }
 0x5b8   :  { %v3674_v29 = vpop.f32.mrf.mxu1  ;;  %5994 = vst [vmem:[%s10936_s3 + $0x30] sm:$0xff] %v5562_v38  ;;  %v4104_v40 = vpop.f32.mrf.mxu2 }
 0x5b9   :  { %v4105_v26 = vadd.f32 %v4104_v40, %v3960_v8  ;;  %v3962_v55 = vpop.f32.mrf.mxu0 }
 0x5bb   :  { %v5563_v56 = vadd.f32 %v10392_v2, %v4105_v26  ;;  %v3818_v51 = vpop.f32.mrf.mxu3 }
 0x5bc   :  { %v3819_v45 = vadd.f32 %v3818_v51, %v3674_v29 }
 0x5bd   :  { %5995 = vst [vmem:[%s10936_s3 + $0x38] sm:$0xff] %v5563_v56 }
 0x5be   :  { %v5570_v49 = vadd.f32 %v10382_v20, %v3819_v45 }
 0x5c0   :  { %v3677_v48 = vpop.f32.mrf.mxu1  ;;  %6002 = vst [vmem:[%s10936_s3 + $0x70] sm:$0xff] %v5570_v49  ;;  %7227 = vmatmul.msk.bf16.gmra.mxu3 %vm1828_vm1, %v7896_v12  ;;  %v4106_v30 = vpop.f32.mrf.mxu2 }
 0x5c1   :  { %v4107_v42 = vadd.f32 %v4106_v30, %v3962_v55  ;;  %v3965_v54 = vpop.f32.mrf.mxu0 }
 0x5c3   :  { %3716 = vmatmul.bf16.gmra.mxu1 %v7924_v24  ;;  %v5571_v17 = vadd.f32 %v10392_v2, %v4107_v42  ;;  %v3821_v44 = vpop.f32.mrf.mxu3 }
 0x5c4   :  { %v3822_v14 = vadd.f32 %v3821_v44, %v3677_v48  ;;  %4004 = vmatmul.bf16.gmra.mxu0 %v7924_v24 }
 0x5c5   :  { %6003 = vst [vmem:[%s10936_s3 + $0x78] sm:$0xff] %v5571_v17  ;;  %7254 = vmatmul.msk.bf16.gmra.mxu2 %vm1828_vm1, %v7896_v12 }
 0x5c6   :  { %v5578_v32 = vadd.f32 %v10382_v20, %v3822_v14 }
 0x5c8   :  { %v3679_v31 = vpop.f32.mrf.mxu1  ;;  %6010 = vst [vmem:[%s10936_s3 + $0xb0] sm:$0xff] %v5578_v32  ;;  %v4109_v18 = vpop.f32.mrf.mxu2 }
 0x5c9   :  { %v4110_v36 = vadd.f32 %v4109_v18, %v3965_v54  ;;  %v3967_v63 = vpop.f32.mrf.mxu0 }
 0x5cb   :  { %v5579_v33 = vadd.f32 %v10392_v2, %v4110_v36  ;;  %v3823_v24 = vpop.f32.mrf.mxu3 }
 0x5cc   :  { %v3824_v39 = vadd.f32 %v3823_v24, %v3679_v31 }
 0x5cd   :  { %6011 = vst [vmem:[%s10936_s3 + $0xb8] sm:$0xff] %v5579_v33 }
 0x5ce   :  { %v5586_v12 = vadd.f32 %v10382_v20, %v3824_v39 }
 0x5d0   :  { %v3682_v11 = vpop.f32.mrf.mxu1  ;;  %6018 = vst [vmem:[%s10936_s3 + $0xf0] sm:$0xff] %v5586_v12  ;;  %7228 = vmatmul.msk.bf16.gmra.mxu3 %vm1828_vm1, %v7946_v53  ;;  %v4111_v16 = vpop.f32.mrf.mxu2 }
 0x5d1   :  { %v4112_v8 = vadd.f32 %v4111_v16, %v3967_v63  ;;  %v3970_v19 = vpop.f32.mrf.mxu0 }
 0x5d3   :  { %3721 = vmatmul.bf16.gmra.mxu1 %v7962_v60  ;;  %v5587_v62 = vadd.f32 %v10392_v2, %v4112_v8  ;;  %v3826_v34 = vpop.f32.mrf.mxu3 }
 0x5d4   :  { %v3827_v5 = vadd.f32 %v3826_v34, %v3682_v11  ;;  %4009 = vmatmul.bf16.gmra.mxu0 %v7962_v60 }
 0x5d5   :  { %6019 = vst [vmem:[%s10936_s3 + $0xf8] sm:$0xff] %v5587_v62  ;;  %7255 = vmatmul.msk.bf16.gmra.mxu2 %vm1828_vm1, %v7946_v53 }
 0x5d6   :  { %v5594_v38 = vadd.f32 %v10382_v20, %v3827_v5 }
 0x5d8   :  { %v3684_v29 = vpop.f32.mrf.mxu1  ;;  %6026 = vst [vmem:[%s10936_s3 + $0x130] sm:$0xff] %v5594_v38  ;;  %v4114_v40 = vpop.f32.mrf.mxu2 }
 0x5d9   :  { %v4115_v26 = vadd.f32 %v4114_v40, %v3970_v19  ;;  %v3972_v55 = vpop.f32.mrf.mxu0 }
 0x5db   :  { %v5595_v56 = vadd.f32 %v10392_v2, %v4115_v26  ;;  %v3828_v60 = vpop.f32.mrf.mxu3 }
 0x5dc   :  { %v3829_v51 = vadd.f32 %v3828_v60, %v3684_v29 }
 0x5dd   :  { %6027 = vst [vmem:[%s10936_s3 + $0x138] sm:$0xff] %v5595_v56 }
 0x5de   :  { %v5602_v53 = vadd.f32 %v10382_v20, %v3829_v51 }
 0x5e0   :  { %v3687_v45 = vpop.f32.mrf.mxu1  ;;  %6034 = vst [vmem:[%s10936_s3 + $0x170] sm:$0xff] %v5602_v53  ;;  %7229 = vmatmul.msk.bf16.gmra.mxu3 %vm1828_vm1, %v7984_v21  ;;  %v4116_v49 = vpop.f32.mrf.mxu2 }
 0x5e1   :  { %v4117_v48 = vadd.f32 %v4116_v49, %v3972_v55  ;;  %v3975_v30 = vpop.f32.mrf.mxu0 }
 0x5e3   :  { %3726 = vmatmul.bf16.gmra.mxu1 %v8000_v28  ;;  %v5603_v42 = vadd.f32 %v10392_v2, %v4117_v48  ;;  %v3831_v54 = vpop.f32.mrf.mxu3 }
 0x5e4   :  { %v3832_v17 = vadd.f32 %v3831_v54, %v3687_v45  ;;  %4014 = vmatmul.bf16.gmra.mxu0 %v8000_v28 }
 0x5e5   :  { %6035 = vst [vmem:[%s10936_s3 + $0x178] sm:$0xff] %v5603_v42  ;;  %7256 = vmatmul.msk.bf16.gmra.mxu2 %vm1828_vm1, %v7984_v21 }
 0x5e6   :  { %v5610_v44 = vadd.f32 %v10382_v20, %v3832_v17 }
 0x5e8   :  { %v3689_v14 = vpop.f32.mrf.mxu1  ;;  %6042 = vst [vmem:[%s10936_s3 + $0x1b0] sm:$0xff] %v5610_v44  ;;  %v4119_v32 = vpop.f32.mrf.mxu2 }
 0x5e9   :  { %v4120_v31 = vadd.f32 %v4119_v32, %v3975_v30  ;;  %v3977_v18 = vpop.f32.mrf.mxu0 }
 0x5eb   :  { %v5611_v36 = vadd.f32 %v10392_v2, %v4120_v31  ;;  %v3833_v28 = vpop.f32.mrf.mxu3 }
 0x5ec   :  { %v3834_v63 = vadd.f32 %v3833_v28, %v3689_v14 }
 0x5ed   :  { %6043 = vst [vmem:[%s10936_s3 + $0x1b8] sm:$0xff] %v5611_v36 }
 0x5ee   :  { %v5618_v21 = vadd.f32 %v10382_v20, %v3834_v63 }
 0x5f0   :  { %v3692_v33 = vpop.f32.mrf.mxu1  ;;  %6050 = vst [vmem:[%s10936_s3 + $0x1f0] sm:$0xff] %v5618_v21  ;;  %7230 = vmatmul.msk.bf16.gmra.mxu3 %vm1828_vm1, %v8022_v58  ;;  %v4121_v24 = vpop.f32.mrf.mxu2 }
 0x5f1   :  { %v4122_v39 = vadd.f32 %v4121_v24, %v3977_v18  ;;  %v3980_v12 = vpop.f32.mrf.mxu0 }
 0x5f3   :  { %3731 = vmatmul.bf16.gmra.mxu1 %v8050_v9  ;;  %v5619_v11 = vadd.f32 %v10392_v2, %v4122_v39  ;;  %v3836_v16 = vpop.f32.mrf.mxu3 }
 0x5f4   :  { %v3837_v8 = vadd.f32 %v3836_v16, %v3692_v33  ;;  %4019 = vmatmul.bf16.gmra.mxu0 %v8050_v9 }
 0x5f5   :  { %6051 = vst [vmem:[%s10936_s3 + $0x1f8] sm:$0xff] %v5619_v11  ;;  %7257 = vmatmul.msk.bf16.gmra.mxu2 %vm1828_vm1, %v8022_v58 }
 0x5f6   :  { %v5626_v19 = vadd.f32 %v10382_v20, %v3837_v8 }
 0x5f8   :  { %v3694_v62 = vpop.f32.mrf.mxu1  ;;  %6058 = vst [vmem:[%s10936_s3 + $0x230] sm:$0xff] %v5626_v19  ;;  %v4124_v34 = vpop.f32.mrf.mxu2 }
 0x5f9   :  { %v4125_v5 = vadd.f32 %v4124_v34, %v3980_v12  ;;  %v3982_v38 = vpop.f32.mrf.mxu0 }
 0x5fb   :  { %v5627_v29 = vadd.f32 %v10392_v2, %v4125_v5  ;;  %v3838_v9 = vpop.f32.mrf.mxu3 }
 0x5fc   :  { %v3839_v40 = vadd.f32 %v3838_v9, %v3694_v62 }
 0x5fd   :  { %6059 = vst [vmem:[%s10936_s3 + $0x238] sm:$0xff] %v5627_v29 }
 0x5fe   :  { %v5634_v58 = vadd.f32 %v10382_v20, %v3839_v40 }
 0x600   :  { %v3697_v26 = vpop.f32.mrf.mxu1  ;;  %6066 = vst [vmem:[%s10936_s3 + $0x270] sm:$0xff] %v5634_v58  ;;  %7231 = vmatmul.msk.bf16.gmra.mxu3 %vm1828_vm1, %v8084_v50  ;;  %v4126_v55 = vpop.f32.mrf.mxu2 }
 0x601   :  { %v4127_v56 = vadd.f32 %v4126_v55, %v3982_v38  ;;  %v3985_v60 = vpop.f32.mrf.mxu0 }
 0x603   :  { %3736 = vmatmul.bf16.gmra.mxu1 %v8100_v61  ;;  %v5635_v51 = vadd.f32 %v10392_v2, %v4127_v56  ;;  %v3841_v53 = vpop.f32.mrf.mxu3 }
 0x604   :  { %v3842_v45 = vadd.f32 %v3841_v53, %v3697_v26  ;;  %4024 = vmatmul.bf16.gmra.mxu0 %v8100_v61 }
 0x605   :  { %6067 = vst [vmem:[%s10936_s3 + $0x278] sm:$0xff] %v5635_v51  ;;  %7258 = vmatmul.msk.bf16.gmra.mxu2 %vm1828_vm1, %v8084_v50 }
 0x606   :  { %v5642_v49 = vadd.f32 %v10382_v20, %v3842_v45 }
 0x608   :  { %v3699_v48 = vpop.f32.mrf.mxu1  ;;  %6074 = vst [vmem:[%s10936_s3 + $0x2b0] sm:$0xff] %v5642_v49  ;;  %v4129_v30 = vpop.f32.mrf.mxu2 }
 0x609   :  { %v4130_v42 = vadd.f32 %v4129_v30, %v3985_v60  ;;  %v3987_v54 = vpop.f32.mrf.mxu0 }
 0x60b   :  { %v5643_v17 = vadd.f32 %v10392_v2, %v4130_v42  ;;  %v3843_v61 = vpop.f32.mrf.mxu3 }
 0x60c   :  { %v3844_v44 = vadd.f32 %v3843_v61, %v3699_v48 }
 0x60d   :  { %6075 = vst [vmem:[%s10936_s3 + $0x2b8] sm:$0xff] %v5643_v17 }
 0x60e   :  { %v5650_v50 = vadd.f32 %v10382_v20, %v3844_v44 }
 0x610   :  { %v3702_v14 = vpop.f32.mrf.mxu1  ;;  %6082 = vst [vmem:[%s10936_s3 + $0x2f0] sm:$0xff] %v5650_v50  ;;  %7232 = vmatmul.msk.bf16.gmra.mxu3 %vm1828_vm1, %v8122_v25  ;;  %v4131_v32 = vpop.f32.mrf.mxu2 }
 0x611   :  { %v4132_v31 = vadd.f32 %v4131_v32, %v3987_v54  ;;  %v3990_v18 = vpop.f32.mrf.mxu0 }
 0x613   :  { %3741 = vmatmul.bf16.gmra.mxu1 %v8138_v35  ;;  %v5651_v36 = vadd.f32 %v10392_v2, %v4132_v31  ;;  %v3846_v28 = vpop.f32.mrf.mxu3 }
 0x614   :  { %v3847_v63 = vadd.f32 %v3846_v28, %v3702_v14  ;;  %4029 = vmatmul.bf16.gmra.mxu0 %v8138_v35 }
 0x615   :  { %6083 = vst [vmem:[%s10936_s3 + $0x2f8] sm:$0xff] %v5651_v36  ;;  %7259 = vmatmul.msk.bf16.gmra.mxu2 %vm1828_vm1, %v8122_v25 }
 0x616   :  { %v5658_v21 = vadd.f32 %v10382_v20, %v3847_v63 }
 0x618   :  { %v3704_v33 = vpop.f32.mrf.mxu1  ;;  %6090 = vst [vmem:[%s10936_s3 + $0x330] sm:$0xff] %v5658_v21  ;;  %v4134_v24 = vpop.f32.mrf.mxu2 }
 0x619   :  { %v4135_v39 = vadd.f32 %v4134_v24, %v3990_v18  ;;  %v3992_v12 = vpop.f32.mrf.mxu0 }
 0x61b   :  { %v5659_v11 = vadd.f32 %v10392_v2, %v4135_v39  ;;  %v3848_v35 = vpop.f32.mrf.mxu3 }
 0x61c   :  { %v3849_v16 = vadd.f32 %v3848_v35, %v3704_v33 }
 0x61d   :  { %6091 = vst [vmem:[%s10936_s3 + $0x338] sm:$0xff] %v5659_v11 }
 0x61e   :  { %v5666_v25 = vadd.f32 %v10382_v20, %v3849_v16 }
 0x620   :  { %v3707_v8 = vpop.f32.mrf.mxu1  ;;  %6098 = vst [vmem:[%s10936_s3 + $0x370] sm:$0xff] %v5666_v25  ;;  %7233 = vmatmul.msk.bf16.gmra.mxu3 %vm1828_vm1, %v8160_v4  ;;  %v4136_v19 = vpop.f32.mrf.mxu2 }
 0x621   :  { %v4137_v62 = vadd.f32 %v4136_v19, %v3992_v12  ;;  %v3995_v34 = vpop.f32.mrf.mxu0 }
 0x623   :  { %3746 = vmatmul.bf16.gmra.mxu1 %v8176_v15  ;;  %v5667_v5 = vadd.f32 %v10392_v2, %v4137_v62  ;;  %v3851_v38 = vpop.f32.mrf.mxu3 }
 0x624   :  { %v3852_v29 = vadd.f32 %v3851_v38, %v3707_v8  ;;  %4034 = vmatmul.bf16.gmra.mxu0 %v8176_v15 }
 0x625   :  { %6099 = vst [vmem:[%s10936_s3 + $0x378] sm:$0xff] %v5667_v5  ;;  %7260 = vmatmul.msk.bf16.gmra.mxu2 %vm1828_vm1, %v8160_v4 }
 0x626   :  { %v5674_v9 = vadd.f32 %v10382_v20, %v3852_v29 }
 0x628   :  { %v3709_v40 = vpop.f32.mrf.mxu1  ;;  %6106 = vst [vmem:[%s10936_s3 + $0x3b0] sm:$0xff] %v5674_v9  ;;  %v4139_v58 = vpop.f32.mrf.mxu2 }
 0x629   :  { %v4140_v26 = vadd.f32 %v4139_v58, %v3995_v34  ;;  %v3997_v55 = vpop.f32.mrf.mxu0 }
 0x62b   :  { %v5675_v56 = vadd.f32 %v10392_v2, %v4140_v26  ;;  %v3853_v15 = vpop.f32.mrf.mxu3 }
 0x62c   :  { %v3854_v60 = vadd.f32 %v3853_v15, %v3709_v40 }
 0x62d   :  { %6107 = vst [vmem:[%s10936_s3 + $0x3b8] sm:$0xff] %v5675_v56 }
 0x62e   :  { %v5682_v4 = vadd.f32 %v10382_v20, %v3854_v60 }
 0x630   :  { %v3712_v51 = vpop.f32.mrf.mxu1  ;;  %6114 = vst [vmem:[%s10936_s3 + $0x3f0] sm:$0xff] %v5682_v4  ;;  %7234 = vmatmul.msk.bf16.gmra.mxu3 %vm1828_vm1, %v8198_v46  ;;  %v4141_v53 = vpop.f32.mrf.mxu2 }
 0x631   :  { %v4142_v45 = vadd.f32 %v4141_v53, %v3997_v55  ;;  %v4000_v49 = vpop.f32.mrf.mxu0 }
 0x633   :  { %3751 = vmatmul.bf16.gmra.mxu1 %v8226_v7  ;;  %v5683_v48 = vadd.f32 %v10392_v2, %v4142_v45  ;;  %v3856_v30 = vpop.f32.mrf.mxu3 }
 0x634   :  { %v3857_v42 = vadd.f32 %v3856_v30, %v3712_v51  ;;  %4039 = vmatmul.bf16.gmra.mxu0 %v8226_v7 }
 0x635   :  { %6115 = vst [vmem:[%s10936_s3 + $0x3f8] sm:$0xff] %v5683_v48  ;;  %7261 = vmatmul.msk.bf16.gmra.mxu2 %vm1828_vm1, %v8198_v46 }
 0x636   :  { %v5690_v54 = vadd.f32 %v10382_v20, %v3857_v42 }
 0x638   :  { %v3714_v17 = vpop.f32.mrf.mxu1  ;;  %6122 = vst [vmem:[%s10936_s3 + $0x430] sm:$0xff] %v5690_v54  ;;  %v4144_v61 = vpop.f32.mrf.mxu2 }
 0x639   :  { %v4145_v44 = vadd.f32 %v4144_v61, %v4000_v49  ;;  %v4002_v50 = vpop.f32.mrf.mxu0 }
 0x63b   :  { %v5691_v14 = vadd.f32 %v10392_v2, %v4145_v44  ;;  %v3858_v7 = vpop.f32.mrf.mxu3 }
 0x63c   :  { %v3859_v32 = vadd.f32 %v3858_v7, %v3714_v17 }
 0x63d   :  { %6123 = vst [vmem:[%s10936_s3 + $0x438] sm:$0xff] %v5691_v14 }
 0x63e   :  { %v5698_v46 = vadd.f32 %v10382_v20, %v3859_v32 }
 0x640   :  { %v3717_v31 = vpop.f32.mrf.mxu1  ;;  %6130 = vst [vmem:[%s10936_s3 + $0x470] sm:$0xff] %v5698_v46  ;;  %7235 = vmatmul.msk.bf16.gmra.mxu3 %vm1828_vm1, %v8260_v59  ;;  %v4146_v18 = vpop.f32.mrf.mxu2 }
 0x641   :  { %v4147_v36 = vadd.f32 %v4146_v18, %v4002_v50  ;;  %v4005_v28 = vpop.f32.mrf.mxu0 }
 0x643   :  { %3756 = vmatmul.bf16.gmra.mxu1 %v8276_v6  ;;  %v5699_v63 = vadd.f32 %v10392_v2, %v4147_v36  ;;  %v3861_v21 = vpop.f32.mrf.mxu3 }
 0x644   :  { %v3862_v33 = vadd.f32 %v3861_v21, %v3717_v31  ;;  %4044 = vmatmul.bf16.gmra.mxu0 %v8276_v6 }
 0x645   :  { %6131 = vst [vmem:[%s10936_s3 + $0x478] sm:$0xff] %v5699_v63  ;;  %7262 = vmatmul.msk.bf16.gmra.mxu2 %vm1828_vm1, %v8260_v59 }
 0x646   :  { %v5706_v24 = vadd.f32 %v10382_v20, %v3862_v33 }
 0x648   :  { %v3719_v39 = vpop.f32.mrf.mxu1  ;;  %6138 = vst [vmem:[%s10936_s3 + $0x4b0] sm:$0xff] %v5706_v24  ;;  %v4149_v12 = vpop.f32.mrf.mxu2 }
 0x649   :  { %v4150_v11 = vadd.f32 %v4149_v12, %v4005_v28  ;;  %v4007_v35 = vpop.f32.mrf.mxu0 }
 0x64b   :  { %v5707_v16 = vadd.f32 %v10392_v2, %v4150_v11  ;;  %v3863_v6 = vpop.f32.mrf.mxu3 }
 0x64c   :  { %v3864_v25 = vadd.f32 %v3863_v6, %v3719_v39 }
 0x64d   :  { %6139 = vst [vmem:[%s10936_s3 + $0x4b8] sm:$0xff] %v5707_v16 }
 0x64e   :  { %v5714_v59 = vadd.f32 %v10382_v20, %v3864_v25 }
 0x650   :  { %v3722_v8 = vpop.f32.mrf.mxu1  ;;  %6146 = vst [vmem:[%s10936_s3 + $0x4f0] sm:$0xff] %v5714_v59  ;;  %7236 = vmatmul.msk.bf16.gmra.mxu3 %vm1828_vm1, %v8298_v43  ;;  %v4151_v19 = vpop.f32.mrf.mxu2 }
 0x651   :  { %v4152_v62 = vadd.f32 %v4151_v19, %v4007_v35  ;;  %v4010_v34 = vpop.f32.mrf.mxu0 }
 0x653   :  { %3761 = vmatmul.bf16.gmra.mxu1 %v8314_v57  ;;  %v5715_v5 = vadd.f32 %v10392_v2, %v4152_v62  ;;  %v3866_v38 = vpop.f32.mrf.mxu3 }
 0x654   :  { %v3867_v29 = vadd.f32 %v3866_v38, %v3722_v8  ;;  %4049 = vmatmul.bf16.gmra.mxu0 %v8314_v57 }
 0x655   :  { %6147 = vst [vmem:[%s10936_s3 + $0x4f8] sm:$0xff] %v5715_v5  ;;  %7263 = vmatmul.msk.bf16.gmra.mxu2 %vm1828_vm1, %v8298_v43 }
 0x656   :  { %v5722_v9 = vadd.f32 %v10382_v20, %v3867_v29 }
 0x658   :  { %v3724_v40 = vpop.f32.mrf.mxu1  ;;  %6154 = vst [vmem:[%s10936_s3 + $0x530] sm:$0xff] %v5722_v9  ;;  %v4154_v58 = vpop.f32.mrf.mxu2 }
 0x659   :  { %v4155_v26 = vadd.f32 %v4154_v58, %v4010_v34  ;;  %v4012_v55 = vpop.f32.mrf.mxu0 }
 0x65b   :  { %v5723_v56 = vadd.f32 %v10392_v2, %v4155_v26  ;;  %v3868_v57 = vpop.f32.mrf.mxu3 }
 0x65c   :  { %v3869_v15 = vadd.f32 %v3868_v57, %v3724_v40 }
 0x65d   :  { %6155 = vst [vmem:[%s10936_s3 + $0x538] sm:$0xff] %v5723_v56 }
 0x65e   :  { %v5730_v43 = vadd.f32 %v10382_v20, %v3869_v15 }
 0x660   :  { %v3727_v60 = vpop.f32.mrf.mxu1  ;;  %6162 = vst [vmem:[%s10936_s3 + $0x570] sm:$0xff] %v5730_v43  ;;  %7237 = vmatmul.msk.bf16.gmra.mxu3 %vm1828_vm1, %v8336_v37  ;;  %v4156_v4 = vpop.f32.mrf.mxu2 }
 0x661   :  { %v4157_v51 = vadd.f32 %v4156_v4, %v4012_v55  ;;  %v4015_v53 = vpop.f32.mrf.mxu0 }
 0x663   :  { %3766 = vmatmul.bf16.gmra.mxu1 %v8364_v1  ;;  %v5731_v45 = vadd.f32 %v10392_v2, %v4157_v51  ;;  %v3871_v49 = vpop.f32.mrf.mxu3 }
 0x664   :  { %v3872_v48 = vadd.f32 %v3871_v49, %v3727_v60  ;;  %4054 = vmatmul.bf16.gmra.mxu0 %v8364_v1 }
 0x665   :  { %6163 = vst [vmem:[%s10936_s3 + $0x578] sm:$0xff] %v5731_v45  ;;  %7264 = vmatmul.msk.bf16.gmra.mxu2 %vm1828_vm1, %v8336_v37 }
 0x666   :  { %v5738_v30 = vadd.f32 %v10382_v20, %v3872_v48 }
 0x668   :  { %v3729_v42 = vpop.f32.mrf.mxu1  ;;  %6170 = vst [vmem:[%s10936_s3 + $0x5b0] sm:$0xff] %v5738_v30  ;;  %v4159_v54 = vpop.f32.mrf.mxu2 }
 0x669   :  { %v4160_v17 = vadd.f32 %v4159_v54, %v4015_v53  ;;  %v4017_v61 = vpop.f32.mrf.mxu0 }
 0x66b   :  { %v5739_v44 = vadd.f32 %v10392_v2, %v4160_v17  ;;  %v3873_v1 = vpop.f32.mrf.mxu3  ;;  %v10987_v17 = vld [vmem:[#allocation6_spill] sm:$0xff] }
 0x66c   :  { %v3874_v50 = vadd.f32 %v3873_v1, %v3729_v42 }
 0x66d   :  { %6171 = vst [vmem:[%s10936_s3 + $0x5b8] sm:$0xff] %v5739_v44 }
 0x66e   :  { %v5746_v37 = vadd.f32 %v10382_v20, %v3874_v50 }
 0x670   :  { %v3732_v14 = vpop.f32.mrf.mxu1  ;;  %6178 = vst [vmem:[%s10936_s3 + $0x5f0] sm:$0xff] %v5746_v37  ;;  %7238 = vmatmul.msk.bf16.gmra.mxu3 %vm1828_vm1, %v8386_v47  ;;  %v4161_v7 = vpop.f32.mrf.mxu2 }
 0x671   :  { %v4162_v32 = vadd.f32 %v4161_v7, %v4017_v61  ;;  %v4020_v46 = vpop.f32.mrf.mxu0 }
 0x673   :  { %3771 = vmatmul.bf16.gmra.mxu1 %v8402_v3  ;;  %v5747_v31 = vadd.f32 %v10392_v2, %v4162_v32  ;;  %v3876_v18 = vpop.f32.mrf.mxu3 }
 0x674   :  { %v3877_v36 = vadd.f32 %v3876_v18, %v3732_v14  ;;  %4059 = vmatmul.bf16.gmra.mxu0 %v8402_v3 }
 0x675   :  { %6179 = vst [vmem:[%s10936_s3 + $0x5f8] sm:$0xff] %v5747_v31  ;;  %7265 = vmatmul.msk.bf16.gmra.mxu2 %vm1828_vm1, %v8386_v47 }
 0x676   :  { %v5754_v28 = vadd.f32 %v10382_v20, %v3877_v36 }
 0x678   :  { %v3734_v63 = vpop.f32.mrf.mxu1  ;;  %6186 = vst [vmem:[%s10936_s3 + $0x630] sm:$0xff] %v5754_v28  ;;  %v4164_v21 = vpop.f32.mrf.mxu2  ;;  %v10988_v28 = vld [vmem:[#allocation7_spill] sm:$0xff] }
 0x679   :  { %v4165_v33 = vadd.f32 %v4164_v21, %v4020_v46  ;;  %v4022_v24 = vpop.f32.mrf.mxu0 }
 0x67b   :  { %v5755_v39 = vadd.f32 %v10392_v2, %v4165_v33  ;;  %v3878_v3 = vpop.f32.mrf.mxu3 }
 0x67c   :  { %v3879_v12 = vadd.f32 %v3878_v3, %v3734_v63 }
 0x67d   :  { %6187 = vst [vmem:[%s10936_s3 + $0x638] sm:$0xff] %v5755_v39 }
 0x67e   :  { %v5762_v47 = vadd.f32 %v10382_v20, %v3879_v12 }
 0x680   :  { %v3737_v11 = vpop.f32.mrf.mxu1  ;;  %6194 = vst [vmem:[%s10936_s3 + $0x670] sm:$0xff] %v5762_v47  ;;  %7239 = vmatmul.msk.bf16.gmra.mxu3 %vm1828_vm1, %v8424_v52  ;;  %v4166_v35 = vpop.f32.mrf.mxu2 }
 0x681   :  { %v4167_v16 = vadd.f32 %v4166_v35, %v4022_v24  ;;  %v4025_v6 = vpop.f32.mrf.mxu0  ;;  %v10989_v24 = vld [vmem:[#allocation8_spill] sm:$0xff] }
 0x683   :  { %3776 = vmatmul.bf16.gmra.mxu1 %v8452_v22  ;;  %v5763_v25 = vadd.f32 %v10392_v2, %v4167_v16  ;;  %v3881_v59 = vpop.f32.mrf.mxu3 }
 0x684   :  { %v3882_v8 = vadd.f32 %v3881_v59, %v3737_v11  ;;  %4064 = vmatmul.bf16.gmra.mxu0 %v8452_v22 }
 0x685   :  { %6195 = vst [vmem:[%s10936_s3 + $0x678] sm:$0xff] %v5763_v25  ;;  %7266 = vmatmul.msk.bf16.gmra.mxu2 %vm1828_vm1, %v8424_v52 }
 0x686   :  { %v5770_v19 = vadd.f32 %v10382_v20, %v3882_v8 }
 0x688   :  { %v3739_v62 = vpop.f32.mrf.mxu1  ;;  %6202 = vst [vmem:[%s10936_s3 + $0x6b0] sm:$0xff] %v5770_v19  ;;  %v4169_v34 = vpop.f32.mrf.mxu2 }
 0x689   :  { %v4170_v5 = vadd.f32 %v4169_v34, %v4025_v6  ;;  %v4027_v38 = vpop.f32.mrf.mxu0 }
 0x68b   :  { %v5771_v29 = vadd.f32 %v10392_v2, %v4170_v5  ;;  %v3883_v22 = vpop.f32.mrf.mxu3 }
 0x68c   :  { %v3884_v9 = vadd.f32 %v3883_v22, %v3739_v62 }
 0x68d   :  { %6203 = vst [vmem:[%s10936_s3 + $0x6b8] sm:$0xff] %v5771_v29  ;;  %v10990_v29 = vld [vmem:[#allocation10_spill] sm:$0xff] }
 0x68e   :  { %v5778_v52 = vadd.f32 %v10382_v20, %v3884_v9 }
 0x690   :  { %v3742_v40 = vpop.f32.mrf.mxu1  ;;  %6210 = vst [vmem:[%s10936_s3 + $0x6f0] sm:$0xff] %v5778_v52  ;;  %7240 = vmatmul.msk.bf16.gmra.mxu3 %vm1828_vm1, %v10979_v27  ;;  %v4171_v58 = vpop.f32.mrf.mxu2 }
 0x691   :  { %v4172_v26 = vadd.f32 %v4171_v58, %v4027_v38  ;;  %v4030_v55 = vpop.f32.mrf.mxu0 }
 0x693   :  { %3781 = vmatmul.bf16.gmra.mxu1 %v10980_v13  ;;  %v5779_v56 = vadd.f32 %v10392_v2, %v4172_v26  ;;  %v3886_v57 = vpop.f32.mrf.mxu3 }
 0x694   :  { %v3887_v15 = vadd.f32 %v3886_v57, %v3742_v40  ;;  %4069 = vmatmul.bf16.gmra.mxu0 %v10980_v13 }
 0x695   :  { %6211 = vst [vmem:[%s10936_s3 + $0x6f8] sm:$0xff] %v5779_v56  ;;  %7267 = vmatmul.msk.bf16.gmra.mxu2 %vm1828_vm1, %v10979_v27 }
 0x696   :  { %v5786_v43 = vadd.f32 %v10382_v20, %v3887_v15 }
 0x698   :  { %v3744_v60 = vpop.f32.mrf.mxu1  ;;  %6218 = vst [vmem:[%s10936_s3 + $0x730] sm:$0xff] %v5786_v43  ;;  %v4174_v4 = vpop.f32.mrf.mxu2 }
 0x699   :  { %v4175_v51 = vadd.f32 %v4174_v4, %v4030_v55  ;;  %v4032_v53 = vpop.f32.mrf.mxu0 }
 0x69b   :  { %v5787_v45 = vadd.f32 %v10392_v2, %v4175_v51  ;;  %v3888_v13 = vpop.f32.mrf.mxu3 }
 0x69c   :  { %v3889_v49 = vadd.f32 %v3888_v13, %v3744_v60 }
 0x69d   :  { %6219 = vst [vmem:[%s10936_s3 + $0x738] sm:$0xff] %v5787_v45 }
 0x69e   :  { %v5794_v27 = vadd.f32 %v10382_v20, %v3889_v49 }
 0x6a0   :  { %v3747_v48 = vpop.f32.mrf.mxu1  ;;  %6226 = vst [vmem:[%s10936_s3 + $0x770] sm:$0xff] %v5794_v27  ;;  %7241 = vmatmul.msk.bf16.gmra.mxu3 %vm1828_vm1, %v10981_v0  ;;  %v4176_v30 = vpop.f32.mrf.mxu2 }
 0x6a1   :  { %v4177_v42 = vadd.f32 %v4176_v30, %v4032_v53  ;;  %v4035_v54 = vpop.f32.mrf.mxu0 }
 0x6a3   :  { %3786 = vmatmul.bf16.gmra.mxu1 %v10987_v17  ;;  %v5795_v61 = vadd.f32 %v10392_v2, %v4177_v42  ;;  %v3891_v44 = vpop.f32.mrf.mxu3 }
 0x6a4   :  { %v3892_v1 = vadd.f32 %v3891_v44, %v3747_v48  ;;  %4074 = vmatmul.bf16.gmra.mxu0 %v10987_v17 }
 0x6a5   :  { %6227 = vst [vmem:[%s10936_s3 + $0x778] sm:$0xff] %v5795_v61  ;;  %7268 = vmatmul.msk.bf16.gmra.mxu2 %vm1828_vm1, %v10981_v0 }
 0x6a6   :  { %v5802_v50 = vadd.f32 %v10382_v20, %v3892_v1 }
 0x6a8   :  { %v3749_v37 = vpop.f32.mrf.mxu1  ;;  %6234 = vst [vmem:[%s10936_s3 + $0x7b0] sm:$0xff] %v5802_v50  ;;  %v4179_v14 = vpop.f32.mrf.mxu2 }
 0x6a9   :  { %v4180_v7 = vadd.f32 %v4179_v14, %v4035_v54  ;;  %v4037_v32 = vpop.f32.mrf.mxu0 }
 0x6ab   :  { %v5803_v46 = vadd.f32 %v10392_v2, %v4180_v7  ;;  %v3893_v31 = vpop.f32.mrf.mxu3 }
 0x6ac   :  { %v3894_v18 = vadd.f32 %v3893_v31, %v3749_v37 }
 0x6ad   :  { %6235 = vst [vmem:[%s10936_s3 + $0x7b8] sm:$0xff] %v5803_v46 }
 0x6ae   :  { %v5810_v0 = vadd.f32 %v10382_v20, %v3894_v18 }
 0x6b0   :  { %v3752_v36 = vpop.f32.mrf.mxu1  ;;  %6242 = vst [vmem:[%s10936_s3 + $0x7f0] sm:$0xff] %v5810_v0  ;;  %7242 = vmatmul.msk.bf16.gmra.mxu3 %vm1828_vm1, %v10988_v28  ;;  %v4181_v63 = vpop.f32.mrf.mxu2 }
 0x6b1   :  { %v4182_v21 = vadd.f32 %v4181_v63, %v4037_v32  ;;  %v4040_v33 = vpop.f32.mrf.mxu0 }
 0x6b3   :  { %3791 = vmatmul.bf16.gmra.mxu1 %v10989_v24  ;;  %v5811_v39 = vadd.f32 %v10392_v2, %v4182_v21  ;;  %v3896_v3 = vpop.f32.mrf.mxu3 }
 0x6b4   :  { %v3897_v12 = vadd.f32 %v3896_v3, %v3752_v36  ;;  %4079 = vmatmul.bf16.gmra.mxu0 %v10989_v24 }
 0x6b5   :  { %6243 = vst [vmem:[%s10936_s3 + $0x7f8] sm:$0xff] %v5811_v39  ;;  %7269 = vmatmul.msk.bf16.gmra.mxu2 %vm1828_vm1, %v10988_v28 }
 0x6b6   :  { %v5818_v47 = vadd.f32 %v10382_v20, %v3897_v12 }
 0x6b8   :  { %v3754_v11 = vpop.f32.mrf.mxu1  ;;  %6250 = vst [vmem:[%s10936_s3 + $0x830] sm:$0xff] %v5818_v47  ;;  %v4184_v35 = vpop.f32.mrf.mxu2 }
 0x6b9   :  { %v4185_v16 = vadd.f32 %v4184_v35, %v4040_v33  ;;  %v4042_v6 = vpop.f32.mrf.mxu0 }
 0x6bb   :  { %v5819_v25 = vadd.f32 %v10392_v2, %v4185_v16  ;;  %v3898_v59 = vpop.f32.mrf.mxu3 }
 0x6bc   :  { %v3899_v8 = vadd.f32 %v3898_v59, %v3754_v11 }
 0x6bd   :  { %6251 = vst [vmem:[%s10936_s3 + $0x838] sm:$0xff] %v5819_v25 }
 0x6be   :  { %v5826_v19 = vadd.f32 %v10382_v20, %v3899_v8 }
 0x6c0   :  { %v3757_v62 = vpop.f32.mrf.mxu1  ;;  %6258 = vst [vmem:[%s10936_s3 + $0x870] sm:$0xff] %v5826_v19  ;;  %7243 = vmatmul.msk.bf16.gmra.mxu3 %vm1828_vm1, %v10985_v10  ;;  %v4186_v34 = vpop.f32.mrf.mxu2 }
 0x6c1   :  { %v4187_v5 = vadd.f32 %v4186_v34, %v4042_v6  ;;  %v4045_v38 = vpop.f32.mrf.mxu0 }
 0x6c3   :  { %3796 = vmatmul.bf16.gmra.mxu1 %v10990_v29  ;;  %v5827_v22 = vadd.f32 %v10392_v2, %v4187_v5  ;;  %v3901_v9 = vpop.f32.mrf.mxu3 }
 0x6c4   :  { %v3902_v52 = vadd.f32 %v3901_v9, %v3757_v62  ;;  %4084 = vmatmul.bf16.gmra.mxu0 %v10990_v29 }
 0x6c5   :  { %6259 = vst [vmem:[%s10936_s3 + $0x878] sm:$0xff] %v5827_v22  ;;  %7270 = vmatmul.msk.bf16.gmra.mxu2 %vm1828_vm1, %v10985_v10 }
 0x6c6   :  { %v5834_v40 = vadd.f32 %v10382_v20, %v3902_v52 }
 0x6c8   :  { %v3759_v58 = vpop.f32.mrf.mxu1  ;;  %6266 = vst [vmem:[%s10936_s3 + $0x8b0] sm:$0xff] %v5834_v40  ;;  %v4189_v26 = vpop.f32.mrf.mxu2 }
 0x6c9   :  { %v4190_v55 = vadd.f32 %v4189_v26, %v4045_v38  ;;  %v4047_v56 = vpop.f32.mrf.mxu0 }
 0x6cb   :  { %v5835_v57 = vadd.f32 %v10392_v2, %v4190_v55  ;;  %v3903_v15 = vpop.f32.mrf.mxu3 }
 0x6cc   :  { %v3904_v43 = vadd.f32 %v3903_v15, %v3759_v58 }
 0x6cd   :  { %6267 = vst [vmem:[%s10936_s3 + $0x8b8] sm:$0xff] %v5835_v57 }
 0x6ce   :  { %v5842_v10 = vadd.f32 %v10382_v20, %v3904_v43 }
 0x6d0   :  { %v3762_v60 = vpop.f32.mrf.mxu1  ;;  %6274 = vst [vmem:[%s10936_s3 + $0x8f0] sm:$0xff] %v5842_v10  ;;  %7244 = vmatmul.msk.bf16.gmra.mxu3 %vm1828_vm1, %v8643_v23  ;;  %v4191_v4 = vpop.f32.mrf.mxu2 }
 0x6d1   :  { %v4192_v51 = vadd.f32 %v4191_v4, %v4047_v56  ;;  %v4050_v53 = vpop.f32.mrf.mxu0 }
 0x6d3   :  { %3801 = vmatmul.bf16.gmra.mxu1 %v8671_v41  ;;  %v5843_v45 = vadd.f32 %v10392_v2, %v4192_v51  ;;  %v3906_v13 = vpop.f32.mrf.mxu3 }
 0x6d4   :  { %v3907_v49 = vadd.f32 %v3906_v13, %v3762_v60  ;;  %4089 = vmatmul.bf16.gmra.mxu0 %v8671_v41 }
 0x6d5   :  { %6275 = vst [vmem:[%s10936_s3 + $0x8f8] sm:$0xff] %v5843_v45  ;;  %7271 = vmatmul.msk.bf16.gmra.mxu2 %vm1828_vm1, %v8643_v23 }
 0x6d6   :  { %v5850_v27 = vadd.f32 %v10382_v20, %v3907_v49 }
 0x6d8   :  { %v3764_v48 = vpop.f32.mrf.mxu1  ;;  %6282 = vst [vmem:[%s10936_s3 + $0x930] sm:$0xff] %v5850_v27  ;;  %v4194_v30 = vpop.f32.mrf.mxu2 }
 0x6d9   :  { %v4195_v42 = vadd.f32 %v4194_v30, %v4050_v53  ;;  %v4052_v54 = vpop.f32.mrf.mxu0 }
 0x6db   :  { %v5851_v17 = vadd.f32 %v10392_v2, %v4195_v42  ;;  %v3908_v41 = vpop.f32.mrf.mxu3 }
 0x6dc   :  { %v3909_v61 = vadd.f32 %v3908_v41, %v3764_v48 }
 0x6dd   :  { %6283 = vst [vmem:[%s10936_s3 + $0x938] sm:$0xff] %v5851_v17 }
 0x6de   :  { %v5858_v23 = vadd.f32 %v10382_v20, %v3909_v61 }
 0x6e0   :  { %v3767_v44 = vpop.f32.mrf.mxu1  ;;  %6290 = vst [vmem:[%s10936_s3 + $0x970] sm:$0xff] %v5858_v23  ;;  %v4196_v1 = vpop.f32.mrf.mxu2 }
 0x6e1   :  { %v4197_v50 = vadd.f32 %v4196_v1, %v4052_v54  ;;  %v4055_v37 = vpop.f32.mrf.mxu0 }
 0x6e3   :  { %v5859_v14 = vadd.f32 %v10392_v2, %v4197_v50  ;;  %v3911_v7 = vpop.f32.mrf.mxu3 }
 0x6e4   :  { %v3912_v32 = vadd.f32 %v3911_v7, %v3767_v44 }
 0x6e5   :  { %6291 = vst [vmem:[%s10936_s3 + $0x978] sm:$0xff] %v5859_v14 }
 0x6e6   :  { %v5866_v46 = vadd.f32 %v10382_v20, %v3912_v32 }
 0x6e8   :  { %v3769_v31 = vpop.f32.mrf.mxu1  ;;  %6298 = vst [vmem:[%s10936_s3 + $0x9b0] sm:$0xff] %v5866_v46  ;;  %v4199_v18 = vpop.f32.mrf.mxu2 }
 0x6e9   :  { %v4200_v0 = vadd.f32 %v4199_v18, %v4055_v37  ;;  %v4057_v36 = vpop.f32.mrf.mxu0 }
 0x6eb   :  { %v5867_v28 = vadd.f32 %v10392_v2, %v4200_v0  ;;  %v3913_v63 = vpop.f32.mrf.mxu3 }
 0x6ec   :  { %v3914_v21 = vadd.f32 %v3913_v63, %v3769_v31 }
 0x6ed   :  { %6299 = vst [vmem:[%s10936_s3 + $0x9b8] sm:$0xff] %v5867_v28 }
 0x6ee   :  { %v5874_v33 = vadd.f32 %v10382_v20, %v3914_v21 }
 0x6f0   :  { %v3772_v24 = vpop.f32.mrf.mxu1  ;;  %6306 = vst [vmem:[%s10936_s3 + $0x9f0] sm:$0xff] %v5874_v33  ;;  %v4201_v39 = vpop.f32.mrf.mxu2 }
 0x6f1   :  { %v4202_v3 = vadd.f32 %v4201_v39, %v4057_v36  ;;  %v4060_v12 = vpop.f32.mrf.mxu0 }
 0x6f3   :  { %v5875_v47 = vadd.f32 %v10392_v2, %v4202_v3  ;;  %v3916_v11 = vpop.f32.mrf.mxu3 }
 0x6f4   :  { %v3917_v35 = vadd.f32 %v3916_v11, %v3772_v24 }
 0x6f5   :  { %6307 = vst [vmem:[%s10936_s3 + $0x9f8] sm:$0xff] %v5875_v47 }
 0x6f6   :  { %v5882_v16 = vadd.f32 %v10382_v20, %v3917_v35 }
 0x6f8   :  { %v3774_v6 = vpop.f32.mrf.mxu1  ;;  %6314 = vst [vmem:[%s10936_s3 + $0xa30] sm:$0xff] %v5882_v16  ;;  %v4204_v25 = vpop.f32.mrf.mxu2 }
 0x6f9   :  { %v4205_v59 = vadd.f32 %v4204_v25, %v4060_v12  ;;  %v4062_v8 = vpop.f32.mrf.mxu0 }
 0x6fb   :  { %v5883_v19 = vadd.f32 %v10392_v2, %v4205_v59  ;;  %v3918_v62 = vpop.f32.mrf.mxu3 }
 0x6fc   :  { %v3919_v34 = vadd.f32 %v3918_v62, %v3774_v6 }
 0x6fd   :  { %6315 = vst [vmem:[%s10936_s3 + $0xa38] sm:$0xff] %v5883_v19 }
 0x6fe   :  { %v5890_v5 = vadd.f32 %v10382_v20, %v3919_v34 }
 0x700   :  { %v3777_v38 = vpop.f32.mrf.mxu1  ;;  %6322 = vst [vmem:[%s10936_s3 + $0xa70] sm:$0xff] %v5890_v5  ;;  %v4206_v29 = vpop.f32.mrf.mxu2 }
 0x701   :  { %v4207_v22 = vadd.f32 %v4206_v29, %v4062_v8  ;;  %v4065_v9 = vpop.f32.mrf.mxu0 }
 0x703   :  { %v5891_v52 = vadd.f32 %v10392_v2, %v4207_v22  ;;  %v3921_v40 = vpop.f32.mrf.mxu3 }
 0x704   :  { %v3922_v58 = vadd.f32 %v3921_v40, %v3777_v38 }
 0x705   :  { %6323 = vst [vmem:[%s10936_s3 + $0xa78] sm:$0xff] %v5891_v52 }
 0x706   :  { %v5898_v26 = vadd.f32 %v10382_v20, %v3922_v58 }
 0x708   :  { %v3779_v55 = vpop.f32.mrf.mxu1  ;;  %6330 = vst [vmem:[%s10936_s3 + $0xab0] sm:$0xff] %v5898_v26  ;;  %v4209_v56 = vpop.f32.mrf.mxu2 }
 0x709   :  { %v4210_v57 = vadd.f32 %v4209_v56, %v4065_v9  ;;  %v4067_v15 = vpop.f32.mrf.mxu0 }
 0x70b   :  { %v5899_v43 = vadd.f32 %v10392_v2, %v4210_v57  ;;  %v3923_v10 = vpop.f32.mrf.mxu3 }
 0x70c   :  { %v3924_v60 = vadd.f32 %v3923_v10, %v3779_v55 }
 0x70d   :  { %6331 = vst [vmem:[%s10936_s3 + $0xab8] sm:$0xff] %v5899_v43 }
 0x70e   :  { %v5906_v4 = vadd.f32 %v10382_v20, %v3924_v60 }
 0x710   :  { %v3782_v51 = vpop.f32.mrf.mxu1  ;;  %6338 = vst [vmem:[%s10936_s3 + $0xaf0] sm:$0xff] %v5906_v4  ;;  %v4211_v53 = vpop.f32.mrf.mxu2 }
 0x711   :  { %v4212_v45 = vadd.f32 %v4211_v53, %v4067_v15  ;;  %v4070_v13 = vpop.f32.mrf.mxu0 }
 0x713   :  { %v5907_v49 = vadd.f32 %v10392_v2, %v4212_v45  ;;  %v3926_v27 = vpop.f32.mrf.mxu3 }
 0x714   :  { %v3927_v48 = vadd.f32 %v3926_v27, %v3782_v51 }
 0x715   :  { %6339 = vst [vmem:[%s10936_s3 + $0xaf8] sm:$0xff] %v5907_v49 }
 0x716   :  { %v5914_v30 = vadd.f32 %v10382_v20, %v3927_v48 }
 0x718   :  { %v3784_v42 = vpop.f32.mrf.mxu1  ;;  %6346 = vst [vmem:[%s10936_s3 + $0xb30] sm:$0xff] %v5914_v30  ;;  %v4214_v54 = vpop.f32.mrf.mxu2 }
 0x719   :  { %v4215_v17 = vadd.f32 %v4214_v54, %v4070_v13  ;;  %v4072_v41 = vpop.f32.mrf.mxu0 }
 0x71b   :  { %v5915_v61 = vadd.f32 %v10392_v2, %v4215_v17  ;;  %v3928_v23 = vpop.f32.mrf.mxu3 }
 0x71c   :  { %v3929_v44 = vadd.f32 %v3928_v23, %v3784_v42 }
 0x71d   :  { %6347 = vst [vmem:[%s10936_s3 + $0xb38] sm:$0xff] %v5915_v61 }
 0x71e   :  { %v5922_v1 = vadd.f32 %v10382_v20, %v3929_v44 }
 0x720   :  { %v3787_v50 = vpop.f32.mrf.mxu1  ;;  %6354 = vst [vmem:[%s10936_s3 + $0xb70] sm:$0xff] %v5922_v1  ;;  %v4216_v37 = vpop.f32.mrf.mxu2 }
 0x721   :  { %v4217_v14 = vadd.f32 %v4216_v37, %v4072_v41  ;;  %v4075_v7 = vpop.f32.mrf.mxu0 }
 0x723   :  { %v5923_v32 = vadd.f32 %v10392_v2, %v4217_v14  ;;  %v3931_v46 = vpop.f32.mrf.mxu3 }
 0x724   :  { %v3932_v31 = vadd.f32 %v3931_v46, %v3787_v50 }
 0x725   :  { %6355 = vst [vmem:[%s10936_s3 + $0xb78] sm:$0xff] %v5923_v32 }
 0x726   :  { %v5930_v18 = vadd.f32 %v10382_v20, %v3932_v31 }
 0x728   :  { %v3789_v0 = vpop.f32.mrf.mxu1  ;;  %6362 = vst [vmem:[%s10936_s3 + $0xbb0] sm:$0xff] %v5930_v18  ;;  %v4219_v36 = vpop.f32.mrf.mxu2 }
 0x729   :  { %v4220_v28 = vadd.f32 %v4219_v36, %v4075_v7  ;;  %v4077_v63 = vpop.f32.mrf.mxu0 }
 0x72b   :  { %v5931_v21 = vadd.f32 %v10392_v2, %v4220_v28  ;;  %v3933_v33 = vpop.f32.mrf.mxu3 }
 0x72c   :  { %v3934_v24 = vadd.f32 %v3933_v33, %v3789_v0 }
 0x72d   :  { %6363 = vst [vmem:[%s10936_s3 + $0xbb8] sm:$0xff] %v5931_v21 }
 0x72e   :  { %v5938_v39 = vadd.f32 %v10382_v20, %v3934_v24 }
 0x730   :  { %v3792_v3 = vpop.f32.mrf.mxu1  ;;  %6370 = vst [vmem:[%s10936_s3 + $0xbf0] sm:$0xff] %v5938_v39  ;;  %v4221_v12 = vpop.f32.mrf.mxu2 }
 0x731   :  { %v4222_v47 = vadd.f32 %v4221_v12, %v4077_v63  ;;  %v4080_v11 = vpop.f32.mrf.mxu0 }
 0x733   :  { %v5939_v35 = vadd.f32 %v10392_v2, %v4222_v47  ;;  %v3936_v16 = vpop.f32.mrf.mxu3 }
 0x734   :  { %v3937_v6 = vadd.f32 %v3936_v16, %v3792_v3 }
 0x735   :  { %6371 = vst [vmem:[%s10936_s3 + $0xbf8] sm:$0xff] %v5939_v35 }
 0x736   :  { %v5946_v25 = vadd.f32 %v10382_v20, %v3937_v6 }
 0x738   :  { %v3794_v59 = vpop.f32.mrf.mxu1  ;;  %6378 = vst [vmem:[%s10936_s3 + $0xc30] sm:$0xff] %v5946_v25  ;;  %v4224_v8 = vpop.f32.mrf.mxu2 }
 0x739   :  { %v4225_v19 = vadd.f32 %v4224_v8, %v4080_v11  ;;  %v4082_v62 = vpop.f32.mrf.mxu0 }
 0x73b   :  { %v5947_v34 = vadd.f32 %v10392_v2, %v4225_v19  ;;  %v3938_v5 = vpop.f32.mrf.mxu3 }
 0x73c   :  { %v3939_v38 = vadd.f32 %v3938_v5, %v3794_v59 }
 0x73d   :  { %6379 = vst [vmem:[%s10936_s3 + $0xc38] sm:$0xff] %v5947_v34 }
 0x73e   :  { %v5954_v29 = vadd.f32 %v10382_v20, %v3939_v38 }
 0x740   :  { %v3797_v22 = vpop.f32.mrf.mxu1  ;;  %6386 = vst [vmem:[%s10936_s3 + $0xc70] sm:$0xff] %v5954_v29  ;;  %v4226_v9 = vpop.f32.mrf.mxu2 }
 0x741   :  { %v4227_v52 = vadd.f32 %v4226_v9, %v4082_v62  ;;  %v4085_v40 = vpop.f32.mrf.mxu0 }
 0x743   :  { %v5955_v58 = vadd.f32 %v10392_v2, %v4227_v52  ;;  %v3941_v26 = vpop.f32.mrf.mxu3 }
 0x744   :  { %v3942_v55 = vadd.f32 %v3941_v26, %v3797_v22 }
 0x745   :  { %6387 = vst [vmem:[%s10936_s3 + $0xc78] sm:$0xff] %v5955_v58 }
 0x746   :  { %v5962_v56 = vadd.f32 %v10382_v20, %v3942_v55 }
 0x748   :  { %v3799_v57 = vpop.f32.mrf.mxu1  ;;  %6394 = vst [vmem:[%s10936_s3 + $0xcb0] sm:$0xff] %v5962_v56  ;;  %v4229_v15 = vpop.f32.mrf.mxu2 }
 0x749   :  { %v4230_v43 = vadd.f32 %v4229_v15, %v4085_v40  ;;  %v4087_v4 = vpop.f32.mrf.mxu0 }
 0x74b   :  { %v5963_v10 = vadd.f32 %v10392_v2, %v4230_v43  ;;  %v3943_v60 = vpop.f32.mrf.mxu3 }
 0x74c   :  { %v3944_v51 = vadd.f32 %v3943_v60, %v3799_v57 }
 0x74d   :  { %6395 = vst [vmem:[%s10936_s3 + $0xcb8] sm:$0xff] %v5963_v10 }
 0x74e   :  { %v5970_v53 = vadd.f32 %v10382_v20, %v3944_v51 }
 0x750   :  { %6402 = vst [vmem:[%s10936_s3 + $0xcf0] sm:$0xff] %v5970_v53  ;;  %v4231_v45 = vpop.f32.mrf.mxu2  ;;  %v3802_v13 = vpop.f32.mrf.mxu1 }
 0x751   :  { %v4232_v49 = vadd.f32 %v4231_v45, %v4087_v4  ;;  %v4090_v42 = vpop.f32.mrf.mxu0 }
 0x753   :  { %v5971_v27 = vadd.f32 %v10392_v2, %v4232_v49  ;;  %v3946_v48 = vpop.f32.mrf.mxu3 }
 0x754   :  { %v3947_v30 = vadd.f32 %v3946_v48, %v3802_v13 }
 0x755   :  { %6403 = vst [vmem:[%s10936_s3 + $0xcf8] sm:$0xff] %v5971_v27 }
 0x756   :  { %v5978_v54 = vadd.f32 %v10382_v20, %v3947_v30 }
 0x758   :  { %6410 = vst [vmem:[%s10936_s3 + $0xd30] sm:$0xff] %v5978_v54  ;;  %v4234_v17 = vpop.f32.mrf.mxu2  ;;  %v3804_v61 = vpop.f32.mrf.mxu1 }
 0x759   :  { %v4235_v41 = vadd.f32 %v4234_v17, %v4090_v42  ;;  %v4092_v37 = vpop.f32.mrf.mxu0 }
 0x75b   :  { %v5979_v23 = vadd.f32 %v10392_v2, %v4235_v41  ;;  %v3948_v44 = vpop.f32.mrf.mxu3 }
 0x75c   :  { %v3949_v1 = vadd.f32 %v3948_v44, %v3804_v61 }
 0x75d   :  { %6411 = vst [vmem:[%s10936_s3 + $0xd38] sm:$0xff] %v5979_v23 }
 0x75e   :  { %v5986_v50 = vadd.f32 %v10382_v20, %v3949_v1 }
 0x760   :  { %6418 = vst [vmem:[%s10936_s3 + $0xd70] sm:$0xff] %v5986_v50  ;;  %v4236_v14 = vpop.f32.mrf.mxu2 }
 0x761   :  { %v4237_v7 = vadd.f32 %v4236_v14, %v4092_v37 }
 0x763   :  { %v5987_v32 = vadd.f32 %v10392_v2, %v4237_v7 }
 0x765   :  { %6419 = vst [vmem:[%s10936_s3 + $0xd78] sm:$0xff] %v5987_v32 }

</bundles_post_ra>
